<compile_context>
chip_gen: v7x
topology: tpu7x:2x2x1
jax: 0.10.0
libtpu: 0.0.40
codegen_flags: <defaults>
</compile_context>

<pallas_src>
import functools

import jax
import jax.numpy as jnp
import numpy as np
from jax.experimental import pallas as pl
from jax.experimental.pallas import tpu as pltpu

_VMEM_LIMIT = 48 * 1024 * 1024  # headroom under v7x's 64 MiB, >> default 16/32 MiB


# ----------------------------------------------------------------------------
# Pallas kernel: one full DecoderLayer per batch block
#   (self-attn + LN, cross-attn + LN, FFN + LN)
# ----------------------------------------------------------------------------
def _decoder_layer_kernel(x_ref, enc_ref, tmask_ref, emask_ref,
                          wqkv1_ref, bqkv1_ref, wo1_ref, bo1_ref, g1_ref, be1_ref,
                          wq2_ref, bq2_ref, wkv2_ref, bkv2_ref, wo2_ref, bo2_ref,
                          g2_ref, be2_ref,
                          w0_ref, b0_ref, w1_ref, b1_ref, g3_ref, be3_ref,
                          o_ref, attn_ref, ctx_ref,
                          *, n_heads, head_dim, bt, s_dec, s_enc, hidden):
    f32 = jnp.float32
    bf16 = jnp.bfloat16
    H = hidden
    inv_scale = float(head_dim) ** -0.5
    NEG = jnp.float32(-1e10)

    def layer_norm(v, g, b):
        mu = jnp.mean(v, axis=-1, keepdims=True)
        var = jnp.mean((v - mu) ** 2, axis=-1, keepdims=True)
        return (v - mu) * jax.lax.rsqrt(var + 1e-5) * g + b

    def softmax(e):
        m = jnp.max(e, axis=-1, keepdims=True)
        p = jnp.exp(e - m)
        return p * pl.reciprocal(jnp.sum(p, axis=-1, keepdims=True), approx=True)

    x = x_ref[...].astype(f32)        # (R = Bt*S, H)  decoder activations
    enc = enc_ref[...].astype(f32)    # (Re = Bt*Se, H) encoder activations

    # ---------------- self attention (fused QKV over all packed rows) --------
    qkv = jnp.dot(x.astype(bf16), wqkv1_ref[...],
                  preferred_element_type=f32) + bqkv1_ref[...]       # (R, 3H)
    for b in range(bt):
        r0 = b * s_dec
        mask_b = tmask_ref[b]                                        # (S, S)
        for h in range(n_heads):
            c0 = h * head_dim
            q_bh = qkv[r0:r0 + s_dec, c0:c0 + head_dim]
            k_bh = qkv[r0:r0 + s_dec, H + c0:H + c0 + head_dim]
            v_bh = qkv[r0:r0 + s_dec, 2 * H + c0:2 * H + c0 + head_dim]
            energy = jnp.dot(q_bh, k_bh.T,
                             preferred_element_type=f32) * inv_scale
            energy = jnp.where(mask_b == 0.0, NEG, energy)
            p = softmax(energy)
            ctx_ref[r0:r0 + s_dec, c0:c0 + head_dim] = jnp.dot(
                p, v_bh, preferred_element_type=f32)
    attn_out = jnp.dot(ctx_ref[...].astype(bf16), wo1_ref[...],
                       preferred_element_type=f32) + bo1_ref[...]
    ln1 = layer_norm(x + attn_out, g1_ref[...], be1_ref[...])        # (R, H)

    # ---------------- cross attention (Q from decoder, fused K/V from enc) ---
    q2 = jnp.dot(ln1.astype(bf16), wq2_ref[...],
                 preferred_element_type=f32) + bq2_ref[...]          # (R, H)
    kv2 = jnp.dot(enc.astype(bf16), wkv2_ref[...],
                  preferred_element_type=f32) + bkv2_ref[...]        # (Re, 2H)
    for b in range(bt):
        r0 = b * s_dec
        e0 = b * s_enc
        mask_b = emask_ref[b]                                        # (S, Se)
        for h in range(n_heads):
            c0 = h * head_dim
            q_bh = q2[r0:r0 + s_dec, c0:c0 + head_dim]
            k_bh = kv2[e0:e0 + s_enc, c0:c0 + head_dim]
            v_bh = kv2[e0:e0 + s_enc, H + c0:H + c0 + head_dim]
            energy = jnp.dot(q_bh, k_bh.T,
                             preferred_element_type=f32) * inv_scale
            energy = jnp.where(mask_b == 0.0, NEG, energy)
            p = softmax(energy)
            attn_ref[b, h, :, :] = p            # cross-attn weights (returned)
            ctx_ref[r0:r0 + s_dec, c0:c0 + head_dim] = jnp.dot(
                p, v_bh, preferred_element_type=f32)
    cross_out = jnp.dot(ctx_ref[...].astype(bf16), wo2_ref[...],
                        preferred_element_type=f32) + bo2_ref[...]
    ln2 = layer_norm(ln1 + cross_out, g2_ref[...], be2_ref[...])

    # ---------------- position-wise feed forward -----------------------------
    h0 = jnp.maximum(jnp.dot(ln2.astype(bf16), w0_ref[...],
                             preferred_element_type=f32) + b0_ref[...], 0.0)
    ff = jnp.dot(h0.astype(bf16), w1_ref[...],
                 preferred_element_type=f32) + b1_ref[...]
    ln3 = layer_norm(ln2 + ff, g3_ref[...], be3_ref[...])

    o_ref[...] = ln3.astype(o_ref.dtype)


def _pick_bt(B, S, target_rows=128):
    """Smallest divisor of B whose packed rows fill the MXU M dim; else B."""
    for cand in range(1, B + 1):
        if B % cand == 0 and cand * S >= target_rows:
            return cand
    return B


def decoder_layer_pallas(x2d, enc2d, tmask, emask, lp, *, n_heads, B, S, Se, bt):
    R, H = x2d.shape
    hd = H // n_heads
    weights = (lp["wqkv1"], lp["bqkv1"], lp["wo1"], lp["bo1"], lp["g1"], lp["be1"],
               lp["wq2"], lp["bq2"], lp["wkv2"], lp["bkv2"], lp["wo2"], lp["bo2"],
               lp["g2"], lp["be2"],
               lp["w0"], lp["b0"], lp["w1"], lp["b1"], lp["g3"], lp["be3"])

    def wspec(a):
        nd = a.ndim
        return pl.BlockSpec(a.shape, lambda i, _nd=nd: (0,) * _nd)

    n_blocks = B // bt
    kernel = functools.partial(_decoder_layer_kernel, n_heads=n_heads,
                               head_dim=hd, bt=bt, s_dec=S, s_enc=Se, hidden=H)
    out2d, attn = pl.pallas_call(
        kernel,
        out_shape=(jax.ShapeDtypeStruct((R, H), jnp.float32),
                   jax.ShapeDtypeStruct((B, n_heads, S, Se), jnp.float32)),
        grid_spec=pltpu.PrefetchScalarGridSpec(
            num_scalar_prefetch=0,
            grid=(n_blocks,),
            in_specs=[pl.BlockSpec((bt * S, H), lambda i: (i, 0)),
                      pl.BlockSpec((bt * Se, H), lambda i: (i, 0)),
                      pl.BlockSpec((bt, S, S), lambda i: (i, 0, 0)),
                      pl.BlockSpec((bt, S, Se), lambda i: (i, 0, 0))]
                     + [wspec(a) for a in weights],
            out_specs=[pl.BlockSpec((bt * S, H), lambda i: (i, 0)),
                       pl.BlockSpec((bt, n_heads, S, Se),
                                    lambda i: (i, 0, 0, 0))],
            scratch_shapes=[pltpu.VMEM((bt * S, H), jnp.float32)],
        ),
        compiler_params=pltpu.CompilerParams(
            dimension_semantics=("parallel",),
            vmem_limit_bytes=_VMEM_LIMIT),
    )(x2d, enc2d, tmask, emask, *weights)
    return out2d, attn


# ----------------------------------------------------------------------------
# Final fc_out projection (hidden -> vocab) as a small Pallas kernel
# ----------------------------------------------------------------------------
def _linear_kernel(x_ref, w_ref, b_ref, o_ref):
    o_ref[...] = (jnp.dot(x_ref[...].astype(jnp.bfloat16), w_ref[...],
                          preferred_element_type=jnp.float32)
                  + b_ref[...]).astype(o_ref.dtype)


def linear_pallas(x2d, w, b):
    R, H = x2d.shape
    V = w.shape[1]
    return pl.pallas_call(
        _linear_kernel,
        out_shape=jax.ShapeDtypeStruct((R, V), jnp.float32),
        grid_spec=pltpu.PrefetchScalarGridSpec(
            num_scalar_prefetch=0, grid=(1,),
            in_specs=[pl.BlockSpec((R, H), lambda i: (0, 0)),
                      pl.BlockSpec((H, V), lambda i: (0, 0)),
                      pl.BlockSpec((1, V), lambda i: (0, 0))],
            out_specs=pl.BlockSpec((R, V), lambda i: (0, 0))),
        compiler_params=pltpu.CompilerParams(
            dimension_semantics=("arbitrary",),
            vmem_limit_bytes=_VMEM_LIMIT),
    )(x2d, w, b)


# ----------------------------------------------------------------------------
# Full Decoder forward (embedding gather as plain-JAX glue, rest in Pallas)
# ----------------------------------------------------------------------------
def _prep_mask(mask, B, S_q, S_k):
    if mask is None:
        return jnp.ones((B, S_q, S_k), jnp.float32)
    m = jnp.asarray(mask, jnp.float32)
    if m.ndim == 4:                       # (B, 1, S_q or 1, S_k) conventions
        m = m[:, 0]
    return jnp.broadcast_to(m, (B, S_q, S_k))


def decoder_forward_pallas(target_ids, encd, target_mask, encd_mask, params, n_heads):
    tok_emb = params["tok_emb"]
    pos_emb = params["pos_emb"]
    B, S = target_ids.shape
    _, Se, H = encd.shape
    scale = jnp.sqrt(jnp.float32(H))
    # TODO(synk): embedding lookup is a gather; done as plain-JAX glue.
    x = jnp.take(tok_emb, target_ids, axis=0) * scale + pos_emb[jnp.arange(S)][None]
    x2d = x.reshape(B * S, H).astype(jnp.float32)
    enc2d = encd.reshape(B * Se, H).astype(jnp.float32)

    tmask = _prep_mask(target_mask, B, S, S)
    emask = _prep_mask(encd_mask, B, S, Se)

    bt = _pick_bt(B, S)
    attention = None
    for lp in params["layers"]:
        x2d, attention = decoder_layer_pallas(
            x2d, enc2d, tmask, emask, lp, n_heads=n_heads, B=B, S=S, Se=Se, bt=bt)
    logits = linear_pallas(x2d, params["w_out"], params["b_out"])
    return logits.reshape(B, S, -1), attention


# ----------------------------------------------------------------------------
# Pure-JAX reference (mirrors the PyTorch forward at eval time, bf16 Linears
# with f32 accumulation, matching the kernel's numerics)
# ----------------------------------------------------------------------------
def _bf_dot(x, w):
    return jnp.dot(x.astype(jnp.bfloat16), w.astype(jnp.bfloat16),
                   preferred_element_type=jnp.float32)


def decoder_forward_ref(target_ids, encd, target_mask, encd_mask, params, n_heads):
    tok_emb = params["tok_emb"]
    pos_emb = params["pos_emb"]
    B, S = target_ids.shape
    _, Se, H = encd.shape
    hd = H // n_heads
    x = jnp.take(tok_emb, target_ids, axis=0) * jnp.sqrt(jnp.float32(H)) \
        + pos_emb[jnp.arange(S)][None]
    enc = encd.astype(jnp.float32)

    def layer_norm(v, g, b):
        mu = jnp.mean(v, axis=-1, keepdims=True)
        var = jnp.mean((v - mu) ** 2, axis=-1, keepdims=True)
        return (v - mu) * jax.lax.rsqrt(var + 1e-5) * g + b

    def split_heads(t, L):
        return t.reshape(B, L, n_heads, hd).transpose(0, 2, 1, 3)

    def mha(q_in, kv_in, wq, bq, wkv, bkv, wo, bo, mask, Lq, Lk):
        q = _bf_dot(q_in, wq) + bq
        kv = _bf_dot(kv_in, wkv) + bkv
        k, v = kv[..., :H], kv[..., H:]
        qh, kh, vh = split_heads(q, Lq), split_heads(k, Lk), split_heads(v, Lk)
        energy = jnp.einsum("bhqd,bhkd->bhqk", qh, kh) / jnp.sqrt(jnp.float32(hd))
        if mask is not None:
            energy = jnp.where(mask == 0, -1e10, energy)
        attn = jax.nn.softmax(energy, axis=-1)
        ctx = jnp.einsum("bhqk,bhkd->bhqd", attn, vh)
        ctx = ctx.transpose(0, 2, 1, 3).reshape(B, Lq, H)
        return _bf_dot(ctx, wo) + bo, attn

    attention = None
    for p in params["layers"]:
        sa, _ = mha(x, x,
                    p["wqkv1"][:, :H], p["bqkv1"][:, :H],
                    p["wqkv1"][:, H:], p["bqkv1"][:, H:],
                    p["wo1"], p["bo1"], target_mask, S, S)
        ln1 = layer_norm(x + sa, p["g1"], p["be1"])
        ca, attention = mha(ln1, enc, p["wq2"], p["bq2"], p["wkv2"], p["bkv2"],
                            p["wo2"], p["bo2"], encd_mask, S, Se)
        ln2 = layer_norm(ln1 + ca, p["g2"], p["be2"])
        ff = _bf_dot(jnp.maximum(_bf_dot(ln2, p["w0"]) + p["b0"], 0.0),
                     p["w1"]) + p["b1"]
        x = layer_norm(ln2 + ff, p["g3"], p["be3"])
    logits = _bf_dot(x, params["w_out"]) + params["b_out"]
    return logits, attention


# ----------------------------------------------------------------------------
# Deterministic parameter init (shapes from the PyTorch module __init__);
# attention/FFN weight matrices are fused + cast to bf16, biases/LN stay f32.
# ----------------------------------------------------------------------------
def init_params(key, vocab, hidden, n_layers, pf_dim, max_seq_len):
    bf16 = jnp.bfloat16
    keys = jax.random.split(key, 4 + n_layers)
    s = 0.08
    params = {
        "tok_emb": 0.05 * jax.random.normal(keys[0], (vocab, hidden), jnp.float32),
        "pos_emb": 0.05 * jax.random.normal(keys[1], (max_seq_len, hidden), jnp.float32),
        "w_out": (s * jax.random.normal(keys[2], (hidden, vocab), jnp.float32)).astype(bf16),
        "b_out": s * jax.random.normal(keys[3], (1, vocab), jnp.float32),
        "layers": [],
    }
    for li in range(n_layers):
        ks = jax.random.split(keys[4 + li], 20)

        def w(k, shp):
            return s * jax.random.normal(k, shp, jnp.float32)

        wq1, wk1, wv1 = w(ks[0], (hidden, hidden)), w(ks[1], (hidden, hidden)), w(ks[2], (hidden, hidden))
        bq1, bk1, bv1 = w(ks[3], (1, hidden)), w(ks[4], (1, hidden)), w(ks[5], (1, hidden))
        wo1, bo1 = w(ks[6], (hidden, hidden)), w(ks[7], (1, hidden))
        wq2, wk2, wv2 = w(ks[8], (hidden, hidden)), w(ks[9], (hidden, hidden)), w(ks[10], (hidden, hidden))
        bq2, bk2, bv2 = w(ks[11], (1, hidden)), w(ks[12], (1, hidden)), w(ks[13], (1, hidden))
        wo2, bo2 = w(ks[14], (hidden, hidden)), w(ks[15], (1, hidden))
        w0, b0 = w(ks[16], (hidden, pf_dim)), w(ks[17], (1, pf_dim))
        w1, b1 = w(ks[18], (pf_dim, hidden)), w(ks[19], (1, hidden))
        lp = {
            "wqkv1": jnp.concatenate([wq1, wk1, wv1], axis=1).astype(bf16),
            "bqkv1": jnp.concatenate([bq1, bk1, bv1], axis=1),
            "wo1": wo1.astype(bf16), "bo1": bo1,
            "g1": jnp.ones((1, hidden), jnp.float32),
            "be1": jnp.zeros((1, hidden), jnp.float32),
            "wq2": wq2.astype(bf16), "bq2": bq2,
            "wkv2": jnp.concatenate([wk2, wv2], axis=1).astype(bf16),
            "bkv2": jnp.concatenate([bk2, bv2], axis=1),
            "wo2": wo2.astype(bf16), "bo2": bo2,
            "g2": jnp.ones((1, hidden), jnp.float32),
            "be2": jnp.zeros((1, hidden), jnp.float32),
            "w0": w0.astype(bf16), "b0": b0,
            "w1": w1.astype(bf16), "b1": b1,
            "g3": jnp.ones((1, hidden), jnp.float32),
            "be3": jnp.zeros((1, hidden), jnp.float32),
        }
        params["layers"].append(lp)
    return params


if __name__ == "__main__":
    # Small shapes consistent with the module's forward
    B, S, Se = 2, 8, 8
    VOCAB, HIDDEN, N_LAYERS, N_HEADS, PF_DIM, MAX_LEN = 50, 32, 2, 4, 64, 100

    key = jax.random.PRNGKey(0)
    k_tok, k_enc, k_par = jax.random.split(key, 3)
    target_ids = jax.random.randint(k_tok, (B, S), 0, VOCAB, dtype=jnp.int32)
    encd = 0.3 * jax.random.normal(k_enc, (B, Se, HIDDEN), jnp.float32)

    # causal target mask (B, 1, S, S); encoder padding mask (B, 1, 1, Se)
    target_mask = jnp.broadcast_to(
        jnp.tril(jnp.ones((S, S), jnp.float32))[None, None], (B, 1, S, S))
    enc_valid = jnp.array([[1.0] * Se, [1.0] * (Se - 2) + [0.0, 0.0]], jnp.float32)
    encd_mask = enc_valid[:, None, None, :]

    params = init_params(k_par, VOCAB, HIDDEN, N_LAYERS, PF_DIM, MAX_LEN)

    out, attn = decoder_forward_pallas(target_ids, encd, target_mask, encd_mask,
                                       params, N_HEADS)
    out = jax.block_until_ready(out)
    attn = jax.block_until_ready(attn)

    ref_out, ref_attn = decoder_forward_ref(target_ids, encd, target_mask,
                                            encd_mask, params, N_HEADS)
    ref_out = jax.block_until_ready(ref_out)

    # tolerance covers bf16 matmul inputs + approximate softmax reciprocal
    np.testing.assert_allclose(np.asarray(out), np.asarray(ref_out),
                               rtol=1e-2, atol=1e-2)
    np.testing.assert_allclose(np.asarray(attn), np.asarray(ref_attn),
                               rtol=1e-2, atol=1e-2)

    assert out.shape == (B, S, VOCAB)
    assert attn.shape == (B, N_HEADS, S, Se)
    print("KERNEL_OK")
</pallas_src>

<mosaic_0001>
module attributes {stable_mosaic.version = 11 : i64} {
  func.func @_decoder_layer_kernel(%arg0: i32, %arg1: memref<16x32xf32, #tpu.memory_space<vmem>>, %arg2: memref<16x32xf32, #tpu.memory_space<vmem>>, %arg3: memref<2x8x8xf32, #tpu.memory_space<vmem>>, %arg4: memref<2x8x8xf32, #tpu.memory_space<vmem>>, %arg5: memref<32x96xbf16, #tpu.memory_space<vmem>>, %arg6: memref<1x96xf32, #tpu.memory_space<vmem>>, %arg7: memref<32x32xbf16, #tpu.memory_space<vmem>>, %arg8: memref<1x32xf32, #tpu.memory_space<vmem>>, %arg9: memref<1x32xf32, #tpu.memory_space<vmem>>, %arg10: memref<1x32xf32, #tpu.memory_space<vmem>>, %arg11: memref<32x32xbf16, #tpu.memory_space<vmem>>, %arg12: memref<1x32xf32, #tpu.memory_space<vmem>>, %arg13: memref<32x64xbf16, #tpu.memory_space<vmem>>, %arg14: memref<1x64xf32, #tpu.memory_space<vmem>>, %arg15: memref<32x32xbf16, #tpu.memory_space<vmem>>, %arg16: memref<1x32xf32, #tpu.memory_space<vmem>>, %arg17: memref<1x32xf32, #tpu.memory_space<vmem>>, %arg18: memref<1x32xf32, #tpu.memory_space<vmem>>, %arg19: memref<32x64xbf16, #tpu.memory_space<vmem>>, %arg20: memref<1x64xf32, #tpu.memory_space<vmem>>, %arg21: memref<64x32xbf16, #tpu.memory_space<vmem>>, %arg22: memref<1x32xf32, #tpu.memory_space<vmem>>, %arg23: memref<1x32xf32, #tpu.memory_space<vmem>>, %arg24: memref<1x32xf32, #tpu.memory_space<vmem>>, %arg25: memref<16x32xf32, #tpu.memory_space<vmem>>, %arg26: memref<2x4x8x8xf32, #tpu.memory_space<vmem>>, %arg27: memref<16x32xf32, #tpu.memory_space<vmem>>) attributes {dimension_semantics = [#tpu.dimension_semantics<parallel>], iteration_bounds = array<i64: 1>, scalar_prefetch = 0 : i64, scratch_operands = 1 : i64, tpu.core_type = #tpu.core_type<tc>, window_params = [{transform_indices = @transform_0, window_bounds = array<i64: 16, 32>}, {transform_indices = @transform_1, window_bounds = array<i64: 16, 32>}, {transform_indices = @transform_2, window_bounds = array<i64: 2, 8, 8>}, {transform_indices = @transform_3, window_bounds = array<i64: 2, 8, 8>}, {pipeline_mode = #tpu.pipeline_mode<synchronous>, transform_indices = @transform_4, window_bounds = array<i64: 32, 96>}, {pipeline_mode = #tpu.pipeline_mode<synchronous>, transform_indices = @transform_5, window_bounds = array<i64: 1, 96>}, {pipeline_mode = #tpu.pipeline_mode<synchronous>, transform_indices = @transform_6, window_bounds = array<i64: 32, 32>}, {pipeline_mode = #tpu.pipeline_mode<synchronous>, transform_indices = @transform_7, window_bounds = array<i64: 1, 32>}, {pipeline_mode = #tpu.pipeline_mode<synchronous>, transform_indices = @transform_8, window_bounds = array<i64: 1, 32>}, {pipeline_mode = #tpu.pipeline_mode<synchronous>, transform_indices = @transform_9, window_bounds = array<i64: 1, 32>}, {pipeline_mode = #tpu.pipeline_mode<synchronous>, transform_indices = @transform_10, window_bounds = array<i64: 32, 32>}, {pipeline_mode = #tpu.pipeline_mode<synchronous>, transform_indices = @transform_11, window_bounds = array<i64: 1, 32>}, {pipeline_mode = #tpu.pipeline_mode<synchronous>, transform_indices = @transform_12, window_bounds = array<i64: 32, 64>}, {pipeline_mode = #tpu.pipeline_mode<synchronous>, transform_indices = @transform_13, window_bounds = array<i64: 1, 64>}, {pipeline_mode = #tpu.pipeline_mode<synchronous>, transform_indices = @transform_14, window_bounds = array<i64: 32, 32>}, {pipeline_mode = #tpu.pipeline_mode<synchronous>, transform_indices = @transform_15, window_bounds = array<i64: 1, 32>}, {pipeline_mode = #tpu.pipeline_mode<synchronous>, transform_indices = @transform_16, window_bounds = array<i64: 1, 32>}, {pipeline_mode = #tpu.pipeline_mode<synchronous>, transform_indices = @transform_17, window_bounds = array<i64: 1, 32>}, {pipeline_mode = #tpu.pipeline_mode<synchronous>, transform_indices = @transform_18, window_bounds = array<i64: 32, 64>}, {pipeline_mode = #tpu.pipeline_mode<synchronous>, transform_indices = @transform_19, window_bounds = array<i64: 1, 64>}, {pipeline_mode = #tpu.pipeline_mode<synchronous>, transform_indices = @transform_20, window_bounds = array<i64: 64, 32>}, {pipeline_mode = #tpu.pipeline_mode<synchronous>, transform_indices = @transform_21, window_bounds = array<i64: 1, 32>}, {pipeline_mode = #tpu.pipeline_mode<synchronous>, transform_indices = @transform_22, window_bounds = array<i64: 1, 32>}, {pipeline_mode = #tpu.pipeline_mode<synchronous>, transform_indices = @transform_23, window_bounds = array<i64: 1, 32>}, {transform_indices = @transform_24, window_bounds = array<i64: 16, 32>}, {transform_indices = @transform_25, window_bounds = array<i64: 2, 4, 8, 8>}]} {
    %c0 = arith.constant 0 : index
    %c0_0 = arith.constant 0 : index
    %0 = vector.load %arg1[%c0, %c0_0] : memref<16x32xf32, #tpu.memory_space<vmem>>, vector<16x32xf32>
    %c0_1 = arith.constant 0 : index
    %c0_2 = arith.constant 0 : index
    %1 = vector.load %arg2[%c0_1, %c0_2] : memref<16x32xf32, #tpu.memory_space<vmem>>, vector<16x32xf32>
    %2 = arith.truncf %0 : vector<16x32xf32> to vector<16x32xbf16>
    %c0_3 = arith.constant 0 : index
    %c0_4 = arith.constant 0 : index
    %3 = vector.load %arg5[%c0_3, %c0_4] : memref<32x96xbf16, #tpu.memory_space<vmem>>, vector<32x96xbf16>
    %cst = arith.constant dense<0.000000e+00> : vector<16x96xf32>
    %4 = tpu.matmul %2, %3, %cst {dimension_numbers = #tpu.dot_dimension_numbers<[1], [0], [0], [1], [0, 0, 1, 1], [], []>} : vector<16x32xbf16>, vector<32x96xbf16>, vector<16x96xf32> -> vector<16x96xf32>
    %c0_5 = arith.constant 0 : index
    %c0_6 = arith.constant 0 : index
    %5 = vector.load %arg6[%c0_5, %c0_6] : memref<1x96xf32, #tpu.memory_space<vmem>>, vector<1x96xf32>
    %6 = vector.broadcast %5 : vector<1x96xf32> to vector<16x96xf32>
    %7 = arith.addf %4, %6 : vector<16x96xf32>
    %c0_7 = arith.constant 0 : index
    %c0_8 = arith.constant 0 : index
    %c0_9 = arith.constant 0 : index
    %8 = vector.load %arg3[%c0_7, %c0_8, %c0_9] : memref<2x8x8xf32, #tpu.memory_space<vmem>>, vector<1x8x8xf32>
    %9 = vector.shape_cast %8 : vector<1x8x8xf32> to vector<8x8xf32>
    %10 = vector.extract_strided_slice %7 {offsets = [0, 0], sizes = [8, 8], strides = [1, 1]} : vector<16x96xf32> to vector<8x8xf32>
    %11 = vector.extract_strided_slice %7 {offsets = [0, 32], sizes = [8, 8], strides = [1, 1]} : vector<16x96xf32> to vector<8x8xf32>
    %12 = vector.extract_strided_slice %7 {offsets = [0, 64], sizes = [8, 8], strides = [1, 1]} : vector<16x96xf32> to vector<8x8xf32>
    %13 = tpu.transpose %11, [1, 0] : vector<8x8xf32> -> vector<8x8xf32>
    %cst_10 = arith.constant dense<0.000000e+00> : vector<8x8xf32>
    %14 = tpu.matmul %10, %13, %cst_10 {dimension_numbers = #tpu.dot_dimension_numbers<[1], [0], [0], [1], [0, 0, 1, 1], [], []>} : vector<8x8xf32>, vector<8x8xf32>, vector<8x8xf32> -> vector<8x8xf32>
    %cst_11 = arith.constant 0.353553385 : f32
    %15 = vector.broadcast %cst_11 : f32 to vector<8x8xf32>
    %16 = arith.mulf %14, %15 : vector<8x8xf32>
    %cst_12 = arith.constant 0.000000e+00 : f32
    %17 = vector.broadcast %cst_12 : f32 to vector<8x8xf32>
    %18 = arith.cmpf oeq, %9, %17 : vector<8x8xf32>
    %cst_13 = arith.constant -1.000000e+10 : f32
    %19 = vector.broadcast %cst_13 : f32 to vector<8x8xf32>
    %20 = arith.select %18, %19, %16 : vector<8x8xi1>, vector<8x8xf32>
    %cst_14 = arith.constant dense<0xFF800000> : vector<8xf32>
    %21 = vector.multi_reduction <maximumf>, %20, %cst_14 [1] : vector<8x8xf32> to vector<8xf32>
    %22 = vector.shape_cast %21 : vector<8xf32> to vector<8x1xf32>
    %23 = vector.broadcast %22 : vector<8x1xf32> to vector<8x8xf32>
    %24 = arith.subf %20, %23 : vector<8x8xf32>
    %25 = math.exp %24 : vector<8x8xf32>
    %cst_15 = arith.constant dense<0.000000e+00> : vector<8xf32>
    %26 = vector.multi_reduction <add>, %25, %cst_15 [1] : vector<8x8xf32> to vector<8xf32>
    %27 = vector.shape_cast %26 : vector<8xf32> to vector<8x1xf32>
    %28 = tpu.reciprocal %27 {approx = true} : vector<8x1xf32> -> vector<8x1xf32>
    %29 = vector.broadcast %28 : vector<8x1xf32> to vector<8x8xf32>
    %30 = arith.mulf %25, %29 : vector<8x8xf32>
    %cst_16 = arith.constant dense<0.000000e+00> : vector<8x8xf32>
    %31 = tpu.matmul %30, %12, %cst_16 {dimension_numbers = #tpu.dot_dimension_numbers<[1], [0], [0], [1], [0, 0, 1, 1], [], []>} : vector<8x8xf32>, vector<8x8xf32>, vector<8x8xf32> -> vector<8x8xf32>
    %c0_17 = arith.constant 0 : index
    %c0_18 = arith.constant 0 : index
    %32 = vector.load %arg27[%c0_17, %c0_18] : memref<16x32xf32, #tpu.memory_space<vmem>>, vector<8x8xf32>
    tpu.vector_store %arg27[%c0_17, %c0_18], %31 {strides = array<i32>} : memref<16x32xf32, #tpu.memory_space<vmem>>, vector<8x8xf32>,
    %33 = vector.extract_strided_slice %7 {offsets = [0, 8], sizes = [8, 8], strides = [1, 1]} : vector<16x96xf32> to vector<8x8xf32>
    %34 = vector.extract_strided_slice %7 {offsets = [0, 40], sizes = [8, 8], strides = [1, 1]} : vector<16x96xf32> to vector<8x8xf32>
    %35 = vector.extract_strided_slice %7 {offsets = [0, 72], sizes = [8, 8], strides = [1, 1]} : vector<16x96xf32> to vector<8x8xf32>
    %36 = tpu.transpose %34, [1, 0] : vector<8x8xf32> -> vector<8x8xf32>
    %cst_19 = arith.constant dense<0.000000e+00> : vector<8x8xf32>
    %37 = tpu.matmul %33, %36, %cst_19 {dimension_numbers = #tpu.dot_dimension_numbers<[1], [0], [0], [1], [0, 0, 1, 1], [], []>} : vector<8x8xf32>, vector<8x8xf32>, vector<8x8xf32> -> vector<8x8xf32>
    %cst_20 = arith.constant 0.353553385 : f32
    %38 = vector.broadcast %cst_20 : f32 to vector<8x8xf32>
    %39 = arith.mulf %37, %38 : vector<8x8xf32>
    %cst_21 = arith.constant 0.000000e+00 : f32
    %40 = vector.broadcast %cst_21 : f32 to vector<8x8xf32>
    %41 = arith.cmpf oeq, %9, %40 : vector<8x8xf32>
    %cst_22 = arith.constant -1.000000e+10 : f32
    %42 = vector.broadcast %cst_22 : f32 to vector<8x8xf32>
    %43 = arith.select %41, %42, %39 : vector<8x8xi1>, vector<8x8xf32>
    %cst_23 = arith.constant dense<0xFF800000> : vector<8xf32>
    %44 = vector.multi_reduction <maximumf>, %43, %cst_23 [1] : vector<8x8xf32> to vector<8xf32>
    %45 = vector.shape_cast %44 : vector<8xf32> to vector<8x1xf32>
    %46 = vector.broadcast %45 : vector<8x1xf32> to vector<8x8xf32>
    %47 = arith.subf %43, %46 : vector<8x8xf32>
    %48 = math.exp %47 : vector<8x8xf32>
    %cst_24 = arith.constant dense<0.000000e+00> : vector<8xf32>
    %49 = vector.multi_reduction <add>, %48, %cst_24 [1] : vector<8x8xf32> to vector<8xf32>
    %50 = vector.shape_cast %49 : vector<8xf32> to vector<8x1xf32>
    %51 = tpu.reciprocal %50 {approx = true} : vector<8x1xf32> -> vector<8x1xf32>
    %52 = vector.broadcast %51 : vector<8x1xf32> to vector<8x8xf32>
    %53 = arith.mulf %48, %52 : vector<8x8xf32>
    %cst_25 = arith.constant dense<0.000000e+00> : vector<8x8xf32>
    %54 = tpu.matmul %53, %35, %cst_25 {dimension_numbers = #tpu.dot_dimension_numbers<[1], [0], [0], [1], [0, 0, 1, 1], [], []>} : vector<8x8xf32>, vector<8x8xf32>, vector<8x8xf32> -> vector<8x8xf32>
    %c0_26 = arith.constant 0 : index
    %c8 = arith.constant 8 : index
    %55 = vector.load %arg27[%c0_26, %c8] : memref<16x32xf32, #tpu.memory_space<vmem>>, vector<8x8xf32>
    tpu.vector_store %arg27[%c0_26, %c8], %54 {strides = array<i32>} : memref<16x32xf32, #tpu.memory_space<vmem>>, vector<8x8xf32>,
    %56 = vector.extract_strided_slice %7 {offsets = [0, 16], sizes = [8, 8], strides = [1, 1]} : vector<16x96xf32> to vector<8x8xf32>
    %57 = vector.extract_strided_slice %7 {offsets = [0, 48], sizes = [8, 8], strides = [1, 1]} : vector<16x96xf32> to vector<8x8xf32>
    %58 = vector.extract_strided_slice %7 {offsets = [0, 80], sizes = [8, 8], strides = [1, 1]} : vector<16x96xf32> to vector<8x8xf32>
    %59 = tpu.transpose %57, [1, 0] : vector<8x8xf32> -> vector<8x8xf32>
    %cst_27 = arith.constant dense<0.000000e+00> : vector<8x8xf32>
    %60 = tpu.matmul %56, %59, %cst_27 {dimension_numbers = #tpu.dot_dimension_numbers<[1], [0], [0], [1], [0, 0, 1, 1], [], []>} : vector<8x8xf32>, vector<8x8xf32>, vector<8x8xf32> -> vector<8x8xf32>
    %cst_28 = arith.constant 0.353553385 : f32
    %61 = vector.broadcast %cst_28 : f32 to vector<8x8xf32>
    %62 = arith.mulf %60, %61 : vector<8x8xf32>
    %cst_29 = arith.constant 0.000000e+00 : f32
    %63 = vector.broadcast %cst_29 : f32 to vector<8x8xf32>
    %64 = arith.cmpf oeq, %9, %63 : vector<8x8xf32>
    %cst_30 = arith.constant -1.000000e+10 : f32
    %65 = vector.broadcast %cst_30 : f32 to vector<8x8xf32>
    %66 = arith.select %64, %65, %62 : vector<8x8xi1>, vector<8x8xf32>
    %cst_31 = arith.constant dense<0xFF800000> : vector<8xf32>
    %67 = vector.multi_reduction <maximumf>, %66, %cst_31 [1] : vector<8x8xf32> to vector<8xf32>
    %68 = vector.shape_cast %67 : vector<8xf32> to vector<8x1xf32>
    %69 = vector.broadcast %68 : vector<8x1xf32> to vector<8x8xf32>
    %70 = arith.subf %66, %69 : vector<8x8xf32>
    %71 = math.exp %70 : vector<8x8xf32>
    %cst_32 = arith.constant dense<0.000000e+00> : vector<8xf32>
    %72 = vector.multi_reduction <add>, %71, %cst_32 [1] : vector<8x8xf32> to vector<8xf32>
    %73 = vector.shape_cast %72 : vector<8xf32> to vector<8x1xf32>
    %74 = tpu.reciprocal %73 {approx = true} : vector<8x1xf32> -> vector<8x1xf32>
    %75 = vector.broadcast %74 : vector<8x1xf32> to vector<8x8xf32>
    %76 = arith.mulf %71, %75 : vector<8x8xf32>
    %cst_33 = arith.constant dense<0.000000e+00> : vector<8x8xf32>
    %77 = tpu.matmul %76, %58, %cst_33 {dimension_numbers = #tpu.dot_dimension_numbers<[1], [0], [0], [1], [0, 0, 1, 1], [], []>} : vector<8x8xf32>, vector<8x8xf32>, vector<8x8xf32> -> vector<8x8xf32>
    %c0_34 = arith.constant 0 : index
    %c16 = arith.constant 16 : index
    %78 = vector.load %arg27[%c0_34, %c16] : memref<16x32xf32, #tpu.memory_space<vmem>>, vector<8x8xf32>
    tpu.vector_store %arg27[%c0_34, %c16], %77 {strides = array<i32>} : memref<16x32xf32, #tpu.memory_space<vmem>>, vector<8x8xf32>,
    %79 = vector.extract_strided_slice %7 {offsets = [0, 24], sizes = [8, 8], strides = [1, 1]} : vector<16x96xf32> to vector<8x8xf32>
    %80 = vector.extract_strided_slice %7 {offsets = [0, 56], sizes = [8, 8], strides = [1, 1]} : vector<16x96xf32> to vector<8x8xf32>
    %81 = vector.extract_strided_slice %7 {offsets = [0, 88], sizes = [8, 8], strides = [1, 1]} : vector<16x96xf32> to vector<8x8xf32>
    %82 = tpu.transpose %80, [1, 0] : vector<8x8xf32> -> vector<8x8xf32>
    %cst_35 = arith.constant dense<0.000000e+00> : vector<8x8xf32>
    %83 = tpu.matmul %79, %82, %cst_35 {dimension_numbers = #tpu.dot_dimension_numbers<[1], [0], [0], [1], [0, 0, 1, 1], [], []>} : vector<8x8xf32>, vector<8x8xf32>, vector<8x8xf32> -> vector<8x8xf32>
    %cst_36 = arith.constant 0.353553385 : f32
    %84 = vector.broadcast %cst_36 : f32 to vector<8x8xf32>
    %85 = arith.mulf %83, %84 : vector<8x8xf32>
    %cst_37 = arith.constant 0.000000e+00 : f32
    %86 = vector.broadcast %cst_37 : f32 to vector<8x8xf32>
    %87 = arith.cmpf oeq, %9, %86 : vector<8x8xf32>
    %cst_38 = arith.constant -1.000000e+10 : f32
    %88 = vector.broadcast %cst_38 : f32 to vector<8x8xf32>
    %89 = arith.select %87, %88, %85 : vector<8x8xi1>, vector<8x8xf32>
    %cst_39 = arith.constant dense<0xFF800000> : vector<8xf32>
    %90 = vector.multi_reduction <maximumf>, %89, %cst_39 [1] : vector<8x8xf32> to vector<8xf32>
    %91 = vector.shape_cast %90 : vector<8xf32> to vector<8x1xf32>
    %92 = vector.broadcast %91 : vector<8x1xf32> to vector<8x8xf32>
    %93 = arith.subf %89, %92 : vector<8x8xf32>
    %94 = math.exp %93 : vector<8x8xf32>
    %cst_40 = arith.constant dense<0.000000e+00> : vector<8xf32>
    %95 = vector.multi_reduction <add>, %94, %cst_40 [1] : vector<8x8xf32> to vector<8xf32>
    %96 = vector.shape_cast %95 : vector<8xf32> to vector<8x1xf32>
    %97 = tpu.reciprocal %96 {approx = true} : vector<8x1xf32> -> vector<8x1xf32>
    %98 = vector.broadcast %97 : vector<8x1xf32> to vector<8x8xf32>
    %99 = arith.mulf %94, %98 : vector<8x8xf32>
    %cst_41 = arith.constant dense<0.000000e+00> : vector<8x8xf32>
    %100 = tpu.matmul %99, %81, %cst_41 {dimension_numbers = #tpu.dot_dimension_numbers<[1], [0], [0], [1], [0, 0, 1, 1], [], []>} : vector<8x8xf32>, vector<8x8xf32>, vector<8x8xf32> -> vector<8x8xf32>
    %c0_42 = arith.constant 0 : index
    %c24 = arith.constant 24 : index
    %101 = vector.load %arg27[%c0_42, %c24] : memref<16x32xf32, #tpu.memory_space<vmem>>, vector<8x8xf32>
    tpu.vector_store %arg27[%c0_42, %c24], %100 {strides = array<i32>} : memref<16x32xf32, #tpu.memory_space<vmem>>, vector<8x8xf32>,
    %c1 = arith.constant 1 : index
    %c0_43 = arith.constant 0 : index
    %c0_44 = arith.constant 0 : index
    %102 = vector.load %arg3[%c1, %c0_43, %c0_44] : memref<2x8x8xf32, #tpu.memory_space<vmem>>, vector<1x8x8xf32>
    %103 = vector.shape_cast %102 : vector<1x8x8xf32> to vector<8x8xf32>
    %104 = vector.extract_strided_slice %7 {offsets = [8, 0], sizes = [8, 8], strides = [1, 1]} : vector<16x96xf32> to vector<8x8xf32>
    %105 = vector.extract_strided_slice %7 {offsets = [8, 32], sizes = [8, 8], strides = [1, 1]} : vector<16x96xf32> to vector<8x8xf32>
    %106 = vector.extract_strided_slice %7 {offsets = [8, 64], sizes = [8, 8], strides = [1, 1]} : vector<16x96xf32> to vector<8x8xf32>
    %107 = tpu.transpose %105, [1, 0] : vector<8x8xf32> -> vector<8x8xf32>
    %cst_45 = arith.constant dense<0.000000e+00> : vector<8x8xf32>
    %108 = tpu.matmul %104, %107, %cst_45 {dimension_numbers = #tpu.dot_dimension_numbers<[1], [0], [0], [1], [0, 0, 1, 1], [], []>} : vector<8x8xf32>, vector<8x8xf32>, vector<8x8xf32> -> vector<8x8xf32>
    %cst_46 = arith.constant 0.353553385 : f32
    %109 = vector.broadcast %cst_46 : f32 to vector<8x8xf32>
    %110 = arith.mulf %108, %109 : vector<8x8xf32>
    %cst_47 = arith.constant 0.000000e+00 : f32
    %111 = vector.broadcast %cst_47 : f32 to vector<8x8xf32>
    %112 = arith.cmpf oeq, %103, %111 : vector<8x8xf32>
    %cst_48 = arith.constant -1.000000e+10 : f32
    %113 = vector.broadcast %cst_48 : f32 to vector<8x8xf32>
    %114 = arith.select %112, %113, %110 : vector<8x8xi1>, vector<8x8xf32>
    %cst_49 = arith.constant dense<0xFF800000> : vector<8xf32>
    %115 = vector.multi_reduction <maximumf>, %114, %cst_49 [1] : vector<8x8xf32> to vector<8xf32>
    %116 = vector.shape_cast %115 : vector<8xf32> to vector<8x1xf32>
    %117 = vector.broadcast %116 : vector<8x1xf32> to vector<8x8xf32>
    %118 = arith.subf %114, %117 : vector<8x8xf32>
    %119 = math.exp %118 : vector<8x8xf32>
    %cst_50 = arith.constant dense<0.000000e+00> : vector<8xf32>
    %120 = vector.multi_reduction <add>, %119, %cst_50 [1] : vector<8x8xf32> to vector<8xf32>
    %121 = vector.shape_cast %120 : vector<8xf32> to vector<8x1xf32>
    %122 = tpu.reciprocal %121 {approx = true} : vector<8x1xf32> -> vector<8x1xf32>
    %123 = vector.broadcast %122 : vector<8x1xf32> to vector<8x8xf32>
    %124 = arith.mulf %119, %123 : vector<8x8xf32>
    %cst_51 = arith.constant dense<0.000000e+00> : vector<8x8xf32>
    %125 = tpu.matmul %124, %106, %cst_51 {dimension_numbers = #tpu.dot_dimension_numbers<[1], [0], [0], [1], [0, 0, 1, 1], [], []>} : vector<8x8xf32>, vector<8x8xf32>, vector<8x8xf32> -> vector<8x8xf32>
    %c8_52 = arith.constant 8 : index
    %c0_53 = arith.constant 0 : index
    %126 = vector.load %arg27[%c8_52, %c0_53] : memref<16x32xf32, #tpu.memory_space<vmem>>, vector<8x8xf32>
    tpu.vector_store %arg27[%c8_52, %c0_53], %125 {strides = array<i32>} : memref<16x32xf32, #tpu.memory_space<vmem>>, vector<8x8xf32>,
    %127 = vector.extract_strided_slice %7 {offsets = [8, 8], sizes = [8, 8], strides = [1, 1]} : vector<16x96xf32> to vector<8x8xf32>
    %128 = vector.extract_strided_slice %7 {offsets = [8, 40], sizes = [8, 8], strides = [1, 1]} : vector<16x96xf32> to vector<8x8xf32>
    %129 = vector.extract_strided_slice %7 {offsets = [8, 72], sizes = [8, 8], strides = [1, 1]} : vector<16x96xf32> to vector<8x8xf32>
    %130 = tpu.transpose %128, [1, 0] : vector<8x8xf32> -> vector<8x8xf32>
    %cst_54 = arith.constant dense<0.000000e+00> : vector<8x8xf32>
    %131 = tpu.matmul %127, %130, %cst_54 {dimension_numbers = #tpu.dot_dimension_numbers<[1], [0], [0], [1], [0, 0, 1, 1], [], []>} : vector<8x8xf32>, vector<8x8xf32>, vector<8x8xf32> -> vector<8x8xf32>
    %cst_55 = arith.constant 0.353553385 : f32
    %132 = vector.broadcast %cst_55 : f32 to vector<8x8xf32>
    %133 = arith.mulf %131, %132 : vector<8x8xf32>
    %cst_56 = arith.constant 0.000000e+00 : f32
    %134 = vector.broadcast %cst_56 : f32 to vector<8x8xf32>
    %135 = arith.cmpf oeq, %103, %134 : vector<8x8xf32>
    %cst_57 = arith.constant -1.000000e+10 : f32
    %136 = vector.broadcast %cst_57 : f32 to vector<8x8xf32>
    %137 = arith.select %135, %136, %133 : vector<8x8xi1>, vector<8x8xf32>
    %cst_58 = arith.constant dense<0xFF800000> : vector<8xf32>
    %138 = vector.multi_reduction <maximumf>, %137, %cst_58 [1] : vector<8x8xf32> to vector<8xf32>
    %139 = vector.shape_cast %138 : vector<8xf32> to vector<8x1xf32>
    %140 = vector.broadcast %139 : vector<8x1xf32> to vector<8x8xf32>
    %141 = arith.subf %137, %140 : vector<8x8xf32>
    %142 = math.exp %141 : vector<8x8xf32>
    %cst_59 = arith.constant dense<0.000000e+00> : vector<8xf32>
    %143 = vector.multi_reduction <add>, %142, %cst_59 [1] : vector<8x8xf32> to vector<8xf32>
    %144 = vector.shape_cast %143 : vector<8xf32> to vector<8x1xf32>
    %145 = tpu.reciprocal %144 {approx = true} : vector<8x1xf32> -> vector<8x1xf32>
    %146 = vector.broadcast %145 : vector<8x1xf32> to vector<8x8xf32>
    %147 = arith.mulf %142, %146 : vector<8x8xf32>
    %cst_60 = arith.constant dense<0.000000e+00> : vector<8x8xf32>
    %148 = tpu.matmul %147, %129, %cst_60 {dimension_numbers = #tpu.dot_dimension_numbers<[1], [0], [0], [1], [0, 0, 1, 1], [], []>} : vector<8x8xf32>, vector<8x8xf32>, vector<8x8xf32> -> vector<8x8xf32>
    %c8_61 = arith.constant 8 : index
    %c8_62 = arith.constant 8 : index
    %149 = vector.load %arg27[%c8_61, %c8_62] : memref<16x32xf32, #tpu.memory_space<vmem>>, vector<8x8xf32>
    tpu.vector_store %arg27[%c8_61, %c8_62], %148 {strides = array<i32>} : memref<16x32xf32, #tpu.memory_space<vmem>>, vector<8x8xf32>,
    %150 = vector.extract_strided_slice %7 {offsets = [8, 16], sizes = [8, 8], strides = [1, 1]} : vector<16x96xf32> to vector<8x8xf32>
    %151 = vector.extract_strided_slice %7 {offsets = [8, 48], sizes = [8, 8], strides = [1, 1]} : vector<16x96xf32> to vector<8x8xf32>
    %152 = vector.extract_strided_slice %7 {offsets = [8, 80], sizes = [8, 8], strides = [1, 1]} : vector<16x96xf32> to vector<8x8xf32>
    %153 = tpu.transpose %151, [1, 0] : vector<8x8xf32> -> vector<8x8xf32>
    %cst_63 = arith.constant dense<0.000000e+00> : vector<8x8xf32>
    %154 = tpu.matmul %150, %153, %cst_63 {dimension_numbers = #tpu.dot_dimension_numbers<[1], [0], [0], [1], [0, 0, 1, 1], [], []>} : vector<8x8xf32>, vector<8x8xf32>, vector<8x8xf32> -> vector<8x8xf32>
    %cst_64 = arith.constant 0.353553385 : f32
    %155 = vector.broadcast %cst_64 : f32 to vector<8x8xf32>
    %156 = arith.mulf %154, %155 : vector<8x8xf32>
    %cst_65 = arith.constant 0.000000e+00 : f32
    %157 = vector.broadcast %cst_65 : f32 to vector<8x8xf32>
    %158 = arith.cmpf oeq, %103, %157 : vector<8x8xf32>
    %cst_66 = arith.constant -1.000000e+10 : f32
    %159 = vector.broadcast %cst_66 : f32 to vector<8x8xf32>
    %160 = arith.select %158, %159, %156 : vector<8x8xi1>, vector<8x8xf32>
    %cst_67 = arith.constant dense<0xFF800000> : vector<8xf32>
    %161 = vector.multi_reduction <maximumf>, %160, %cst_67 [1] : vector<8x8xf32> to vector<8xf32>
    %162 = vector.shape_cast %161 : vector<8xf32> to vector<8x1xf32>
    %163 = vector.broadcast %162 : vector<8x1xf32> to vector<8x8xf32>
    %164 = arith.subf %160, %163 : vector<8x8xf32>
    %165 = math.exp %164 : vector<8x8xf32>
    %cst_68 = arith.constant dense<0.000000e+00> : vector<8xf32>
    %166 = vector.multi_reduction <add>, %165, %cst_68 [1] : vector<8x8xf32> to vector<8xf32>
    %167 = vector.shape_cast %166 : vector<8xf32> to vector<8x1xf32>
    %168 = tpu.reciprocal %167 {approx = true} : vector<8x1xf32> -> vector<8x1xf32>
    %169 = vector.broadcast %168 : vector<8x1xf32> to vector<8x8xf32>
    %170 = arith.mulf %165, %169 : vector<8x8xf32>
    %cst_69 = arith.constant dense<0.000000e+00> : vector<8x8xf32>
    %171 = tpu.matmul %170, %152, %cst_69 {dimension_numbers = #tpu.dot_dimension_numbers<[1], [0], [0], [1], [0, 0, 1, 1], [], []>} : vector<8x8xf32>, vector<8x8xf32>, vector<8x8xf32> -> vector<8x8xf32>
    %c8_70 = arith.constant 8 : index
    %c16_71 = arith.constant 16 : index
    %172 = vector.load %arg27[%c8_70, %c16_71] : memref<16x32xf32, #tpu.memory_space<vmem>>, vector<8x8xf32>
    tpu.vector_store %arg27[%c8_70, %c16_71], %171 {strides = array<i32>} : memref<16x32xf32, #tpu.memory_space<vmem>>, vector<8x8xf32>,
    %173 = vector.extract_strided_slice %7 {offsets = [8, 24], sizes = [8, 8], strides = [1, 1]} : vector<16x96xf32> to vector<8x8xf32>
    %174 = vector.extract_strided_slice %7 {offsets = [8, 56], sizes = [8, 8], strides = [1, 1]} : vector<16x96xf32> to vector<8x8xf32>
    %175 = vector.extract_strided_slice %7 {offsets = [8, 88], sizes = [8, 8], strides = [1, 1]} : vector<16x96xf32> to vector<8x8xf32>
    %176 = tpu.transpose %174, [1, 0] : vector<8x8xf32> -> vector<8x8xf32>
    %cst_72 = arith.constant dense<0.000000e+00> : vector<8x8xf32>
    %177 = tpu.matmul %173, %176, %cst_72 {dimension_numbers = #tpu.dot_dimension_numbers<[1], [0], [0], [1], [0, 0, 1, 1], [], []>} : vector<8x8xf32>, vector<8x8xf32>, vector<8x8xf32> -> vector<8x8xf32>
    %cst_73 = arith.constant 0.353553385 : f32
    %178 = vector.broadcast %cst_73 : f32 to vector<8x8xf32>
    %179 = arith.mulf %177, %178 : vector<8x8xf32>
    %cst_74 = arith.constant 0.000000e+00 : f32
    %180 = vector.broadcast %cst_74 : f32 to vector<8x8xf32>
    %181 = arith.cmpf oeq, %103, %180 : vector<8x8xf32>
    %cst_75 = arith.constant -1.000000e+10 : f32
    %182 = vector.broadcast %cst_75 : f32 to vector<8x8xf32>
    %183 = arith.select %181, %182, %179 : vector<8x8xi1>, vector<8x8xf32>
    %cst_76 = arith.constant dense<0xFF800000> : vector<8xf32>
    %184 = vector.multi_reduction <maximumf>, %183, %cst_76 [1] : vector<8x8xf32> to vector<8xf32>
    %185 = vector.shape_cast %184 : vector<8xf32> to vector<8x1xf32>
    %186 = vector.broadcast %185 : vector<8x1xf32> to vector<8x8xf32>
    %187 = arith.subf %183, %186 : vector<8x8xf32>
    %188 = math.exp %187 : vector<8x8xf32>
    %cst_77 = arith.constant dense<0.000000e+00> : vector<8xf32>
    %189 = vector.multi_reduction <add>, %188, %cst_77 [1] : vector<8x8xf32> to vector<8xf32>
    %190 = vector.shape_cast %189 : vector<8xf32> to vector<8x1xf32>
    %191 = tpu.reciprocal %190 {approx = true} : vector<8x1xf32> -> vector<8x1xf32>
    %192 = vector.broadcast %191 : vector<8x1xf32> to vector<8x8xf32>
    %193 = arith.mulf %188, %192 : vector<8x8xf32>
    %cst_78 = arith.constant dense<0.000000e+00> : vector<8x8xf32>
    %194 = tpu.matmul %193, %175, %cst_78 {dimension_numbers = #tpu.dot_dimension_numbers<[1], [0], [0], [1], [0, 0, 1, 1], [], []>} : vector<8x8xf32>, vector<8x8xf32>, vector<8x8xf32> -> vector<8x8xf32>
    %c8_79 = arith.constant 8 : index
    %c24_80 = arith.constant 24 : index
    %195 = vector.load %arg27[%c8_79, %c24_80] : memref<16x32xf32, #tpu.memory_space<vmem>>, vector<8x8xf32>
    tpu.vector_store %arg27[%c8_79, %c24_80], %194 {strides = array<i32>} : memref<16x32xf32, #tpu.memory_space<vmem>>, vector<8x8xf32>,
    %c0_81 = arith.constant 0 : index
    %c0_82 = arith.constant 0 : index
    %196 = vector.load %arg27[%c0_81, %c0_82] : memref<16x32xf32, #tpu.memory_space<vmem>>, vector<16x32xf32>
    %197 = arith.truncf %196 : vector<16x32xf32> to vector<16x32xbf16>
    %c0_83 = arith.constant 0 : index
    %c0_84 = arith.constant 0 : index
    %198 = vector.load %arg7[%c0_83, %c0_84] : memref<32x32xbf16, #tpu.memory_space<vmem>>, vector<32x32xbf16>
    %cst_85 = arith.constant dense<0.000000e+00> : vector<16x32xf32>
    %199 = tpu.matmul %197, %198, %cst_85 {dimension_numbers = #tpu.dot_dimension_numbers<[1], [0], [0], [1], [0, 0, 1, 1], [], []>} : vector<16x32xbf16>, vector<32x32xbf16>, vector<16x32xf32> -> vector<16x32xf32>
    %c0_86 = arith.constant 0 : index
    %c0_87 = arith.constant 0 : index
    %200 = vector.load %arg8[%c0_86, %c0_87] : memref<1x32xf32, #tpu.memory_space<vmem>>, vector<1x32xf32>
    %201 = vector.broadcast %200 : vector<1x32xf32> to vector<16x32xf32>
    %202 = arith.addf %199, %201 : vector<16x32xf32>
    %203 = arith.addf %0, %202 : vector<16x32xf32>
    %c0_88 = arith.constant 0 : index
    %c0_89 = arith.constant 0 : index
    %204 = vector.load %arg9[%c0_88, %c0_89] : memref<1x32xf32, #tpu.memory_space<vmem>>, vector<1x32xf32>
    %c0_90 = arith.constant 0 : index
    %c0_91 = arith.constant 0 : index
    %205 = vector.load %arg10[%c0_90, %c0_91] : memref<1x32xf32, #tpu.memory_space<vmem>>, vector<1x32xf32>
    %cst_92 = arith.constant dense<0.000000e+00> : vector<16xf32>
    %206 = vector.multi_reduction <add>, %203, %cst_92 [1] : vector<16x32xf32> to vector<16xf32>
    %207 = vector.shape_cast %206 : vector<16xf32> to vector<16x1xf32>
    %cst_93 = arith.constant 3.200000e+01 : f32
    %208 = vector.broadcast %cst_93 : f32 to vector<16x1xf32>
    %209 = arith.divf %207, %208 : vector<16x1xf32>
    %210 = vector.broadcast %209 : vector<16x1xf32> to vector<16x32xf32>
    %211 = arith.subf %203, %210 : vector<16x32xf32>
    %212 = arith.mulf %211, %211 : vector<16x32xf32>
    %cst_94 = arith.constant dense<0.000000e+00> : vector<16xf32>
    %213 = vector.multi_reduction <add>, %212, %cst_94 [1] : vector<16x32xf32> to vector<16xf32>
    %214 = vector.shape_cast %213 : vector<16xf32> to vector<16x1xf32>
    %cst_95 = arith.constant 3.200000e+01 : f32
    %215 = vector.broadcast %cst_95 : f32 to vector<16x1xf32>
    %216 = arith.divf %214, %215 : vector<16x1xf32>
    %217 = vector.broadcast %209 : vector<16x1xf32> to vector<16x32xf32>
    %218 = arith.subf %203, %217 : vector<16x32xf32>
    %cst_96 = arith.constant 9.99999974E-6 : f32
    %219 = vector.broadcast %cst_96 : f32 to vector<16x1xf32>
    %220 = arith.addf %216, %219 : vector<16x1xf32>
    %221 = math.rsqrt %220 : vector<16x1xf32>
    %222 = vector.broadcast %221 : vector<16x1xf32> to vector<16x32xf32>
    %223 = arith.mulf %218, %222 : vector<16x32xf32>
    %224 = vector.broadcast %204 : vector<1x32xf32> to vector<16x32xf32>
    %225 = arith.mulf %223, %224 : vector<16x32xf32>
    %226 = vector.broadcast %205 : vector<1x32xf32> to vector<16x32xf32>
    %227 = arith.addf %225, %226 : vector<16x32xf32>
    %228 = arith.truncf %227 : vector<16x32xf32> to vector<16x32xbf16>
    %c0_97 = arith.constant 0 : index
    %c0_98 = arith.constant 0 : index
    %229 = vector.load %arg11[%c0_97, %c0_98] : memref<32x32xbf16, #tpu.memory_space<vmem>>, vector<32x32xbf16>
    %cst_99 = arith.constant dense<0.000000e+00> : vector<16x32xf32>
    %230 = tpu.matmul %228, %229, %cst_99 {dimension_numbers = #tpu.dot_dimension_numbers<[1], [0], [0], [1], [0, 0, 1, 1], [], []>} : vector<16x32xbf16>, vector<32x32xbf16>, vector<16x32xf32> -> vector<16x32xf32>
    %c0_100 = arith.constant 0 : index
    %c0_101 = arith.constant 0 : index
    %231 = vector.load %arg12[%c0_100, %c0_101] : memref<1x32xf32, #tpu.memory_space<vmem>>, vector<1x32xf32>
    %232 = vector.broadcast %231 : vector<1x32xf32> to vector<16x32xf32>
    %233 = arith.addf %230, %232 : vector<16x32xf32>
    %234 = arith.truncf %1 : vector<16x32xf32> to vector<16x32xbf16>
    %c0_102 = arith.constant 0 : index
    %c0_103 = arith.constant 0 : index
    %235 = vector.load %arg13[%c0_102, %c0_103] : memref<32x64xbf16, #tpu.memory_space<vmem>>, vector<32x64xbf16>
    %cst_104 = arith.constant dense<0.000000e+00> : vector<16x64xf32>
    %236 = tpu.matmul %234, %235, %cst_104 {dimension_numbers = #tpu.dot_dimension_numbers<[1], [0], [0], [1], [0, 0, 1, 1], [], []>} : vector<16x32xbf16>, vector<32x64xbf16>, vector<16x64xf32> -> vector<16x64xf32>
    %c0_105 = arith.constant 0 : index
    %c0_106 = arith.constant 0 : index
    %237 = vector.load %arg14[%c0_105, %c0_106] : memref<1x64xf32, #tpu.memory_space<vmem>>, vector<1x64xf32>
    %238 = vector.broadcast %237 : vector<1x64xf32> to vector<16x64xf32>
    %239 = arith.addf %236, %238 : vector<16x64xf32>
    %c0_107 = arith.constant 0 : index
    %c0_108 = arith.constant 0 : index
    %c0_109 = arith.constant 0 : index
    %240 = vector.load %arg4[%c0_107, %c0_108, %c0_109] : memref<2x8x8xf32, #tpu.memory_space<vmem>>, vector<1x8x8xf32>
    %241 = vector.shape_cast %240 : vector<1x8x8xf32> to vector<8x8xf32>
    %242 = vector.extract_strided_slice %233 {offsets = [0, 0], sizes = [8, 8], strides = [1, 1]} : vector<16x32xf32> to vector<8x8xf32>
    %243 = vector.extract_strided_slice %239 {offsets = [0, 0], sizes = [8, 8], strides = [1, 1]} : vector<16x64xf32> to vector<8x8xf32>
    %244 = vector.extract_strided_slice %239 {offsets = [0, 32], sizes = [8, 8], strides = [1, 1]} : vector<16x64xf32> to vector<8x8xf32>
    %245 = tpu.transpose %243, [1, 0] : vector<8x8xf32> -> vector<8x8xf32>
    %cst_110 = arith.constant dense<0.000000e+00> : vector<8x8xf32>
    %246 = tpu.matmul %242, %245, %cst_110 {dimension_numbers = #tpu.dot_dimension_numbers<[1], [0], [0], [1], [0, 0, 1, 1], [], []>} : vector<8x8xf32>, vector<8x8xf32>, vector<8x8xf32> -> vector<8x8xf32>
    %cst_111 = arith.constant 0.353553385 : f32
    %247 = vector.broadcast %cst_111 : f32 to vector<8x8xf32>
    %248 = arith.mulf %246, %247 : vector<8x8xf32>
    %cst_112 = arith.constant 0.000000e+00 : f32
    %249 = vector.broadcast %cst_112 : f32 to vector<8x8xf32>
    %250 = arith.cmpf oeq, %241, %249 : vector<8x8xf32>
    %cst_113 = arith.constant -1.000000e+10 : f32
    %251 = vector.broadcast %cst_113 : f32 to vector<8x8xf32>
    %252 = arith.select %250, %251, %248 : vector<8x8xi1>, vector<8x8xf32>
    %cst_114 = arith.constant dense<0xFF800000> : vector<8xf32>
    %253 = vector.multi_reduction <maximumf>, %252, %cst_114 [1] : vector<8x8xf32> to vector<8xf32>
    %254 = vector.shape_cast %253 : vector<8xf32> to vector<8x1xf32>
    %255 = vector.broadcast %254 : vector<8x1xf32> to vector<8x8xf32>
    %256 = arith.subf %252, %255 : vector<8x8xf32>
    %257 = math.exp %256 : vector<8x8xf32>
    %cst_115 = arith.constant dense<0.000000e+00> : vector<8xf32>
    %258 = vector.multi_reduction <add>, %257, %cst_115 [1] : vector<8x8xf32> to vector<8xf32>
    %259 = vector.shape_cast %258 : vector<8xf32> to vector<8x1xf32>
    %260 = tpu.reciprocal %259 {approx = true} : vector<8x1xf32> -> vector<8x1xf32>
    %261 = vector.broadcast %260 : vector<8x1xf32> to vector<8x8xf32>
    %262 = arith.mulf %257, %261 : vector<8x8xf32>
    %c0_116 = arith.constant 0 : index
    %c0_117 = arith.constant 0 : index
    %c0_118 = arith.constant 0 : index
    %c0_119 = arith.constant 0 : index
    %263 = vector.load %arg26[%c0_116, %c0_117, %c0_118, %c0_119] : memref<2x4x8x8xf32, #tpu.memory_space<vmem>>, vector<1x1x8x8xf32>
    %264 = vector.shape_cast %263 : vector<1x1x8x8xf32> to vector<8x8xf32>
    %265 = vector.shape_cast %262 : vector<8x8xf32> to vector<1x1x8x8xf32>
    tpu.vector_store %arg26[%c0_116, %c0_117, %c0_118, %c0_119], %265 {strides = array<i32>} : memref<2x4x8x8xf32, #tpu.memory_space<vmem>>, vector<1x1x8x8xf32>,
    %cst_120 = arith.constant dense<0.000000e+00> : vector<8x8xf32>
    %266 = tpu.matmul %262, %244, %cst_120 {dimension_numbers = #tpu.dot_dimension_numbers<[1], [0], [0], [1], [0, 0, 1, 1], [], []>} : vector<8x8xf32>, vector<8x8xf32>, vector<8x8xf32> -> vector<8x8xf32>
    %c0_121 = arith.constant 0 : index
    %c0_122 = arith.constant 0 : index
    %267 = vector.load %arg27[%c0_121, %c0_122] : memref<16x32xf32, #tpu.memory_space<vmem>>, vector<8x8xf32>
    tpu.vector_store %arg27[%c0_121, %c0_122], %266 {strides = array<i32>} : memref<16x32xf32, #tpu.memory_space<vmem>>, vector<8x8xf32>,
    %268 = vector.extract_strided_slice %233 {offsets = [0, 8], sizes = [8, 8], strides = [1, 1]} : vector<16x32xf32> to vector<8x8xf32>
    %269 = vector.extract_strided_slice %239 {offsets = [0, 8], sizes = [8, 8], strides = [1, 1]} : vector<16x64xf32> to vector<8x8xf32>
    %270 = vector.extract_strided_slice %239 {offsets = [0, 40], sizes = [8, 8], strides = [1, 1]} : vector<16x64xf32> to vector<8x8xf32>
    %271 = tpu.transpose %269, [1, 0] : vector<8x8xf32> -> vector<8x8xf32>
    %cst_123 = arith.constant dense<0.000000e+00> : vector<8x8xf32>
    %272 = tpu.matmul %268, %271, %cst_123 {dimension_numbers = #tpu.dot_dimension_numbers<[1], [0], [0], [1], [0, 0, 1, 1], [], []>} : vector<8x8xf32>, vector<8x8xf32>, vector<8x8xf32> -> vector<8x8xf32>
    %cst_124 = arith.constant 0.353553385 : f32
    %273 = vector.broadcast %cst_124 : f32 to vector<8x8xf32>
    %274 = arith.mulf %272, %273 : vector<8x8xf32>
    %cst_125 = arith.constant 0.000000e+00 : f32
    %275 = vector.broadcast %cst_125 : f32 to vector<8x8xf32>
    %276 = arith.cmpf oeq, %241, %275 : vector<8x8xf32>
    %cst_126 = arith.constant -1.000000e+10 : f32
    %277 = vector.broadcast %cst_126 : f32 to vector<8x8xf32>
    %278 = arith.select %276, %277, %274 : vector<8x8xi1>, vector<8x8xf32>
    %cst_127 = arith.constant dense<0xFF800000> : vector<8xf32>
    %279 = vector.multi_reduction <maximumf>, %278, %cst_127 [1] : vector<8x8xf32> to vector<8xf32>
    %280 = vector.shape_cast %279 : vector<8xf32> to vector<8x1xf32>
    %281 = vector.broadcast %280 : vector<8x1xf32> to vector<8x8xf32>
    %282 = arith.subf %278, %281 : vector<8x8xf32>
    %283 = math.exp %282 : vector<8x8xf32>
    %cst_128 = arith.constant dense<0.000000e+00> : vector<8xf32>
    %284 = vector.multi_reduction <add>, %283, %cst_128 [1] : vector<8x8xf32> to vector<8xf32>
    %285 = vector.shape_cast %284 : vector<8xf32> to vector<8x1xf32>
    %286 = tpu.reciprocal %285 {approx = true} : vector<8x1xf32> -> vector<8x1xf32>
    %287 = vector.broadcast %286 : vector<8x1xf32> to vector<8x8xf32>
    %288 = arith.mulf %283, %287 : vector<8x8xf32>
    %c0_129 = arith.constant 0 : index
    %c1_130 = arith.constant 1 : index
    %c0_131 = arith.constant 0 : index
    %c0_132 = arith.constant 0 : index
    %289 = vector.load %arg26[%c0_129, %c1_130, %c0_131, %c0_132] : memref<2x4x8x8xf32, #tpu.memory_space<vmem>>, vector<1x1x8x8xf32>
    %290 = vector.shape_cast %289 : vector<1x1x8x8xf32> to vector<8x8xf32>
    %291 = vector.shape_cast %288 : vector<8x8xf32> to vector<1x1x8x8xf32>
    tpu.vector_store %arg26[%c0_129, %c1_130, %c0_131, %c0_132], %291 {strides = array<i32>} : memref<2x4x8x8xf32, #tpu.memory_space<vmem>>, vector<1x1x8x8xf32>,
    %cst_133 = arith.constant dense<0.000000e+00> : vector<8x8xf32>
    %292 = tpu.matmul %288, %270, %cst_133 {dimension_numbers = #tpu.dot_dimension_numbers<[1], [0], [0], [1], [0, 0, 1, 1], [], []>} : vector<8x8xf32>, vector<8x8xf32>, vector<8x8xf32> -> vector<8x8xf32>
    %c0_134 = arith.constant 0 : index
    %c8_135 = arith.constant 8 : index
    %293 = vector.load %arg27[%c0_134, %c8_135] : memref<16x32xf32, #tpu.memory_space<vmem>>, vector<8x8xf32>
    tpu.vector_store %arg27[%c0_134, %c8_135], %292 {strides = array<i32>} : memref<16x32xf32, #tpu.memory_space<vmem>>, vector<8x8xf32>,
    %294 = vector.extract_strided_slice %233 {offsets = [0, 16], sizes = [8, 8], strides = [1, 1]} : vector<16x32xf32> to vector<8x8xf32>
    %295 = vector.extract_strided_slice %239 {offsets = [0, 16], sizes = [8, 8], strides = [1, 1]} : vector<16x64xf32> to vector<8x8xf32>
    %296 = vector.extract_strided_slice %239 {offsets = [0, 48], sizes = [8, 8], strides = [1, 1]} : vector<16x64xf32> to vector<8x8xf32>
    %297 = tpu.transpose %295, [1, 0] : vector<8x8xf32> -> vector<8x8xf32>
    %cst_136 = arith.constant dense<0.000000e+00> : vector<8x8xf32>
    %298 = tpu.matmul %294, %297, %cst_136 {dimension_numbers = #tpu.dot_dimension_numbers<[1], [0], [0], [1], [0, 0, 1, 1], [], []>} : vector<8x8xf32>, vector<8x8xf32>, vector<8x8xf32> -> vector<8x8xf32>
    %cst_137 = arith.constant 0.353553385 : f32
    %299 = vector.broadcast %cst_137 : f32 to vector<8x8xf32>
    %300 = arith.mulf %298, %299 : vector<8x8xf32>
    %cst_138 = arith.constant 0.000000e+00 : f32
    %301 = vector.broadcast %cst_138 : f32 to vector<8x8xf32>
    %302 = arith.cmpf oeq, %241, %301 : vector<8x8xf32>
    %cst_139 = arith.constant -1.000000e+10 : f32
    %303 = vector.broadcast %cst_139 : f32 to vector<8x8xf32>
    %304 = arith.select %302, %303, %300 : vector<8x8xi1>, vector<8x8xf32>
    %cst_140 = arith.constant dense<0xFF800000> : vector<8xf32>
    %305 = vector.multi_reduction <maximumf>, %304, %cst_140 [1] : vector<8x8xf32> to vector<8xf32>
    %306 = vector.shape_cast %305 : vector<8xf32> to vector<8x1xf32>
    %307 = vector.broadcast %306 : vector<8x1xf32> to vector<8x8xf32>
    %308 = arith.subf %304, %307 : vector<8x8xf32>
    %309 = math.exp %308 : vector<8x8xf32>
    %cst_141 = arith.constant dense<0.000000e+00> : vector<8xf32>
    %310 = vector.multi_reduction <add>, %309, %cst_141 [1] : vector<8x8xf32> to vector<8xf32>
    %311 = vector.shape_cast %310 : vector<8xf32> to vector<8x1xf32>
    %312 = tpu.reciprocal %311 {approx = true} : vector<8x1xf32> -> vector<8x1xf32>
    %313 = vector.broadcast %312 : vector<8x1xf32> to vector<8x8xf32>
    %314 = arith.mulf %309, %313 : vector<8x8xf32>
    %c0_142 = arith.constant 0 : index
    %c2 = arith.constant 2 : index
    %c0_143 = arith.constant 0 : index
    %c0_144 = arith.constant 0 : index
    %315 = vector.load %arg26[%c0_142, %c2, %c0_143, %c0_144] : memref<2x4x8x8xf32, #tpu.memory_space<vmem>>, vector<1x1x8x8xf32>
    %316 = vector.shape_cast %315 : vector<1x1x8x8xf32> to vector<8x8xf32>
    %317 = vector.shape_cast %314 : vector<8x8xf32> to vector<1x1x8x8xf32>
    tpu.vector_store %arg26[%c0_142, %c2, %c0_143, %c0_144], %317 {strides = array<i32>} : memref<2x4x8x8xf32, #tpu.memory_space<vmem>>, vector<1x1x8x8xf32>,
    %cst_145 = arith.constant dense<0.000000e+00> : vector<8x8xf32>
    %318 = tpu.matmul %314, %296, %cst_145 {dimension_numbers = #tpu.dot_dimension_numbers<[1], [0], [0], [1], [0, 0, 1, 1], [], []>} : vector<8x8xf32>, vector<8x8xf32>, vector<8x8xf32> -> vector<8x8xf32>
    %c0_146 = arith.constant 0 : index
    %c16_147 = arith.constant 16 : index
    %319 = vector.load %arg27[%c0_146, %c16_147] : memref<16x32xf32, #tpu.memory_space<vmem>>, vector<8x8xf32>
    tpu.vector_store %arg27[%c0_146, %c16_147], %318 {strides = array<i32>} : memref<16x32xf32, #tpu.memory_space<vmem>>, vector<8x8xf32>,
    %320 = vector.extract_strided_slice %233 {offsets = [0, 24], sizes = [8, 8], strides = [1, 1]} : vector<16x32xf32> to vector<8x8xf32>
    %321 = vector.extract_strided_slice %239 {offsets = [0, 24], sizes = [8, 8], strides = [1, 1]} : vector<16x64xf32> to vector<8x8xf32>
    %322 = vector.extract_strided_slice %239 {offsets = [0, 56], sizes = [8, 8], strides = [1, 1]} : vector<16x64xf32> to vector<8x8xf32>
    %323 = tpu.transpose %321, [1, 0] : vector<8x8xf32> -> vector<8x8xf32>
    %cst_148 = arith.constant dense<0.000000e+00> : vector<8x8xf32>
    %324 = tpu.matmul %320, %323, %cst_148 {dimension_numbers = #tpu.dot_dimension_numbers<[1], [0], [0], [1], [0, 0, 1, 1], [], []>} : vector<8x8xf32>, vector<8x8xf32>, vector<8x8xf32> -> vector<8x8xf32>
    %cst_149 = arith.constant 0.353553385 : f32
    %325 = vector.broadcast %cst_149 : f32 to vector<8x8xf32>
    %326 = arith.mulf %324, %325 : vector<8x8xf32>
    %cst_150 = arith.constant 0.000000e+00 : f32
    %327 = vector.broadcast %cst_150 : f32 to vector<8x8xf32>
    %328 = arith.cmpf oeq, %241, %327 : vector<8x8xf32>
    %cst_151 = arith.constant -1.000000e+10 : f32
    %329 = vector.broadcast %cst_151 : f32 to vector<8x8xf32>
    %330 = arith.select %328, %329, %326 : vector<8x8xi1>, vector<8x8xf32>
    %cst_152 = arith.constant dense<0xFF800000> : vector<8xf32>
    %331 = vector.multi_reduction <maximumf>, %330, %cst_152 [1] : vector<8x8xf32> to vector<8xf32>
    %332 = vector.shape_cast %331 : vector<8xf32> to vector<8x1xf32>
    %333 = vector.broadcast %332 : vector<8x1xf32> to vector<8x8xf32>
    %334 = arith.subf %330, %333 : vector<8x8xf32>
    %335 = math.exp %334 : vector<8x8xf32>
    %cst_153 = arith.constant dense<0.000000e+00> : vector<8xf32>
    %336 = vector.multi_reduction <add>, %335, %cst_153 [1] : vector<8x8xf32> to vector<8xf32>
    %337 = vector.shape_cast %336 : vector<8xf32> to vector<8x1xf32>
    %338 = tpu.reciprocal %337 {approx = true} : vector<8x1xf32> -> vector<8x1xf32>
    %339 = vector.broadcast %338 : vector<8x1xf32> to vector<8x8xf32>
    %340 = arith.mulf %335, %339 : vector<8x8xf32>
    %c0_154 = arith.constant 0 : index
    %c3 = arith.constant 3 : index
    %c0_155 = arith.constant 0 : index
    %c0_156 = arith.constant 0 : index
    %341 = vector.load %arg26[%c0_154, %c3, %c0_155, %c0_156] : memref<2x4x8x8xf32, #tpu.memory_space<vmem>>, vector<1x1x8x8xf32>
    %342 = vector.shape_cast %341 : vector<1x1x8x8xf32> to vector<8x8xf32>
    %343 = vector.shape_cast %340 : vector<8x8xf32> to vector<1x1x8x8xf32>
    tpu.vector_store %arg26[%c0_154, %c3, %c0_155, %c0_156], %343 {strides = array<i32>} : memref<2x4x8x8xf32, #tpu.memory_space<vmem>>, vector<1x1x8x8xf32>,
    %cst_157 = arith.constant dense<0.000000e+00> : vector<8x8xf32>
    %344 = tpu.matmul %340, %322, %cst_157 {dimension_numbers = #tpu.dot_dimension_numbers<[1], [0], [0], [1], [0, 0, 1, 1], [], []>} : vector<8x8xf32>, vector<8x8xf32>, vector<8x8xf32> -> vector<8x8xf32>
    %c0_158 = arith.constant 0 : index
    %c24_159 = arith.constant 24 : index
    %345 = vector.load %arg27[%c0_158, %c24_159] : memref<16x32xf32, #tpu.memory_space<vmem>>, vector<8x8xf32>
    tpu.vector_store %arg27[%c0_158, %c24_159], %344 {strides = array<i32>} : memref<16x32xf32, #tpu.memory_space<vmem>>, vector<8x8xf32>,
    %c1_160 = arith.constant 1 : index
    %c0_161 = arith.constant 0 : index
    %c0_162 = arith.constant 0 : index
    %346 = vector.load %arg4[%c1_160, %c0_161, %c0_162] : memref<2x8x8xf32, #tpu.memory_space<vmem>>, vector<1x8x8xf32>
    %347 = vector.shape_cast %346 : vector<1x8x8xf32> to vector<8x8xf32>
    %348 = vector.extract_strided_slice %233 {offsets = [8, 0], sizes = [8, 8], strides = [1, 1]} : vector<16x32xf32> to vector<8x8xf32>
    %349 = vector.extract_strided_slice %239 {offsets = [8, 0], sizes = [8, 8], strides = [1, 1]} : vector<16x64xf32> to vector<8x8xf32>
    %350 = vector.extract_strided_slice %239 {offsets = [8, 32], sizes = [8, 8], strides = [1, 1]} : vector<16x64xf32> to vector<8x8xf32>
    %351 = tpu.transpose %349, [1, 0] : vector<8x8xf32> -> vector<8x8xf32>
    %cst_163 = arith.constant dense<0.000000e+00> : vector<8x8xf32>
    %352 = tpu.matmul %348, %351, %cst_163 {dimension_numbers = #tpu.dot_dimension_numbers<[1], [0], [0], [1], [0, 0, 1, 1], [], []>} : vector<8x8xf32>, vector<8x8xf32>, vector<8x8xf32> -> vector<8x8xf32>
    %cst_164 = arith.constant 0.353553385 : f32
    %353 = vector.broadcast %cst_164 : f32 to vector<8x8xf32>
    %354 = arith.mulf %352, %353 : vector<8x8xf32>
    %cst_165 = arith.constant 0.000000e+00 : f32
    %355 = vector.broadcast %cst_165 : f32 to vector<8x8xf32>
    %356 = arith.cmpf oeq, %347, %355 : vector<8x8xf32>
    %cst_166 = arith.constant -1.000000e+10 : f32
    %357 = vector.broadcast %cst_166 : f32 to vector<8x8xf32>
    %358 = arith.select %356, %357, %354 : vector<8x8xi1>, vector<8x8xf32>
    %cst_167 = arith.constant dense<0xFF800000> : vector<8xf32>
    %359 = vector.multi_reduction <maximumf>, %358, %cst_167 [1] : vector<8x8xf32> to vector<8xf32>
    %360 = vector.shape_cast %359 : vector<8xf32> to vector<8x1xf32>
    %361 = vector.broadcast %360 : vector<8x1xf32> to vector<8x8xf32>
    %362 = arith.subf %358, %361 : vector<8x8xf32>
    %363 = math.exp %362 : vector<8x8xf32>
    %cst_168 = arith.constant dense<0.000000e+00> : vector<8xf32>
    %364 = vector.multi_reduction <add>, %363, %cst_168 [1] : vector<8x8xf32> to vector<8xf32>
    %365 = vector.shape_cast %364 : vector<8xf32> to vector<8x1xf32>
    %366 = tpu.reciprocal %365 {approx = true} : vector<8x1xf32> -> vector<8x1xf32>
    %367 = vector.broadcast %366 : vector<8x1xf32> to vector<8x8xf32>
    %368 = arith.mulf %363, %367 : vector<8x8xf32>
    %c1_169 = arith.constant 1 : index
    %c0_170 = arith.constant 0 : index
    %c0_171 = arith.constant 0 : index
    %c0_172 = arith.constant 0 : index
    %369 = vector.load %arg26[%c1_169, %c0_170, %c0_171, %c0_172] : memref<2x4x8x8xf32, #tpu.memory_space<vmem>>, vector<1x1x8x8xf32>
    %370 = vector.shape_cast %369 : vector<1x1x8x8xf32> to vector<8x8xf32>
    %371 = vector.shape_cast %368 : vector<8x8xf32> to vector<1x1x8x8xf32>
    tpu.vector_store %arg26[%c1_169, %c0_170, %c0_171, %c0_172], %371 {strides = array<i32>} : memref<2x4x8x8xf32, #tpu.memory_space<vmem>>, vector<1x1x8x8xf32>,
    %cst_173 = arith.constant dense<0.000000e+00> : vector<8x8xf32>
    %372 = tpu.matmul %368, %350, %cst_173 {dimension_numbers = #tpu.dot_dimension_numbers<[1], [0], [0], [1], [0, 0, 1, 1], [], []>} : vector<8x8xf32>, vector<8x8xf32>, vector<8x8xf32> -> vector<8x8xf32>
    %c8_174 = arith.constant 8 : index
    %c0_175 = arith.constant 0 : index
    %373 = vector.load %arg27[%c8_174, %c0_175] : memref<16x32xf32, #tpu.memory_space<vmem>>, vector<8x8xf32>
    tpu.vector_store %arg27[%c8_174, %c0_175], %372 {strides = array<i32>} : memref<16x32xf32, #tpu.memory_space<vmem>>, vector<8x8xf32>,
    %374 = vector.extract_strided_slice %233 {offsets = [8, 8], sizes = [8, 8], strides = [1, 1]} : vector<16x32xf32> to vector<8x8xf32>
    %375 = vector.extract_strided_slice %239 {offsets = [8, 8], sizes = [8, 8], strides = [1, 1]} : vector<16x64xf32> to vector<8x8xf32>
    %376 = vector.extract_strided_slice %239 {offsets = [8, 40], sizes = [8, 8], strides = [1, 1]} : vector<16x64xf32> to vector<8x8xf32>
    %377 = tpu.transpose %375, [1, 0] : vector<8x8xf32> -> vector<8x8xf32>
    %cst_176 = arith.constant dense<0.000000e+00> : vector<8x8xf32>
    %378 = tpu.matmul %374, %377, %cst_176 {dimension_numbers = #tpu.dot_dimension_numbers<[1], [0], [0], [1], [0, 0, 1, 1], [], []>} : vector<8x8xf32>, vector<8x8xf32>, vector<8x8xf32> -> vector<8x8xf32>
    %cst_177 = arith.constant 0.353553385 : f32
    %379 = vector.broadcast %cst_177 : f32 to vector<8x8xf32>
    %380 = arith.mulf %378, %379 : vector<8x8xf32>
    %cst_178 = arith.constant 0.000000e+00 : f32
    %381 = vector.broadcast %cst_178 : f32 to vector<8x8xf32>
    %382 = arith.cmpf oeq, %347, %381 : vector<8x8xf32>
    %cst_179 = arith.constant -1.000000e+10 : f32
    %383 = vector.broadcast %cst_179 : f32 to vector<8x8xf32>
    %384 = arith.select %382, %383, %380 : vector<8x8xi1>, vector<8x8xf32>
    %cst_180 = arith.constant dense<0xFF800000> : vector<8xf32>
    %385 = vector.multi_reduction <maximumf>, %384, %cst_180 [1] : vector<8x8xf32> to vector<8xf32>
    %386 = vector.shape_cast %385 : vector<8xf32> to vector<8x1xf32>
    %387 = vector.broadcast %386 : vector<8x1xf32> to vector<8x8xf32>
    %388 = arith.subf %384, %387 : vector<8x8xf32>
    %389 = math.exp %388 : vector<8x8xf32>
    %cst_181 = arith.constant dense<0.000000e+00> : vector<8xf32>
    %390 = vector.multi_reduction <add>, %389, %cst_181 [1] : vector<8x8xf32> to vector<8xf32>
    %391 = vector.shape_cast %390 : vector<8xf32> to vector<8x1xf32>
    %392 = tpu.reciprocal %391 {approx = true} : vector<8x1xf32> -> vector<8x1xf32>
    %393 = vector.broadcast %392 : vector<8x1xf32> to vector<8x8xf32>
    %394 = arith.mulf %389, %393 : vector<8x8xf32>
    %c1_182 = arith.constant 1 : index
    %c1_183 = arith.constant 1 : index
    %c0_184 = arith.constant 0 : index
    %c0_185 = arith.constant 0 : index
    %395 = vector.load %arg26[%c1_182, %c1_183, %c0_184, %c0_185] : memref<2x4x8x8xf32, #tpu.memory_space<vmem>>, vector<1x1x8x8xf32>
    %396 = vector.shape_cast %395 : vector<1x1x8x8xf32> to vector<8x8xf32>
    %397 = vector.shape_cast %394 : vector<8x8xf32> to vector<1x1x8x8xf32>
    tpu.vector_store %arg26[%c1_182, %c1_183, %c0_184, %c0_185], %397 {strides = array<i32>} : memref<2x4x8x8xf32, #tpu.memory_space<vmem>>, vector<1x1x8x8xf32>,
    %cst_186 = arith.constant dense<0.000000e+00> : vector<8x8xf32>
    %398 = tpu.matmul %394, %376, %cst_186 {dimension_numbers = #tpu.dot_dimension_numbers<[1], [0], [0], [1], [0, 0, 1, 1], [], []>} : vector<8x8xf32>, vector<8x8xf32>, vector<8x8xf32> -> vector<8x8xf32>
    %c8_187 = arith.constant 8 : index
    %c8_188 = arith.constant 8 : index
    %399 = vector.load %arg27[%c8_187, %c8_188] : memref<16x32xf32, #tpu.memory_space<vmem>>, vector<8x8xf32>
    tpu.vector_store %arg27[%c8_187, %c8_188], %398 {strides = array<i32>} : memref<16x32xf32, #tpu.memory_space<vmem>>, vector<8x8xf32>,
    %400 = vector.extract_strided_slice %233 {offsets = [8, 16], sizes = [8, 8], strides = [1, 1]} : vector<16x32xf32> to vector<8x8xf32>
    %401 = vector.extract_strided_slice %239 {offsets = [8, 16], sizes = [8, 8], strides = [1, 1]} : vector<16x64xf32> to vector<8x8xf32>
    %402 = vector.extract_strided_slice %239 {offsets = [8, 48], sizes = [8, 8], strides = [1, 1]} : vector<16x64xf32> to vector<8x8xf32>
    %403 = tpu.transpose %401, [1, 0] : vector<8x8xf32> -> vector<8x8xf32>
    %cst_189 = arith.constant dense<0.000000e+00> : vector<8x8xf32>
    %404 = tpu.matmul %400, %403, %cst_189 {dimension_numbers = #tpu.dot_dimension_numbers<[1], [0], [0], [1], [0, 0, 1, 1], [], []>} : vector<8x8xf32>, vector<8x8xf32>, vector<8x8xf32> -> vector<8x8xf32>
    %cst_190 = arith.constant 0.353553385 : f32
    %405 = vector.broadcast %cst_190 : f32 to vector<8x8xf32>
    %406 = arith.mulf %404, %405 : vector<8x8xf32>
    %cst_191 = arith.constant 0.000000e+00 : f32
    %407 = vector.broadcast %cst_191 : f32 to vector<8x8xf32>
    %408 = arith.cmpf oeq, %347, %407 : vector<8x8xf32>
    %cst_192 = arith.constant -1.000000e+10 : f32
    %409 = vector.broadcast %cst_192 : f32 to vector<8x8xf32>
    %410 = arith.select %408, %409, %406 : vector<8x8xi1>, vector<8x8xf32>
    %cst_193 = arith.constant dense<0xFF800000> : vector<8xf32>
    %411 = vector.multi_reduction <maximumf>, %410, %cst_193 [1] : vector<8x8xf32> to vector<8xf32>
    %412 = vector.shape_cast %411 : vector<8xf32> to vector<8x1xf32>
    %413 = vector.broadcast %412 : vector<8x1xf32> to vector<8x8xf32>
    %414 = arith.subf %410, %413 : vector<8x8xf32>
    %415 = math.exp %414 : vector<8x8xf32>
    %cst_194 = arith.constant dense<0.000000e+00> : vector<8xf32>
    %416 = vector.multi_reduction <add>, %415, %cst_194 [1] : vector<8x8xf32> to vector<8xf32>
    %417 = vector.shape_cast %416 : vector<8xf32> to vector<8x1xf32>
    %418 = tpu.reciprocal %417 {approx = true} : vector<8x1xf32> -> vector<8x1xf32>
    %419 = vector.broadcast %418 : vector<8x1xf32> to vector<8x8xf32>
    %420 = arith.mulf %415, %419 : vector<8x8xf32>
    %c1_195 = arith.constant 1 : index
    %c2_196 = arith.constant 2 : index
    %c0_197 = arith.constant 0 : index
    %c0_198 = arith.constant 0 : index
    %421 = vector.load %arg26[%c1_195, %c2_196, %c0_197, %c0_198] : memref<2x4x8x8xf32, #tpu.memory_space<vmem>>, vector<1x1x8x8xf32>
    %422 = vector.shape_cast %421 : vector<1x1x8x8xf32> to vector<8x8xf32>
    %423 = vector.shape_cast %420 : vector<8x8xf32> to vector<1x1x8x8xf32>
    tpu.vector_store %arg26[%c1_195, %c2_196, %c0_197, %c0_198], %423 {strides = array<i32>} : memref<2x4x8x8xf32, #tpu.memory_space<vmem>>, vector<1x1x8x8xf32>,
    %cst_199 = arith.constant dense<0.000000e+00> : vector<8x8xf32>
    %424 = tpu.matmul %420, %402, %cst_199 {dimension_numbers = #tpu.dot_dimension_numbers<[1], [0], [0], [1], [0, 0, 1, 1], [], []>} : vector<8x8xf32>, vector<8x8xf32>, vector<8x8xf32> -> vector<8x8xf32>
    %c8_200 = arith.constant 8 : index
    %c16_201 = arith.constant 16 : index
    %425 = vector.load %arg27[%c8_200, %c16_201] : memref<16x32xf32, #tpu.memory_space<vmem>>, vector<8x8xf32>
    tpu.vector_store %arg27[%c8_200, %c16_201], %424 {strides = array<i32>} : memref<16x32xf32, #tpu.memory_space<vmem>>, vector<8x8xf32>,
    %426 = vector.extract_strided_slice %233 {offsets = [8, 24], sizes = [8, 8], strides = [1, 1]} : vector<16x32xf32> to vector<8x8xf32>
    %427 = vector.extract_strided_slice %239 {offsets = [8, 24], sizes = [8, 8], strides = [1, 1]} : vector<16x64xf32> to vector<8x8xf32>
    %428 = vector.extract_strided_slice %239 {offsets = [8, 56], sizes = [8, 8], strides = [1, 1]} : vector<16x64xf32> to vector<8x8xf32>
    %429 = tpu.transpose %427, [1, 0] : vector<8x8xf32> -> vector<8x8xf32>
    %cst_202 = arith.constant dense<0.000000e+00> : vector<8x8xf32>
    %430 = tpu.matmul %426, %429, %cst_202 {dimension_numbers = #tpu.dot_dimension_numbers<[1], [0], [0], [1], [0, 0, 1, 1], [], []>} : vector<8x8xf32>, vector<8x8xf32>, vector<8x8xf32> -> vector<8x8xf32>
    %cst_203 = arith.constant 0.353553385 : f32
    %431 = vector.broadcast %cst_203 : f32 to vector<8x8xf32>
    %432 = arith.mulf %430, %431 : vector<8x8xf32>
    %cst_204 = arith.constant 0.000000e+00 : f32
    %433 = vector.broadcast %cst_204 : f32 to vector<8x8xf32>
    %434 = arith.cmpf oeq, %347, %433 : vector<8x8xf32>
    %cst_205 = arith.constant -1.000000e+10 : f32
    %435 = vector.broadcast %cst_205 : f32 to vector<8x8xf32>
    %436 = arith.select %434, %435, %432 : vector<8x8xi1>, vector<8x8xf32>
    %cst_206 = arith.constant dense<0xFF800000> : vector<8xf32>
    %437 = vector.multi_reduction <maximumf>, %436, %cst_206 [1] : vector<8x8xf32> to vector<8xf32>
    %438 = vector.shape_cast %437 : vector<8xf32> to vector<8x1xf32>
    %439 = vector.broadcast %438 : vector<8x1xf32> to vector<8x8xf32>
    %440 = arith.subf %436, %439 : vector<8x8xf32>
    %441 = math.exp %440 : vector<8x8xf32>
    %cst_207 = arith.constant dense<0.000000e+00> : vector<8xf32>
    %442 = vector.multi_reduction <add>, %441, %cst_207 [1] : vector<8x8xf32> to vector<8xf32>
    %443 = vector.shape_cast %442 : vector<8xf32> to vector<8x1xf32>
    %444 = tpu.reciprocal %443 {approx = true} : vector<8x1xf32> -> vector<8x1xf32>
    %445 = vector.broadcast %444 : vector<8x1xf32> to vector<8x8xf32>
    %446 = arith.mulf %441, %445 : vector<8x8xf32>
    %c1_208 = arith.constant 1 : index
    %c3_209 = arith.constant 3 : index
    %c0_210 = arith.constant 0 : index
    %c0_211 = arith.constant 0 : index
    %447 = vector.load %arg26[%c1_208, %c3_209, %c0_210, %c0_211] : memref<2x4x8x8xf32, #tpu.memory_space<vmem>>, vector<1x1x8x8xf32>
    %448 = vector.shape_cast %447 : vector<1x1x8x8xf32> to vector<8x8xf32>
    %449 = vector.shape_cast %446 : vector<8x8xf32> to vector<1x1x8x8xf32>
    tpu.vector_store %arg26[%c1_208, %c3_209, %c0_210, %c0_211], %449 {strides = array<i32>} : memref<2x4x8x8xf32, #tpu.memory_space<vmem>>, vector<1x1x8x8xf32>,
    %cst_212 = arith.constant dense<0.000000e+00> : vector<8x8xf32>
    %450 = tpu.matmul %446, %428, %cst_212 {dimension_numbers = #tpu.dot_dimension_numbers<[1], [0], [0], [1], [0, 0, 1, 1], [], []>} : vector<8x8xf32>, vector<8x8xf32>, vector<8x8xf32> -> vector<8x8xf32>
    %c8_213 = arith.constant 8 : index
    %c24_214 = arith.constant 24 : index
    %451 = vector.load %arg27[%c8_213, %c24_214] : memref<16x32xf32, #tpu.memory_space<vmem>>, vector<8x8xf32>
    tpu.vector_store %arg27[%c8_213, %c24_214], %450 {strides = array<i32>} : memref<16x32xf32, #tpu.memory_space<vmem>>, vector<8x8xf32>,
    %c0_215 = arith.constant 0 : index
    %c0_216 = arith.constant 0 : index
    %452 = vector.load %arg27[%c0_215, %c0_216] : memref<16x32xf32, #tpu.memory_space<vmem>>, vector<16x32xf32>
    %453 = arith.truncf %452 : vector<16x32xf32> to vector<16x32xbf16>
    %c0_217 = arith.constant 0 : index
    %c0_218 = arith.constant 0 : index
    %454 = vector.load %arg15[%c0_217, %c0_218] : memref<32x32xbf16, #tpu.memory_space<vmem>>, vector<32x32xbf16>
    %cst_219 = arith.constant dense<0.000000e+00> : vector<16x32xf32>
    %455 = tpu.matmul %453, %454, %cst_219 {dimension_numbers = #tpu.dot_dimension_numbers<[1], [0], [0], [1], [0, 0, 1, 1], [], []>} : vector<16x32xbf16>, vector<32x32xbf16>, vector<16x32xf32> -> vector<16x32xf32>
    %c0_220 = arith.constant 0 : index
    %c0_221 = arith.constant 0 : index
    %456 = vector.load %arg16[%c0_220, %c0_221] : memref<1x32xf32, #tpu.memory_space<vmem>>, vector<1x32xf32>
    %457 = vector.broadcast %456 : vector<1x32xf32> to vector<16x32xf32>
    %458 = arith.addf %455, %457 : vector<16x32xf32>
    %459 = arith.addf %227, %458 : vector<16x32xf32>
    %c0_222 = arith.constant 0 : index
    %c0_223 = arith.constant 0 : index
    %460 = vector.load %arg17[%c0_222, %c0_223] : memref<1x32xf32, #tpu.memory_space<vmem>>, vector<1x32xf32>
    %c0_224 = arith.constant 0 : index
    %c0_225 = arith.constant 0 : index
    %461 = vector.load %arg18[%c0_224, %c0_225] : memref<1x32xf32, #tpu.memory_space<vmem>>, vector<1x32xf32>
    %cst_226 = arith.constant dense<0.000000e+00> : vector<16xf32>
    %462 = vector.multi_reduction <add>, %459, %cst_226 [1] : vector<16x32xf32> to vector<16xf32>
    %463 = vector.shape_cast %462 : vector<16xf32> to vector<16x1xf32>
    %cst_227 = arith.constant 3.200000e+01 : f32
    %464 = vector.broadcast %cst_227 : f32 to vector<16x1xf32>
    %465 = arith.divf %463, %464 : vector<16x1xf32>
    %466 = vector.broadcast %465 : vector<16x1xf32> to vector<16x32xf32>
    %467 = arith.subf %459, %466 : vector<16x32xf32>
    %468 = arith.mulf %467, %467 : vector<16x32xf32>
    %cst_228 = arith.constant dense<0.000000e+00> : vector<16xf32>
    %469 = vector.multi_reduction <add>, %468, %cst_228 [1] : vector<16x32xf32> to vector<16xf32>
    %470 = vector.shape_cast %469 : vector<16xf32> to vector<16x1xf32>
    %cst_229 = arith.constant 3.200000e+01 : f32
    %471 = vector.broadcast %cst_229 : f32 to vector<16x1xf32>
    %472 = arith.divf %470, %471 : vector<16x1xf32>
    %473 = vector.broadcast %465 : vector<16x1xf32> to vector<16x32xf32>
    %474 = arith.subf %459, %473 : vector<16x32xf32>
    %cst_230 = arith.constant 9.99999974E-6 : f32
    %475 = vector.broadcast %cst_230 : f32 to vector<16x1xf32>
    %476 = arith.addf %472, %475 : vector<16x1xf32>
    %477 = math.rsqrt %476 : vector<16x1xf32>
    %478 = vector.broadcast %477 : vector<16x1xf32> to vector<16x32xf32>
    %479 = arith.mulf %474, %478 : vector<16x32xf32>
    %480 = vector.broadcast %460 : vector<1x32xf32> to vector<16x32xf32>
    %481 = arith.mulf %479, %480 : vector<16x32xf32>
    %482 = vector.broadcast %461 : vector<1x32xf32> to vector<16x32xf32>
    %483 = arith.addf %481, %482 : vector<16x32xf32>
    %484 = arith.truncf %483 : vector<16x32xf32> to vector<16x32xbf16>
    %c0_231 = arith.constant 0 : index
    %c0_232 = arith.constant 0 : index
    %485 = vector.load %arg19[%c0_231, %c0_232] : memref<32x64xbf16, #tpu.memory_space<vmem>>, vector<32x64xbf16>
    %cst_233 = arith.constant dense<0.000000e+00> : vector<16x64xf32>
    %486 = tpu.matmul %484, %485, %cst_233 {dimension_numbers = #tpu.dot_dimension_numbers<[1], [0], [0], [1], [0, 0, 1, 1], [], []>} : vector<16x32xbf16>, vector<32x64xbf16>, vector<16x64xf32> -> vector<16x64xf32>
    %c0_234 = arith.constant 0 : index
    %c0_235 = arith.constant 0 : index
    %487 = vector.load %arg20[%c0_234, %c0_235] : memref<1x64xf32, #tpu.memory_space<vmem>>, vector<1x64xf32>
    %488 = vector.broadcast %487 : vector<1x64xf32> to vector<16x64xf32>
    %489 = arith.addf %486, %488 : vector<16x64xf32>
    %cst_236 = arith.constant 0.000000e+00 : f32
    %490 = vector.broadcast %cst_236 : f32 to vector<16x64xf32>
    %491 = arith.maximumf %489, %490 : vector<16x64xf32>
    %492 = arith.truncf %491 : vector<16x64xf32> to vector<16x64xbf16>
    %c0_237 = arith.constant 0 : index
    %c0_238 = arith.constant 0 : index
    %493 = vector.load %arg21[%c0_237, %c0_238] : memref<64x32xbf16, #tpu.memory_space<vmem>>, vector<64x32xbf16>
    %cst_239 = arith.constant dense<0.000000e+00> : vector<16x32xf32>
    %494 = tpu.matmul %492, %493, %cst_239 {dimension_numbers = #tpu.dot_dimension_numbers<[1], [0], [0], [1], [0, 0, 1, 1], [], []>} : vector<16x64xbf16>, vector<64x32xbf16>, vector<16x32xf32> -> vector<16x32xf32>
    %c0_240 = arith.constant 0 : index
    %c0_241 = arith.constant 0 : index
    %495 = vector.load %arg22[%c0_240, %c0_241] : memref<1x32xf32, #tpu.memory_space<vmem>>, vector<1x32xf32>
    %496 = vector.broadcast %495 : vector<1x32xf32> to vector<16x32xf32>
    %497 = arith.addf %494, %496 : vector<16x32xf32>
    %498 = arith.addf %483, %497 : vector<16x32xf32>
    %c0_242 = arith.constant 0 : index
    %c0_243 = arith.constant 0 : index
    %499 = vector.load %arg23[%c0_242, %c0_243] : memref<1x32xf32, #tpu.memory_space<vmem>>, vector<1x32xf32>
    %c0_244 = arith.constant 0 : index
    %c0_245 = arith.constant 0 : index
    %500 = vector.load %arg24[%c0_244, %c0_245] : memref<1x32xf32, #tpu.memory_space<vmem>>, vector<1x32xf32>
    %cst_246 = arith.constant dense<0.000000e+00> : vector<16xf32>
    %501 = vector.multi_reduction <add>, %498, %cst_246 [1] : vector<16x32xf32> to vector<16xf32>
    %502 = vector.shape_cast %501 : vector<16xf32> to vector<16x1xf32>
    %cst_247 = arith.constant 3.200000e+01 : f32
    %503 = vector.broadcast %cst_247 : f32 to vector<16x1xf32>
    %504 = arith.divf %502, %503 : vector<16x1xf32>
    %505 = vector.broadcast %504 : vector<16x1xf32> to vector<16x32xf32>
    %506 = arith.subf %498, %505 : vector<16x32xf32>
    %507 = arith.mulf %506, %506 : vector<16x32xf32>
    %cst_248 = arith.constant dense<0.000000e+00> : vector<16xf32>
    %508 = vector.multi_reduction <add>, %507, %cst_248 [1] : vector<16x32xf32> to vector<16xf32>
    %509 = vector.shape_cast %508 : vector<16xf32> to vector<16x1xf32>
    %cst_249 = arith.constant 3.200000e+01 : f32
    %510 = vector.broadcast %cst_249 : f32 to vector<16x1xf32>
    %511 = arith.divf %509, %510 : vector<16x1xf32>
    %512 = vector.broadcast %504 : vector<16x1xf32> to vector<16x32xf32>
    %513 = arith.subf %498, %512 : vector<16x32xf32>
    %cst_250 = arith.constant 9.99999974E-6 : f32
    %514 = vector.broadcast %cst_250 : f32 to vector<16x1xf32>
    %515 = arith.addf %511, %514 : vector<16x1xf32>
    %516 = math.rsqrt %515 : vector<16x1xf32>
    %517 = vector.broadcast %516 : vector<16x1xf32> to vector<16x32xf32>
    %518 = arith.mulf %513, %517 : vector<16x32xf32>
    %519 = vector.broadcast %499 : vector<1x32xf32> to vector<16x32xf32>
    %520 = arith.mulf %518, %519 : vector<16x32xf32>
    %521 = vector.broadcast %500 : vector<1x32xf32> to vector<16x32xf32>
    %522 = arith.addf %520, %521 : vector<16x32xf32>
    %c0_251 = arith.constant 0 : index
    %c0_252 = arith.constant 0 : index
    %523 = vector.load %arg25[%c0_251, %c0_252] : memref<16x32xf32, #tpu.memory_space<vmem>>, vector<16x32xf32>
    tpu.vector_store %arg25[%c0_251, %c0_252], %522 {strides = array<i32>} : memref<16x32xf32, #tpu.memory_space<vmem>>, vector<16x32xf32>,
    return
  }
  func.func @transform_0(%arg0: i32) -> (i32, i32) {
    %c0_i32 = arith.constant 0 : i32
    %c0_i32_0 = arith.constant 0 : i32
    return %arg0, %c0_i32 : i32, i32
  }
  func.func @transform_1(%arg0: i32) -> (i32, i32) {
    %c0_i32 = arith.constant 0 : i32
    %c0_i32_0 = arith.constant 0 : i32
    return %arg0, %c0_i32 : i32, i32
  }
  func.func @transform_2(%arg0: i32) -> (i32, i32, i32) {
    %c0_i32 = arith.constant 0 : i32
    %c0_i32_0 = arith.constant 0 : i32
    %c0_i32_1 = arith.constant 0 : i32
    return %arg0, %c0_i32, %c0_i32_0 : i32, i32, i32
  }
  func.func @transform_3(%arg0: i32) -> (i32, i32, i32) {
    %c0_i32 = arith.constant 0 : i32
    %c0_i32_0 = arith.constant 0 : i32
    %c0_i32_1 = arith.constant 0 : i32
    return %arg0, %c0_i32, %c0_i32_0 : i32, i32, i32
  }
  func.func @transform_4(%arg0: i32) -> (i32, i32) {
    %c0_i32 = arith.constant 0 : i32
    %c0_i32_0 = arith.constant 0 : i32
    %c0_i32_1 = arith.constant 0 : i32
    return %c0_i32, %c0_i32_0 : i32, i32
  }
  func.func @transform_5(%arg0: i32) -> (i32, i32) {
    %c0_i32 = arith.constant 0 : i32
    %c0_i32_0 = arith.constant 0 : i32
    %c0_i32_1 = arith.constant 0 : i32
    return %c0_i32, %c0_i32_0 : i32, i32
  }
  func.func @transform_6(%arg0: i32) -> (i32, i32) {
    %c0_i32 = arith.constant 0 : i32
    %c0_i32_0 = arith.constant 0 : i32
    %c0_i32_1 = arith.constant 0 : i32
    return %c0_i32, %c0_i32_0 : i32, i32
  }
  func.func @transform_7(%arg0: i32) -> (i32, i32) {
    %c0_i32 = arith.constant 0 : i32
    %c0_i32_0 = arith.constant 0 : i32
    %c0_i32_1 = arith.constant 0 : i32
    return %c0_i32, %c0_i32_0 : i32, i32
  }
  func.func @transform_8(%arg0: i32) -> (i32, i32) {
    %c0_i32 = arith.constant 0 : i32
    %c0_i32_0 = arith.constant 0 : i32
    %c0_i32_1 = arith.constant 0 : i32
    return %c0_i32, %c0_i32_0 : i32, i32
  }
  func.func @transform_9(%arg0: i32) -> (i32, i32) {
    %c0_i32 = arith.constant 0 : i32
    %c0_i32_0 = arith.constant 0 : i32
    %c0_i32_1 = arith.constant 0 : i32
    return %c0_i32, %c0_i32_0 : i32, i32
  }
  func.func @transform_10(%arg0: i32) -> (i32, i32) {
    %c0_i32 = arith.constant 0 : i32
    %c0_i32_0 = arith.constant 0 : i32
    %c0_i32_1 = arith.constant 0 : i32
    return %c0_i32, %c0_i32_0 : i32, i32
  }
  func.func @transform_11(%arg0: i32) -> (i32, i32) {
    %c0_i32 = arith.constant 0 : i32
    %c0_i32_0 = arith.constant 0 : i32
    %c0_i32_1 = arith.constant 0 : i32
    return %c0_i32, %c0_i32_0 : i32, i32
  }
  func.func @transform_12(%arg0: i32) -> (i32, i32) {
    %c0_i32 = arith.constant 0 : i32
    %c0_i32_0 = arith.constant 0 : i32
    %c0_i32_1 = arith.constant 0 : i32
    return %c0_i32, %c0_i32_0 : i32, i32
  }
  func.func @transform_13(%arg0: i32) -> (i32, i32) {
    %c0_i32 = arith.constant 0 : i32
    %c0_i32_0 = arith.constant 0 : i32
    %c0_i32_1 = arith.constant 0 : i32
    return %c0_i32, %c0_i32_0 : i32, i32
  }
  func.func @transform_14(%arg0: i32) -> (i32, i32) {
    %c0_i32 = arith.constant 0 : i32
    %c0_i32_0 = arith.constant 0 : i32
    %c0_i32_1 = arith.constant 0 : i32
    return %c0_i32, %c0_i32_0 : i32, i32
  }
  func.func @transform_15(%arg0: i32) -> (i32, i32) {
    %c0_i32 = arith.constant 0 : i32
    %c0_i32_0 = arith.constant 0 : i32
    %c0_i32_1 = arith.constant 0 : i32
    return %c0_i32, %c0_i32_0 : i32, i32
  }
  func.func @transform_16(%arg0: i32) -> (i32, i32) {
    %c0_i32 = arith.constant 0 : i32
    %c0_i32_0 = arith.constant 0 : i32
    %c0_i32_1 = arith.constant 0 : i32
    return %c0_i32, %c0_i32_0 : i32, i32
  }
  func.func @transform_17(%arg0: i32) -> (i32, i32) {
    %c0_i32 = arith.constant 0 : i32
    %c0_i32_0 = arith.constant 0 : i32
    %c0_i32_1 = arith.constant 0 : i32
    return %c0_i32, %c0_i32_0 : i32, i32
  }
  func.func @transform_18(%arg0: i32) -> (i32, i32) {
    %c0_i32 = arith.constant 0 : i32
    %c0_i32_0 = arith.constant 0 : i32
    %c0_i32_1 = arith.constant 0 : i32
    return %c0_i32, %c0_i32_0 : i32, i32
  }
  func.func @transform_19(%arg0: i32) -> (i32, i32) {
    %c0_i32 = arith.constant 0 : i32
    %c0_i32_0 = arith.constant 0 : i32
    %c0_i32_1 = arith.constant 0 : i32
    return %c0_i32, %c0_i32_0 : i32, i32
  }
  func.func @transform_20(%arg0: i32) -> (i32, i32) {
    %c0_i32 = arith.constant 0 : i32
    %c0_i32_0 = arith.constant 0 : i32
    %c0_i32_1 = arith.constant 0 : i32
    return %c0_i32, %c0_i32_0 : i32, i32
  }
  func.func @transform_21(%arg0: i32) -> (i32, i32) {
    %c0_i32 = arith.constant 0 : i32
    %c0_i32_0 = arith.constant 0 : i32
    %c0_i32_1 = arith.constant 0 : i32
    return %c0_i32, %c0_i32_0 : i32, i32
  }
  func.func @transform_22(%arg0: i32) -> (i32, i32) {
    %c0_i32 = arith.constant 0 : i32
    %c0_i32_0 = arith.constant 0 : i32
    %c0_i32_1 = arith.constant 0 : i32
    return %c0_i32, %c0_i32_0 : i32, i32
  }
  func.func @transform_23(%arg0: i32) -> (i32, i32) {
    %c0_i32 = arith.constant 0 : i32
    %c0_i32_0 = arith.constant 0 : i32
    %c0_i32_1 = arith.constant 0 : i32
    return %c0_i32, %c0_i32_0 : i32, i32
  }
  func.func @transform_24(%arg0: i32) -> (i32, i32) {
    %c0_i32 = arith.constant 0 : i32
    %c0_i32_0 = arith.constant 0 : i32
    return %arg0, %c0_i32 : i32, i32
  }
  func.func @transform_25(%arg0: i32) -> (i32, i32, i32, i32) {
    %c0_i32 = arith.constant 0 : i32
    %c0_i32_0 = arith.constant 0 : i32
    %c0_i32_1 = arith.constant 0 : i32
    %c0_i32_2 = arith.constant 0 : i32
    return %arg0, %c0_i32, %c0_i32_0, %c0_i32_1 : i32, i32, i32, i32
  }
}

</mosaic_0001>

<bundles_post_ra>
// kernel: tpu_custom_call.1
= control target key start
LH: loop header
LB: loop body
LE: loop exit
PB: predicated region body
PF: predicated region fallthrough
CT: control target
= control target key end

     0   :  { %s5378_s0 = inlined_call_operand.vmem [shape: f32[16,32], index: 0, kind: input, shape index: {}]   ;;  %s5379_s1 = inlined_call_operand.vmem [shape: f32[16,32], index: 1, kind: input, shape index: {}]   ;;  %s5380_s2 = inlined_call_operand.vmem [shape: f32[2,8,8], index: 2, kind: input, shape index: {}]   ;;  %s5381_s3 = inlined_call_operand.hbm [shape: f32[2,8,8], index: 3, kind: input, shape index: {}]   ;;  %s5382_s4 = inlined_call_operand.hbm [shape: bf16[32,96], index: 4, kind: input, shape index: {}]   ;;  %s5383_s5 = inlined_call_operand.hbm [shape: f32[1,96], index: 5, kind: input, shape index: {}]   ;;  %s5384_s6 = inlined_call_operand.hbm [shape: bf16[32,32], index: 6, kind: input, shape index: {}]   ;;  %s5385_s7 = inlined_call_operand.hbm [shape: f32[1,32], index: 7, kind: input, shape index: {}]   ;;  %s5386_s8 = inlined_call_operand.hbm [shape: f32[1,32], index: 8, kind: input, shape index: {}]   ;;  %s5387_s9 = inlined_call_operand.hbm [shape: f32[1,32], index: 9, kind: input, shape index: {}]   ;;  %s5388_s10 = inlined_call_operand.vmem [shape: bf16[32,32], index: 10, kind: input, shape index: {}]   ;;  %s5389_s11 = inlined_call_operand.hbm [shape: f32[1,32], index: 11, kind: input, shape index: {}]   ;;  %s5390_s12 = inlined_call_operand.hbm [shape: bf16[32,64], index: 12, kind: input, shape index: {}]   ;;  %s5391_s13 = inlined_call_operand.hbm [shape: f32[1,64], index: 13, kind: input, shape index: {}]   ;;  %s5392_s14 = inlined_call_operand.vmem [shape: bf16[32,32], index: 14, kind: input, shape index: {}]   ;;  %s5393_s15 = inlined_call_operand.hbm [shape: f32[1,32], index: 15, kind: input, shape index: {}]   ;;  %s5394_s16 = inlined_call_operand.hbm [shape: f32[1,32], index: 16, kind: input, shape index: {}]   ;;  %s5395_s17 = inlined_call_operand.hbm [shape: f32[1,32], index: 17, kind: input, shape index: {}]   ;;  %s5396_s18 = inlined_call_operand.vmem [shape: bf16[32,64], index: 18, kind: input, shape index: {}]   ;;  %s5397_s19 = inlined_call_operand.vmem [shape: f32[1,64], index: 19, kind: input, shape index: {}]   ;;  %s5398_s20 = inlined_call_operand.vmem [shape: bf16[64,32], index: 20, kind: input, shape index: {}]   ;;  %s5399_s21 = inlined_call_operand.vmem [shape: f32[1,32], index: 21, kind: input, shape index: {}]   ;;  %s5400_s22 = inlined_call_operand.vmem [shape: f32[1,32], index: 22, kind: input, shape index: {}]   ;;  %s5401_s23 = inlined_call_operand.vmem [shape: f32[1,32], index: 23, kind: input, shape index: {}]   ;;  %s5402_s24 = inlined_call_operand.hbm [shape: f32[16,32], index: 24, kind: output, shape index: {0}]   ;;  %s5403_s25 = inlined_call_operand.hbm [shape: f32[2,4,8,8], index: 25, kind: output, shape index: {1}]  }
   0x1   :  { %5415 = sst [smem:[#allocation36_spill]] %s5378_s0 }
   0x2   :  { %5416 = sst [smem:[#allocation37_spill]] %s5379_s1 }
   0x3   :  { %5417 = sst [smem:[#allocation38_spill]] %s5380_s2 }
   0x4   :  { %5418 = sst [smem:[#allocation39_spill]] %s5381_s3 }
   0x5   :  { %5419 = sst [smem:[#allocation40_spill]] %s5382_s4 }
   0x6   :  { %5420 = sst [smem:[#allocation41_spill]] %s5383_s5 }
   0x7   :  { %5421 = sst [smem:[#allocation42_spill]] %s5384_s6 }
   0x8   :  { %5422 = sst [smem:[#allocation43_spill]] %s5385_s7 }
   0x9   :  { %5423 = sst [smem:[#allocation44_spill]] %s5386_s8 }
   0xa   :  { %5424 = sst [smem:[#allocation45_spill]] %s5387_s9 }
   0xb   :  { %5425 = sst [smem:[#allocation46_spill]] %s5400_s22 }
   0xc   :  { %5426 = sst [smem:[#allocation47_spill]] %s5401_s23 }
   0xd   :  { %5427 = sst [smem:[#allocation48_spill]] %s5402_s24 }
   0xe   :  { %31 = vsyncpa [#allocation4], 0 }
   0xf   :  { %32 = vsyncpa [#allocation7], 0 }
  0x10   :  { %33 = vsyncpa [#allocation10], 0 }
  0x11   :  { %34 = vsyncpa [#allocation13], 0 }
  0x12   :  { %35 = vsyncpa [#allocation16], 0 }
  0x13   :  { %36 = vsyncpa [#allocation19], 0 }
  0x14   :  { %37 = vsyncpa [#allocation22], 0 }
  0x15   :  { %38 = vsyncpa [#allocation5], 0 }
  0x16   :  { %39 = vsyncpa [#allocation26], 0  ;;  %s4548_s29 = smov [#allocation6]   ;;  %s5428_s7 = sld [smem:[#allocation40_spill]] }
  0x17   :  { %s63_s2 = sshll.u32 %s4548_s29, 4  ;;  %s64_s2 = int_to_ptr.vmem [resolvable:$true] %s63_s2 }
  0x1c   :  { %s4200_s3 = scalar_lea.hbm %s5428_s7, 256 }
  0x1d   :  { %p4201_p0 = scmp.ne.s32.totalorder %s5428_s7, %s4200_s3  ;;  %p4204_p1 = scmp.lt.u32.totalorder %s4200_s3, %s5428_s7 }
  0x1f   :  { %p4206_p2 = pnand %p4204_p1, %p4201_p0 }
  0x21   :  { %4209 = shalt.err (!%p4206_p2)
}
  0x22   :  { %s4210_s4 = scalar_lea.vmem %s64_s2, 256  ;;  %p4215_p4 = scmp.lt.s32.totalorder %s64_s2, %s64_s2 }
  0x23   :  { %p4211_p3 = scmp.ne.s32.totalorder %s64_s2, %s4210_s4  ;;  %p4216_p5 = scmp.lt.s32.totalorder %s4210_s4, %s4210_s4 }
  0x25   :  { %p4217_p6 = por %p4216_p5, %p4215_p4 }
  0x27   :  { %p4218_p7 = pnand %p4217_p6, %p4211_p3 }
  0x29   :  { %4221 = shalt.err (!%p4218_p7)
}
  0x2a   :  { %s4549_s28 = smov 64   ;;  %s4550_s9 = smov 4  }
  0x2b   :  { %69 = dma.hbm_to_vmem [thread:$0]  %s5428_s7, 256, %s64_s2, [#allocation7], %s4549_s28, %s4549_s28, %s4550_s9  }
  0x2c   :  { %s4551_s29 = smov [#allocation9]   ;;  %s4552_s30 = smov [#allocation12]  }
  0x2d   :  { %s85_s6 = sshll.u32 %s4551_s29, 4  ;;  %s108_s3 = sshll.u32 %s4552_s30, 4  ;;  %s86_s6 = int_to_ptr.vmem [resolvable:$true] %s85_s6  ;;  %s109_s3 = int_to_ptr.vmem [resolvable:$true] %s108_s3 }
  0x2e   :  { %s5429_s8 = sld [smem:[#allocation42_spill]] }
  0x34   :  { %s4222_s27 = scalar_lea.hbm %s5429_s8, 256 }
  0x35   :  { %p4223_p8 = scmp.ne.s32.totalorder %s5429_s8, %s4222_s27  ;;  %p4226_p9 = scmp.lt.u32.totalorder %s4222_s27, %s5429_s8 }
  0x37   :  { %p4228_p10 = pnand %p4226_p9, %p4223_p8 }
  0x39   :  { %4231 = shalt.err (!%p4228_p10)
}
  0x3a   :  { %s4232_s2 = scalar_lea.vmem %s86_s6, 256  ;;  %p4237_p12 = scmp.lt.s32.totalorder %s86_s6, %s86_s6 }
  0x3b   :  { %p4233_p11 = scmp.ne.s32.totalorder %s86_s6, %s4232_s2  ;;  %p4238_p13 = scmp.lt.s32.totalorder %s4232_s2, %s4232_s2 }
  0x3d   :  { %p4239_p0 = por %p4238_p13, %p4237_p12 }
  0x3f   :  { %p4240_p1 = pnand %p4239_p0, %p4233_p11 }
  0x41   :  { %4243 = shalt.err (!%p4240_p1)
}
  0x42   :  { %91 = dma.hbm_to_vmem [thread:$0]  %s5429_s8, 256, %s86_s6, [#allocation10], %s4549_s28, %s4549_s28, %s4550_s9  }
  0x43   :  { %s5430_s23 = sld [smem:[#allocation44_spill]] }
  0x49   :  { %s4244_s0 = scalar_lea.hbm %s5430_s23, 16 }
  0x4a   :  { %p4245_p2 = scmp.ne.s32.totalorder %s5430_s23, %s4244_s0  ;;  %p4248_p3 = scmp.lt.u32.totalorder %s4244_s0, %s5430_s23 }
  0x4c   :  { %p4250_p4 = pnand %p4248_p3, %p4245_p2 }
  0x4e   :  { %4253 = shalt.err (!%p4250_p4)
}
  0x4f   :  { %s4254_s27 = scalar_lea.vmem %s109_s3, 16  ;;  %s4258_s4 = scalar_lea.vmem %s109_s3, 32 }
  0x50   :  { %p4255_p5 = scmp.ne.s32.totalorder %s109_s3, %s4254_s27  ;;  %p4259_p6 = scmp.lt.s32.totalorder %s109_s3, %s109_s3 }
  0x51   :  { %p4260_p7 = scmp.lt.s32.totalorder %s4258_s4, %s4254_s27 }
  0x53   :  { %p4261_p8 = por %p4260_p7, %p4259_p6 }
  0x55   :  { %p4262_p9 = pnand %p4261_p8, %p4255_p5 }
  0x57   :  { %4265 = shalt.err (!%p4262_p9)
}
  0x58   :  { %111 = dma.hbm_to_vmem [thread:$0]  %s5430_s23, 16, %s109_s3, [#allocation13]  }
  0x59   :  { %s4553_s2 = smov [#allocation15]   ;;  %s4554_s5 = smov [#allocation18]  }
  0x5a   :  { %s130_s7 = sshll.u32 %s4553_s2, 4  ;;  %s152_s24 = sshll.u32 %s4554_s5, 4  ;;  %s131_s7 = int_to_ptr.vmem [resolvable:$true] %s130_s7  ;;  %s153_s24 = int_to_ptr.vmem [resolvable:$true] %s152_s24 }
  0x5b   :  { %s4266_s29 = scalar_lea.hbm %s5389_s11, 16 }
  0x5c   :  { %p4267_p10 = scmp.ne.s32.totalorder %s5389_s11, %s4266_s29  ;;  %p4270_p11 = scmp.lt.u32.totalorder %s4266_s29, %s5389_s11 }
  0x5e   :  { %p4272_p12 = pnand %p4270_p11, %p4267_p10 }
  0x60   :  { %4275 = shalt.err (!%p4272_p12)
}
  0x61   :  { %s4276_s3 = scalar_lea.vmem %s131_s7, 16  ;;  %s4280_s23 = scalar_lea.vmem %s131_s7, 32 }
  0x62   :  { %p4277_p13 = scmp.ne.s32.totalorder %s131_s7, %s4276_s3  ;;  %p4281_p0 = scmp.lt.s32.totalorder %s131_s7, %s131_s7 }
  0x63   :  { %p4282_p1 = scmp.lt.s32.totalorder %s4280_s23, %s4276_s3 }
  0x65   :  { %p4283_p2 = por %p4282_p1, %p4281_p0 }
  0x67   :  { %p4284_p3 = pnand %p4283_p2, %p4277_p13 }
  0x69   :  { %4287 = shalt.err (!%p4284_p3)
}
  0x6a   :  { %133 = dma.hbm_to_vmem [thread:$0]  %s5389_s11, 16, %s131_s7, [#allocation16]  }
  0x6b   :  { %s4288_s5 = scalar_lea.hbm %s5391_s13, 16 }
  0x6c   :  { %p4289_p4 = scmp.ne.s32.totalorder %s5391_s13, %s4288_s5  ;;  %p4292_p5 = scmp.lt.u32.totalorder %s4288_s5, %s5391_s13 }
  0x6e   :  { %p4294_p6 = pnand %p4292_p5, %p4289_p4 }
  0x70   :  { %4297 = shalt.err (!%p4294_p6)
}
  0x71   :  { %s4298_s26 = scalar_lea.vmem %s153_s24, 16  ;;  %s4302_s1 = scalar_lea.vmem %s153_s24, 32 }
  0x72   :  { %p4299_p7 = scmp.ne.s32.totalorder %s153_s24, %s4298_s26  ;;  %p4303_p8 = scmp.lt.s32.totalorder %s153_s24, %s153_s24 }
  0x73   :  { %p4304_p9 = scmp.lt.s32.totalorder %s4302_s1, %s4298_s26 }
  0x75   :  { %p4305_p10 = por %p4304_p9, %p4303_p8 }
  0x77   :  { %p4306_p11 = pnand %p4305_p10, %p4299_p7 }
  0x79   :  { %4309 = shalt.err (!%p4306_p11)
}
  0x7a   :  { %155 = dma.hbm_to_vmem [thread:$0]  %s5391_s13, 16, %s153_s24, [#allocation19]  }
  0x7b   :  { %s4555_s27 = smov [#allocation21]   ;;  %s4556_s23 = smov [#allocation3]  }
  0x7c   :  { %s174_s3 = sshll.u32 %s4555_s27, 4  ;;  %s51_s4 = sshll.u32 %s4556_s23, 4  ;;  %s175_s3 = int_to_ptr.vmem [resolvable:$true] %s174_s3  ;;  %s52_s4 = int_to_ptr.vmem [resolvable:$true] %s51_s4 }
  0x7d   :  { %s4310_s2 = scalar_lea.hbm %s5394_s16, 16 }
  0x7e   :  { %p4311_p12 = scmp.ne.s32.totalorder %s5394_s16, %s4310_s2  ;;  %p4314_p13 = scmp.lt.u32.totalorder %s4310_s2, %s5394_s16 }
  0x80   :  { %p4316_p0 = pnand %p4314_p13, %p4311_p12 }
  0x82   :  { %4319 = shalt.err (!%p4316_p0)
}
  0x83   :  { %s4320_s13 = scalar_lea.vmem %s175_s3, 16  ;;  %s4324_s24 = scalar_lea.vmem %s175_s3, 32 }
  0x84   :  { %p4321_p1 = scmp.ne.s32.totalorder %s175_s3, %s4320_s13  ;;  %p4325_p2 = scmp.lt.s32.totalorder %s175_s3, %s175_s3 }
  0x85   :  { %p4326_p3 = scmp.lt.s32.totalorder %s4324_s24, %s4320_s13 }
  0x87   :  { %p4327_p4 = por %p4326_p3, %p4325_p2 }
  0x89   :  { %p4328_p5 = pnand %p4327_p4, %p4321_p1 }
  0x8b   :  { %4331 = shalt.err (!%p4328_p5)
}
  0x8c   :  { %177 = dma.hbm_to_vmem [thread:$0]  %s5394_s16, 16, %s175_s3, [#allocation22]  }
  0x8d   :  { %s5431_s7 = sld [smem:[#allocation39_spill]] }
  0x93   :  { %s4332_s27 = scalar_lea.hbm %s5431_s7, 256 }
  0x94   :  { %p4333_p6 = scmp.ne.s32.totalorder %s5431_s7, %s4332_s27  ;;  %p4336_p7 = scmp.lt.u32.totalorder %s4332_s27, %s5431_s7 }
  0x96   :  { %p4338_p8 = pnand %p4336_p7, %p4333_p6 }
  0x98   :  { %4341 = shalt.err (!%p4338_p8)
}
  0x99   :  { %s4342_s5 = scalar_lea.vmem %s52_s4, 256  ;;  %p4347_p10 = scmp.lt.s32.totalorder %s52_s4, %s52_s4 }
  0x9a   :  { %p4343_p9 = scmp.ne.s32.totalorder %s52_s4, %s4342_s5  ;;  %p4348_p11 = scmp.lt.s32.totalorder %s4342_s5, %s4342_s5 }
  0x9c   :  { %p4349_p12 = por %p4348_p11, %p4347_p10 }
  0x9e   :  { %p4350_p13 = pnand %p4349_p12, %p4343_p9 }
  0xa0   :  { %4353 = shalt.err (!%p4350_p13)
}
  0xa1   :  { %s4557_s16 = smov 128   ;;  %s4558_s3 = smov 8  }
  0xa2   :  { %57 = dma.hbm_to_vmem [thread:$0]  %s5431_s7, 256, %s52_s4, [#allocation4], %s4557_s16, %s4557_s16, %s4558_s3  }
  0xa3   :  { %s4559_s29 = smov [#allocation8]   ;;  %s4560_s24 = smov [#allocation11]  }
  0xa4   :  { %s76_s13 = sshll.u32 %s4559_s29, 4  ;;  %s98_s30 = sshll.u32 %s4560_s24, 4  ;;  %s77_s13 = int_to_ptr.vmem [resolvable:$true] %s76_s13  ;;  %s99_s30 = int_to_ptr.vmem [resolvable:$true] %s98_s30 }
  0xa5   :  { %s5432_s11 = sld [smem:[#allocation41_spill]] }
  0xab   :  { %s4354_s27 = scalar_lea.hbm %s5432_s11, 16 }
  0xac   :  { %p4355_p0 = scmp.ne.s32.totalorder %s5432_s11, %s4354_s27  ;;  %p4358_p1 = scmp.lt.u32.totalorder %s4354_s27, %s5432_s11 }
  0xae   :  { %p4360_p2 = pnand %p4358_p1, %p4355_p0 }
  0xb0   :  { %4363 = shalt.err (!%p4360_p2)
}
  0xb1   :  { %s4364_s4 = scalar_lea.vmem %s77_s13, 16  ;;  %s4368_s7 = scalar_lea.vmem %s77_s13, 32 }
  0xb2   :  { %p4365_p3 = scmp.ne.s32.totalorder %s77_s13, %s4364_s4  ;;  %p4369_p4 = scmp.lt.s32.totalorder %s77_s13, %s77_s13 }
  0xb3   :  { %p4370_p5 = scmp.lt.s32.totalorder %s4368_s7, %s4364_s4 }
  0xb5   :  { %p4371_p6 = por %p4370_p5, %p4369_p4 }
  0xb7   :  { %p4372_p7 = pnand %p4371_p6, %p4365_p3 }
  0xb9   :  { %4375 = shalt.err (!%p4372_p7)
}
  0xba   :  { %79 = dma.hbm_to_vmem [thread:$0]  %s5432_s11, 16, %s77_s13, [#allocation7]  }
  0xbb   :  { %s5433_s24 = sld [smem:[#allocation43_spill]] }
  0xc1   :  { %s4376_s26 = scalar_lea.hbm %s5433_s24, 16 }
  0xc2   :  { %p4377_p8 = scmp.ne.s32.totalorder %s5433_s24, %s4376_s26  ;;  %p4380_p9 = scmp.lt.u32.totalorder %s4376_s26, %s5433_s24 }
  0xc4   :  { %p4382_p10 = pnand %p4380_p9, %p4377_p8 }
  0xc6   :  { %4385 = shalt.err (!%p4382_p10)
}
  0xc7   :  { %s4386_s8 = scalar_lea.vmem %s99_s30, 16  ;;  %s4390_s2 = scalar_lea.vmem %s99_s30, 32 }
  0xc8   :  { %p4387_p11 = scmp.ne.s32.totalorder %s99_s30, %s4386_s8  ;;  %p4391_p12 = scmp.lt.s32.totalorder %s99_s30, %s99_s30 }
  0xc9   :  { %p4392_p13 = scmp.lt.s32.totalorder %s4390_s2, %s4386_s8 }
  0xcb   :  { %p4393_p0 = por %p4392_p13, %p4391_p12 }
  0xcd   :  { %p4394_p1 = pnand %p4393_p0, %p4387_p11 }
  0xcf   :  { %4397 = shalt.err (!%p4394_p1)
}
  0xd0   :  { %101 = dma.hbm_to_vmem [thread:$0]  %s5433_s24, 16, %s99_s30, [#allocation10]  }
  0xd1   :  { %s4561_s4 = smov [#allocation14]   ;;  %s4562_s5 = smov [#allocation17]  }
  0xd2   :  { %s118_s7 = sshll.u32 %s4561_s4, 4  ;;  %s139_s22 = sshll.u32 %s4562_s5, 4  ;;  %s119_s7 = int_to_ptr.vmem [resolvable:$true] %s118_s7  ;;  %s140_s22 = int_to_ptr.vmem [resolvable:$true] %s139_s22 }
  0xd3   :  { %s5434_s26 = sld [smem:[#allocation45_spill]] }
  0xd9   :  { %s4398_s1 = scalar_lea.hbm %s5434_s26, 16 }
  0xda   :  { %p4399_p2 = scmp.ne.s32.totalorder %s5434_s26, %s4398_s1  ;;  %p4402_p3 = scmp.lt.u32.totalorder %s4398_s1, %s5434_s26 }
  0xdc   :  { %p4404_p4 = pnand %p4402_p3, %p4399_p2 }
  0xde   :  { %4407 = shalt.err (!%p4404_p4)
}
  0xdf   :  { %s4408_s30 = scalar_lea.vmem %s119_s7, 16  ;;  %s4412_s24 = scalar_lea.vmem %s119_s7, 32 }
  0xe0   :  { %p4409_p5 = scmp.ne.s32.totalorder %s119_s7, %s4408_s30  ;;  %p4413_p6 = scmp.lt.s32.totalorder %s119_s7, %s119_s7 }
  0xe1   :  { %p4414_p7 = scmp.lt.s32.totalorder %s4412_s24, %s4408_s30 }
  0xe3   :  { %p4415_p8 = por %p4414_p7, %p4413_p6 }
  0xe5   :  { %p4416_p9 = pnand %p4415_p8, %p4409_p5 }
  0xe7   :  { %4419 = shalt.err (!%p4416_p9)
}
  0xe8   :  { %121 = dma.hbm_to_vmem [thread:$0]  %s5434_s26, 16, %s119_s7, [#allocation13]  }
  0xe9   :  { %s4420_s5 = scalar_lea.hbm %s5390_s12, 256 }
  0xea   :  { %p4421_p10 = scmp.ne.s32.totalorder %s5390_s12, %s4420_s5  ;;  %p4424_p11 = scmp.lt.u32.totalorder %s4420_s5, %s5390_s12 }
  0xec   :  { %p4426_p12 = pnand %p4424_p11, %p4421_p10 }
  0xee   :  { %4429 = shalt.err (!%p4426_p12)
}
  0xef   :  { %s4430_s23 = scalar_lea.vmem %s140_s22, 256  ;;  %p4435_p0 = scmp.lt.s32.totalorder %s140_s22, %s140_s22 }
  0xf0   :  { %p4431_p13 = scmp.ne.s32.totalorder %s140_s22, %s4430_s23  ;;  %p4436_p1 = scmp.lt.s32.totalorder %s4430_s23, %s4430_s23 }
  0xf2   :  { %p4437_p2 = por %p4436_p1, %p4435_p0 }
  0xf4   :  { %p4438_p3 = pnand %p4437_p2, %p4431_p13 }
  0xf6   :  { %4441 = shalt.err (!%p4438_p3)
}
  0xf7   :  { %145 = dma.hbm_to_vmem [thread:$0]  %s5390_s12, 256, %s140_s22, [#allocation16], %s4549_s28, %s4549_s28, %s4550_s9  }
  0xf8   :  { %s4563_s6 = smov [#allocation20]   ;;  %s4564_s30 = smov [#allocation23]  }
  0xf9   :  { %s164_s8 = sshll.u32 %s4563_s6, 4  ;;  %s184_s24 = sshll.u32 %s4564_s30, 4  ;;  %s165_s8 = int_to_ptr.vmem [resolvable:$true] %s164_s8  ;;  %s185_s24 = int_to_ptr.vmem [resolvable:$true] %s184_s24 }
  0xfa   :  { %s4442_s11 = scalar_lea.hbm %s5393_s15, 16 }
  0xfb   :  { %p4443_p4 = scmp.ne.s32.totalorder %s5393_s15, %s4442_s11  ;;  %p4446_p5 = scmp.lt.u32.totalorder %s4442_s11, %s5393_s15 }
  0xfd   :  { %p4448_p6 = pnand %p4446_p5, %p4443_p4 }
  0xff   :  { %4451 = shalt.err (!%p4448_p6)
}
 0x100   :  { %s4452_s12 = scalar_lea.vmem %s165_s8, 16  ;;  %s4456_s9 = scalar_lea.vmem %s165_s8, 32 }
 0x101   :  { %p4453_p7 = scmp.ne.s32.totalorder %s165_s8, %s4452_s12  ;;  %p4457_p8 = scmp.lt.s32.totalorder %s165_s8, %s165_s8 }
 0x102   :  { %p4458_p9 = scmp.lt.s32.totalorder %s4456_s9, %s4452_s12 }
 0x104   :  { %p4459_p10 = por %p4458_p9, %p4457_p8 }
 0x106   :  { %p4460_p11 = pnand %p4459_p10, %p4453_p7 }
 0x108   :  { %4463 = shalt.err (!%p4460_p11)
}
 0x109   :  { %167 = dma.hbm_to_vmem [thread:$0]  %s5393_s15, 16, %s165_s8, [#allocation19]  }
 0x10a   :  { %s4464_s7 = scalar_lea.hbm %s5395_s17, 16 }
 0x10b   :  { %p4465_p12 = scmp.ne.s32.totalorder %s5395_s17, %s4464_s7  ;;  %p4468_p13 = scmp.lt.u32.totalorder %s4464_s7, %s5395_s17 }
 0x10d   :  { %p4470_p0 = pnand %p4468_p13, %p4465_p12 }
 0x10f   :  { %4473 = shalt.err (!%p4470_p0)
}
 0x110   :  { %s4474_s13 = scalar_lea.vmem %s185_s24, 16  ;;  %s4478_s11 = scalar_lea.vmem %s185_s24, 32 }
 0x111   :  { %p4475_p1 = scmp.ne.s32.totalorder %s185_s24, %s4474_s13  ;;  %p4479_p2 = scmp.lt.s32.totalorder %s185_s24, %s185_s24 }
 0x112   :  { %p4480_p3 = scmp.lt.s32.totalorder %s4478_s11, %s4474_s13 }
 0x114   :  { %p4481_p4 = por %p4480_p3, %p4479_p2 }
 0x116   :  { %p4482_p5 = pnand %p4481_p4, %p4475_p1 }
 0x118   :  { %4485 = shalt.err (!%p4482_p5)
}
 0x119   :  { %187 = dma.hbm_to_vmem [thread:$0]  %s5395_s17, 16, %s185_s24, [#allocation22]  }
 0x11a   :  { %4530 = dma.done.wait [#allocation4], 256  }
 0x11b   :  { %4531 = vsyncadd [#allocation4], 4294967040 }
 0x11c   :  { %4532 = dma.done.wait [#allocation7], 272  }
 0x11d   :  { %4533 = vsyncadd [#allocation7], 4294967024 }
 0x11e   :  { %4534 = dma.done.wait [#allocation10], 272  }
 0x11f   :  { %4535 = vsyncadd [#allocation10], 4294967024 }
 0x120   :  { %4536 = dma.done.wait [#allocation13], 32  }
 0x121   :  { %4537 = vsyncadd [#allocation13], 4294967264 }
 0x122   :  { %4538 = dma.done.wait [#allocation16], 272  }
 0x123   :  { %4539 = vsyncadd [#allocation16], 4294967024 }
 0x124   :  { %4540 = dma.done.wait [#allocation19], 32  }
 0x125   :  { %4541 = vsyncadd [#allocation19], 4294967264 }
 0x126   :  { %4542 = dma.done.wait [#allocation22], 32  }
 0x127   :  { %4543 = vsyncadd [#allocation22], 4294967264  ;;  %v4565_v0 = vmov 0.0   ;;  %vm4566_vm0 = vmmov 0   ;;  %v4108_v1 = vld [vmem:[#allocation6] sm:$0xff]   ;;  %v4109_v2 = vld [vmem:[#allocation6 + $0x8] sm:$0xff]  }
 0x128   :  { %3855 = vmatprep.subr.bf16.mxu0 %v4565_v0  ;;  %3859 = vmatprep.mubr.msk.bf16.mxu0 %vm4566_vm0, %v4565_v0  ;;  %s5435_s4 = sld [smem:[#allocation36_spill]]  ;;  %vm268_vm1 = vcmask 261120   ;;  %v3683_v6 = vld [vmem:[#allocation8] ss:$0 sm:$0xff]  ;;  %s4567_s29 = smov 96   ;;  %vm317_vm2 = vcmask 64512  }
 0x129   :  { %3868 = vmatprep.subr.mxu1 %v4565_v0  ;;  %3870 = vmatprep.mubr.msk.f32.mxu1 %vm4566_vm0, %v4565_v0  ;;  %s4568_s12 = smov 88   ;;  %s4569_s9 = smov 120   ;;  %vm654_vm5 = vcmask 130112   ;;  %vm827_vm6 = vcmask 195712   ;;  %vm1000_vm7 = vcmask 261312   ;;  %vm3551_vm10 = vcmask 523264  }
 0x12a   :  { %3856 = vmatpush3.bf16.msra.mxu0 %v4108_v1  ;;  %s4570_s22 = smov 80   ;;  %s4571_s1 = smov 112  }
 0x12b   :  { %3857 = vmatprep.subr.bf16.mxu0 %v4565_v0  ;;  %s4572_s27 = smov 104   ;;  %s5436_s26 = sld [smem:[#allocation38_spill]] }
 0x12c   :  { %s4573_s6 = smov 72   ;;  %s4574_s13 = smov 48  }
 0x12d   :  { %s4575_s11 = smov 40   ;;  %s4576_s15 = smov 56  }
 0x12e   :  { %v4888_v3 = vld [vmem:[%s5435_s4] sm:$0xff]  ;;  %v4893_v4 = vld [vmem:[%s5435_s4 + $0x8] sm:$0xff]  ;;  %3858 = vmatpush3.bf16.msra.mxu0 %v4109_v2  ;;  %s4578_s8 = smov 24   ;;  %s5437_s4 = sld [smem:[#allocation37_spill]] }
 0x12f   :  { %v244_v5 = vpack.c.bf16 %v4893_v4, %v4888_v3  ;;  %3863 = vmatprep.subr.mxu0 %v4565_v0 }
 0x131   :  { %3860 = vmatmul.mubr.msk.bf16.vlgmr.msra.gmra.mrb[0].mxu0 %vm268_vm1, %v244_v5  ;;  %v4930_v15 = vld [vmem:[%s5436_s26] sm:$0xff]  ;;  %v3699_v57 = vld [vmem:[%s5436_s26 + $0x8] sm:$0xff] }
 0x132   :  { %3865 = vmatprep.mubr.msk.f32.mxu0 %vm4566_vm0, %v4565_v0  ;;  %vm393_vm3 = vcmp.eq.f32.partialorder %v4930_v15, 0.0  ;;  %vm1082_vm4 = vcmp.eq.f32.partialorder %v3699_v57, 0.0 }
 0x204   :  { %v306_v7 = vpop.f32.mrb[0].mxu0 }
 0x205   :  { %v4902_v8 = vadd.f32 %v3683_v6, %v306_v7  ;;  %v3861_v9 = vpop.f32.mrb[1].mxu0 }
 0x206   :  { %v309_v10 = vpop.f32.mrb[2].mxu0 }
 0x207   :  { %v4904_v11 = vadd.f32 %v3683_v6, %v309_v10  ;;  %406 = vrot.lane.b32.xlu1 %v4902_v8, %s4549_s28  ;;  %315 = vrot.lane.b32.xlu0 %v4902_v8, %s4567_s29  ;;  %v3862_v12 = vpop.f32.mrb[3].mxu0 }
 0x20b   :  { %485 = vrot.lane.b32.xlu1 %v4902_v8, %s4568_s12 }
 0x20f   :  { %483 = vrot.lane.b32.xlu1 %v4902_v8, %s4569_s9 }
 0x213   :  { %658 = vrot.lane.b32.xlu1 %v4902_v8, %s4570_s22 }
 0x217   :  { %656 = vrot.lane.b32.xlu1 %v4902_v8, %s4571_s1 }
 0x21b   :  { %829 = vrot.lane.b32.xlu1 %v4902_v8, %s4572_s27 }
 0x279   :  { %v407_v13 = vpop.permute.xlu1 %406  ;;  %v316_v14 = vpop.permute.xlu0 %315 }
 0x27a   :  { %3864 = vmatpush3.xpose.msk.msra.mxu0 %vm317_vm2, %v316_v14  ;;  %3869 = vmatpush3.msra.mxu1 %v407_v13 }
 0x27b   :  { %3873 = vmatprep.subr.mxu1 %v4565_v0  ;;  %3878 = vmatprep.subr.mxu0 %v4565_v0 }
 0x27d   :  { %3866 = vmatmul.mubr.msk.f32.vlgmr.msra.gmra.mrb[4].mxu0 %vm317_vm2, %v4902_v8  ;;  %v486_v26 = vpop.permute.xlu1 %485 }
 0x27e   :  { %3880 = vmatprep.mubr.msk.f32.mxu0 %vm4566_vm0, %v4565_v0 }
 0x281   :  { %v484_v27 = vpop.permute.xlu1 %483 }
 0x285   :  { %v659_v28 = vpop.permute.xlu1 %658 }
 0x289   :  { %v657_v29 = vpop.permute.xlu1 %656 }
 0x28d   :  { %v830_v30 = vpop.permute.xlu1 %829 }
 0x350   :  { %v388_v16 = vpop.f32.mrb[4].mxu0 }
 0x351   :  { %v392_v17 = vmul.f32 0.35355338, %v388_v16  ;;  %v3867_v18 = vpop.f32.mrb[5].mxu0 }
 0x353   :  { %v394_v19 = vsel %vm393_vm3, -1e+10, %v392_v17 }
 0x354   :  { %v395_v20 = vsel %vm317_vm2, %v394_v19, -inf }
 0x355   :  { %396 = vmax.xlane.f32.xlu0 %v395_v20 }
 0x36b   :  { %831 = vrot.lane.b32.xlu0 %v4902_v8, %s4573_s6 }
 0x36f   :  { %1344 = vrot.lane.b32.xlu0 %v4904_v11, %s4571_s1 }
 0x373   :  { %1516 = vrot.lane.b32.xlu0 %v4904_v11, %s4572_s27 }
 0x3e2   :  { %v397_v21 = vpop.xlane.xlu0 %396 }
 0x3e3   :  { %v398_v22 = vsub.f32 %v394_v19, %v397_v21 }
 0x3e5   :  { %v399_v23 = vmul.f32 1.442695, %v398_v22 }
 0x3e6   :  { %v832_v36 = vpop.permute.xlu0 %831 }
 0x3e7   :  { %4124 = vpow2.f32 %v399_v23 }
 0x3ea   :  { %v1345_v39 = vpop.permute.xlu0 %1344 }
 0x3ee   :  { %v1517_v41 = vpop.permute.xlu0 %1516 }
 0x3f1   :  { %v4125_v24 = vpop.eup %4124 }
 0x3f2   :  { %v401_v25 = vsel %vm317_vm2, %v4125_v24, 0.0 }
 0x3f3   :  { %402 = vadd.xlane.f32.xlu1 %v401_v25 }
 0x404   :  { %1005 = vrot.lane.b32.xlu1 %v4904_v11, %s4567_s29 }
 0x408   :  { %1174 = vrot.lane.b32.xlu1 %v4904_v11, %s4568_s12 }
 0x40c   :  { %1172 = vrot.lane.b32.xlu1 %v4904_v11, %s4569_s9 }
 0x410   :  { %1346 = vrot.lane.b32.xlu1 %v4904_v11, %s4570_s22 }
 0x414   :  { %1518 = vrot.lane.b32.xlu1 %v4904_v11, %s4573_s6 }
 0x480   :  { %v403_v31 = vpop.xlane.xlu1 %402 }
 0x481   :  { %4126 = vrcp.f32 %v403_v31 }
 0x484   :  { %v1006_v34 = vpop.permute.xlu1 %1005 }
 0x488   :  { %v1175_v35 = vpop.permute.xlu1 %1174 }
 0x48b   :  { %v4127_v32 = vpop.eup %4126 }
 0x48c   :  { %v405_v33 = vmul.f32 %v4127_v32, %v4125_v24  ;;  %v1173_v37 = vpop.permute.xlu1 %1172 }
 0x48e   :  { %3871 = vmatmul.mubr.msk.f32.vlgmr.msra.gmra.mrb[0].mxu1 %vm317_vm2, %v405_v33 }
 0x48f   :  { %3874 = vmatpush3.xpose.msk.msra.mxu1 %vm317_vm2, %v486_v26  ;;  %3875 = vmatprep.mubr.msk.f32.mxu1 %vm4566_vm0, %v4565_v0 }
 0x490   :  { %3883 = vmatprep.subr.mxu1 %v4565_v0  ;;  %v1347_v38 = vpop.permute.xlu1 %1346 }
 0x492   :  { %3876 = vmatmul.mubr.msk.f32.vlgmr.msra.gmra.mrb[2].mxu1 %vm317_vm2, %v484_v27 }
 0x493   :  { %3884 = vmatpush3.xpose.msk.msra.mxu1 %vm317_vm2, %v659_v28  ;;  %3885 = vmatprep.mubr.msk.f32.mxu1 %vm4566_vm0, %v4565_v0 }
 0x494   :  { %3893 = vmatprep.subr.mxu1 %v4565_v0  ;;  %v1519_v40 = vpop.permute.xlu1 %1518 }
 0x496   :  { %3886 = vmatmul.mubr.msk.f32.vlgmr.msra.gmra.mrb[4].mxu1 %vm317_vm2, %v657_v29 }
 0x497   :  { %3894 = vmatpush3.xpose.msk.msra.mxu1 %vm317_vm2, %v832_v36  ;;  %3895 = vmatprep.mubr.msk.f32.mxu1 %vm4566_vm0, %v4565_v0 }
 0x498   :  { %3903 = vmatprep.subr.mxu1 %v4565_v0 }
 0x49a   :  { %3896 = vmatmul.mubr.msk.f32.vlgmr.msra.gmra.mrb[6].mxu1 %vm317_vm2, %v830_v30 }
 0x49b   :  { %3904 = vmatpush3.xpose.msk.msra.mxu1 %vm317_vm2, %v1006_v34  ;;  %3905 = vmatprep.mubr.msk.f32.mxu1 %vm4566_vm0, %v4565_v0 }
 0x49c   :  { %3913 = vmatprep.subr.mxu1 %v4565_v0 }
 0x49e   :  { %3906 = vmatmul.mubr.msk.f32.vlgmr.msra.gmra.mrb[8].mxu1 %vm317_vm2, %v4904_v11 }
 0x49f   :  { %3914 = vmatpush3.xpose.msk.msra.mxu1 %vm317_vm2, %v1175_v35  ;;  %3915 = vmatprep.mubr.msk.f32.mxu1 %vm4566_vm0, %v4565_v0 }
 0x4a0   :  { %3923 = vmatprep.subr.mxu1 %v4565_v0 }
 0x4a2   :  { %3916 = vmatmul.mubr.msk.f32.vlgmr.msra.gmra.mrb[10].mxu1 %vm317_vm2, %v1173_v37 }
 0x4a3   :  { %3924 = vmatpush3.xpose.msk.msra.mxu1 %vm317_vm2, %v1347_v38  ;;  %3925 = vmatprep.mubr.msk.f32.mxu1 %vm4566_vm0, %v4565_v0 }
 0x4a4   :  { %3933 = vmatprep.subr.mxu1 %v4565_v0 }
 0x4a6   :  { %3926 = vmatmul.mubr.msk.f32.vlgmr.msra.gmra.mrb[12].mxu1 %vm317_vm2, %v1345_v39 }
 0x4a7   :  { %3934 = vmatpush3.xpose.msk.msra.mxu1 %vm317_vm2, %v1519_v40  ;;  %3935 = vmatprep.mubr.msk.f32.mxu1 %vm4566_vm0, %v4565_v0 }
 0x4a8   :  { %3943 = vmatprep.subr.bf16.mxu1 %v4565_v0 }
 0x4aa   :  { %3936 = vmatmul.mubr.msk.f32.vlgmr.msra.gmra.mrb[14].mxu1 %vm317_vm2, %v1517_v41 }
 0x4ab   :  { %3947 = vmatprep.mubr.msk.bf16.mxu1 %vm4566_vm0, %v4565_v0 }
 0x561   :  { %v478_v42 = vpop.f32.mrb[0].mxu1 }
 0x562   :  { %482 = vst.msk [vmem:[#allocation2] sm:$0xff] %vm317_vm2, %v478_v42  ;;  %v3872_v43 = vpop.f32.mrb[1].mxu1 }
 0x565   :  { %v557_v44 = vpop.f32.mrb[2].mxu1 }
 0x566   :  { %v561_v45 = vmul.f32 0.35355338, %v557_v44  ;;  %v3877_v46 = vpop.f32.mrb[3].mxu1 }
 0x568   :  { %v562_v47 = vsel %vm393_vm3, -1e+10, %v561_v45 }
 0x569   :  { %v730_v48 = vpop.f32.mrb[4].mxu1  ;;  %v563_v49 = vsel %vm317_vm2, %v562_v47, -inf }
 0x56a   :  { %v734_v50 = vmul.f32 0.35355338, %v730_v48  ;;  %564 = vmax.xlane.f32.xlu1 %v563_v49  ;;  %v3887_v51 = vpop.f32.mrb[5].mxu1 }
 0x56c   :  { %v735_v52 = vsel %vm393_vm3, -1e+10, %v734_v50 }
 0x56d   :  { %v903_v53 = vpop.f32.mrb[6].mxu1  ;;  %v736_v54 = vsel %vm317_vm2, %v735_v52, -inf }
 0x56e   :  { %v907_v55 = vmul.f32 0.35355338, %v903_v53  ;;  %737 = vmax.xlane.f32.xlu0 %v736_v54  ;;  %v3897_v56 = vpop.f32.mrb[7].mxu1 }
 0x570   :  { %v908_v58 = vsel %vm393_vm3, -1e+10, %v907_v55 }
 0x571   :  { %v1077_v59 = vpop.f32.mrb[8].mxu1  ;;  %v909_v60 = vsel %vm317_vm2, %v908_v58, -inf }
 0x572   :  { %v1081_v61 = vmul.f32 0.35355338, %v1077_v59  ;;  %910 = vmax.xlane.f32.xlu0 %v909_v60  ;;  %v3907_v62 = vpop.f32.mrb[9].mxu1 }
 0x574   :  { %v1083_v63 = vsel %vm1082_vm4, -1e+10, %v1081_v61 }
 0x575   :  { %v1246_v1 = vpop.f32.mrb[10].mxu1  ;;  %v1084_v2 = vsel %vm317_vm2, %v1083_v63, -inf }
 0x576   :  { %v1250_v5 = vmul.f32 0.35355338, %v1246_v1  ;;  %1085 = vmax.xlane.f32.xlu1 %v1084_v2  ;;  %v3917_v6 = vpop.f32.mrb[11].mxu1 }
 0x578   :  { %v1251_v7 = vsel %vm1082_vm4, -1e+10, %v1250_v5 }
 0x579   :  { %v1418_v9 = vpop.f32.mrb[12].mxu1  ;;  %v1252_v10 = vsel %vm317_vm2, %v1251_v7, -inf }
 0x57a   :  { %v1422_v12 = vmul.f32 0.35355338, %v1418_v9  ;;  %1253 = vmax.xlane.f32.xlu0 %v1252_v10  ;;  %v3927_v13 = vpop.f32.mrb[13].mxu1 }
 0x57c   :  { %v1423_v14 = vsel %vm1082_vm4, -1e+10, %v1422_v12 }
 0x57d   :  { %v1590_v15 = vpop.f32.mrb[14].mxu1  ;;  %v1424_v16 = vsel %vm317_vm2, %v1423_v14, -inf }
 0x57e   :  { %v1594_v17 = vmul.f32 0.35355338, %v1590_v15  ;;  %1425 = vmax.xlane.f32.xlu1 %v1424_v16  ;;  %v3937_v18 = vpop.f32.mrb[15].mxu1 }
 0x580   :  { %v1595_v19 = vsel %vm1082_vm4, -1e+10, %v1594_v17 }
 0x581   :  { %v1596_v20 = vsel %vm317_vm2, %v1595_v19, -inf }
 0x582   :  { %1597 = vmax.xlane.f32.xlu0 %v1596_v20 }
 0x58f   :  { %747 = vrot.lane.b32.xlu1 %v4902_v8, %s4574_s13 }
 0x593   :  { %920 = vrot.lane.b32.xlu1 %v4902_v8, %s4575_s11 }
 0x598   :  { %574 = vrot.lane.b32.xlu0 %v4902_v8, %s4576_s15 }
 0x5f7   :  { %v565_v21 = vpop.xlane.xlu1 %564 }
 0x5f8   :  { %v566_v22 = vsub.f32 %v562_v47, %v565_v21 }
 0x5fa   :  { %v567_v23 = vmul.f32 1.442695, %v566_v22 }
 0x5fb   :  { %v738_v24 = vpop.xlane.xlu0 %737 }
 0x5fc   :  { %4128 = vpow2.f32 %v567_v23  ;;  %v739_v25 = vsub.f32 %v735_v52, %v738_v24 }
 0x5fe   :  { %v740_v26 = vmul.f32 1.442695, %v739_v25 }
 0x5ff   :  { %v911_v28 = vpop.xlane.xlu0 %910 }
 0x600   :  { %4130 = vpow2.f32 %v740_v26  ;;  %v912_v34 = vsub.f32 %v908_v58, %v911_v28 }
 0x602   :  { %v913_v37 = vmul.f32 1.442695, %v912_v34 }
 0x603   :  { %v1086_v35 = vpop.xlane.xlu1 %1085 }
 0x604   :  { %v1087_v36 = vsub.f32 %v1083_v63, %v1086_v35  ;;  %4132 = vpow2.f32 %v913_v37 }
 0x606   :  { %v4129_v27 = vpop.eup %4128  ;;  %v1088_v40 = vmul.f32 1.442695, %v1087_v36 }
 0x607   :  { %v569_v29 = vsel %vm317_vm2, %v4129_v27, 0.0  ;;  %v1254_v31 = vpop.xlane.xlu0 %1253 }
 0x608   :  { %570 = vadd.xlane.f32.xlu1 %v569_v29  ;;  %v1255_v38 = vsub.f32 %v1251_v7, %v1254_v31  ;;  %4134 = vpow2.f32 %v1088_v40 }
 0x60a   :  { %v4131_v30 = vpop.eup %4130  ;;  %v1256_v42 = vmul.f32 1.442695, %v1255_v38 }
 0x60b   :  { %v742_v32 = vsel %vm317_vm2, %v4131_v30, 0.0  ;;  %v1426_v39 = vpop.xlane.xlu1 %1425 }
 0x60c   :  { %743 = vadd.xlane.f32.xlu0 %v742_v32  ;;  %v1427_v41 = vsub.f32 %v1423_v14, %v1426_v39  ;;  %4136 = vpow2.f32 %v1256_v42  ;;  %v4111_v32 = vld [vmem:[#allocation9 + $0x8] sm:$0xff]  }
 0x60e   :  { %v1428_v44 = vmul.f32 1.442695, %v1427_v41  ;;  %v4133_v46 = vpop.eup %4132 }
 0x60f   :  { %v1598_v33 = vpop.xlane.xlu0 %1597  ;;  %v915_v48 = vsel %vm317_vm2, %v4133_v46, 0.0  ;;  %v748_v56 = vpop.permute.xlu1 %747 }
 0x610   :  { %v1599_v43 = vsub.f32 %v1595_v19, %v1598_v33  ;;  %4138 = vpow2.f32 %v1428_v44 }
 0x612   :  { %v1600_v45 = vmul.f32 1.442695, %v1599_v43  ;;  %v4135_v47 = vpop.eup %4134 }
 0x613   :  { %v575_v8 = vpop.permute.xlu0 %574  ;;  %v1090_v51 = vsel %vm317_vm2, %v4135_v47, 0.0  ;;  %v921_v57 = vpop.permute.xlu1 %920 }
 0x614   :  { %3879 = vmatpush3.msra.mxu0 %v575_v8  ;;  %4140 = vpow2.f32 %v1600_v45 }
 0x615   :  { %3888 = vmatprep.subr.mxu0 %v4565_v0 }
 0x616   :  { %v4137_v49 = vpop.eup %4136 }
 0x617   :  { %v1258_v52 = vsel %vm317_vm2, %v4137_v49, 0.0 }
 0x619   :  { %1263 = vrot.lane.b32.xlu1 %v4904_v11, %s4576_s15 }
 0x61a   :  { %v4139_v50 = vpop.eup %4138 }
 0x61b   :  { %v1430_v54 = vsel %vm317_vm2, %v4139_v50, 0.0 }
 0x61e   :  { %v5027_v53 = vpop.eup %4140 }
 0x61f   :  { %v1602_v55 = vsel %vm317_vm2, %v5027_v53, 0.0 }
 0x622   :  { %1095 = vrot.lane.b32.xlu0 %v4904_v11, %s4549_s28  ;;  %s4577_s28 = smov 16  }
 0x63d   :  { %916 = vadd.xlane.f32.xlu1 %v915_v48 }
 0x641   :  { %1091 = vadd.xlane.f32.xlu0 %v1090_v51  ;;  %1259 = vadd.xlane.f32.xlu1 %v1258_v52 }
 0x645   :  { %1431 = vadd.xlane.f32.xlu0 %v1430_v54  ;;  %1603 = vadd.xlane.f32.xlu1 %v1602_v55 }
 0x656   :  { %1607 = vrot.lane.b32.xlu1 %v4904_v11, %s4575_s11 }
 0x65b   :  { %1435 = vrot.lane.b32.xlu0 %v4904_v11, %s4574_s13 }
 0x695   :  { %v571_v58 = vpop.xlane.xlu1 %570 }
 0x696   :  { %4142 = vrcp.f32 %v571_v58 }
 0x699   :  { %v744_v59 = vpop.xlane.xlu0 %743  ;;  %v1264_v11 = vpop.permute.xlu1 %1263 }
 0x69a   :  { %4144 = vrcp.f32 %v744_v59 }
 0x69d   :  { %v1096_v1 = vpop.permute.xlu0 %1095 }
 0x6a0   :  { %v4143_v60 = vpop.eup %4142 }
 0x6a1   :  { %v573_v61 = vmul.f32 %v4143_v60, %v4129_v27 }
 0x6a3   :  { %3881 = vmatmul.mubr.msk.f32.vlgmr.msra.gmra.mrb[6].mxu0 %vm317_vm2, %v573_v61 }
 0x6a4   :  { %v4145_v62 = vpop.eup %4144  ;;  %3889 = vmatpush3.msra.mxu0 %v748_v56  ;;  %3890 = vmatprep.mubr.msk.f32.mxu0 %vm4566_vm0, %v4565_v0 }
 0x6a5   :  { %v746_v63 = vmul.f32 %v4145_v62, %v4131_v30  ;;  %3898 = vmatprep.subr.mxu0 %v4565_v0  ;;  %v4110_v30 = vld [vmem:[#allocation9] sm:$0xff]  }
 0x6a6   :  { %3944 = vmatpush3.bf16.msra.mxu1 %v4110_v30  ;;  %v3722_v30 = vld [vmem:[#allocation18] ss:$0 sm:$0xff] }
 0x6a7   :  { %3891 = vmatmul.mubr.msk.f32.vlgmr.msra.gmra.mrb[8].mxu0 %vm317_vm2, %v746_v63  ;;  %3945 = vmatprep.subr.bf16.mxu1 %v4565_v0 }
 0x6a8   :  { %3899 = vmatpush3.msra.mxu0 %v921_v57  ;;  %3900 = vmatprep.mubr.msk.f32.mxu0 %vm4566_vm0, %v4565_v0 }
 0x6a9   :  { %3908 = vmatprep.subr.mxu0 %v4565_v0 }
 0x6aa   :  { %3946 = vmatpush3.bf16.msra.mxu1 %v4111_v32 }
 0x6ab   :  { %3959 = vmatprep.subr.bf16.mxu1 %v4565_v0 }
 0x6ca   :  { %v917_v2 = vpop.xlane.xlu1 %916 }
 0x6cb   :  { %4146 = vrcp.f32 %v917_v2 }
 0x6ce   :  { %v1092_v5 = vpop.xlane.xlu0 %1091  ;;  %v1260_v6 = vpop.xlane.xlu1 %1259 }
 0x6cf   :  { %4148 = vrcp.f32 %v1092_v5  ;;  %v4112_v5 = vld [vmem:[#allocation17] sm:$0xff]  }
 0x6d0   :  { %4150 = vrcp.f32 %v1260_v6  ;;  %v242_v6 = vld [vmem:[%s5437_s4] sm:$0xff] }
 0x6d2   :  { %v1432_v7 = vpop.xlane.xlu0 %1431  ;;  %v1604_v12 = vpop.xlane.xlu1 %1603 }
 0x6d3   :  { %4152 = vrcp.f32 %v1432_v7  ;;  %v243_v7 = vld [vmem:[%s5437_s4 + $0x8] sm:$0xff] }
 0x6d4   :  { %4154 = vrcp.f32 %v1604_v12  ;;  %v4115_v12 = vld [vmem:[%s5388_s10 + $0x8] sm:$0xff]  }
 0x6d5   :  { %v4147_v9 = vpop.eup %4146 }
 0x6d6   :  { %v919_v10 = vmul.f32 %v4147_v9, %v4133_v46  ;;  %v1436_v18 = vpop.permute.xlu0 %1435  ;;  %v1608_v21 = vpop.permute.xlu1 %1607  ;;  %v1873_v9 = vpack.c.bf16 %v243_v7, %v242_v6 }
 0x6d8   :  { %3901 = vmatmul.mubr.msk.f32.vlgmr.msra.gmra.mrb[10].mxu0 %vm317_vm2, %v919_v10  ;;  %v4114_v10 = vld [vmem:[%s5388_s10] sm:$0xff]  }
 0x6d9   :  { %3909 = vmatpush3.msra.mxu0 %v1096_v1  ;;  %3910 = vmatprep.mubr.msk.f32.mxu0 %vm4566_vm0, %v4565_v0  ;;  %v4149_v13 = vpop.eup %4148 }
 0x6da   :  { %3918 = vmatprep.subr.mxu0 %v4565_v0  ;;  %v1094_v14 = vmul.f32 %v4149_v13, %v4135_v47  ;;  %v4151_v15 = vpop.eup %4150  ;;  %v3712_v47 = vld [vmem:[#allocation11] ss:$0 sm:$0xff] }
 0x6db   :  { %v1262_v16 = vmul.f32 %v4151_v15, %v4137_v49 }
 0x6dc   :  { %3911 = vmatmul.mubr.msk.f32.vlgmr.msra.gmra.mrb[12].mxu0 %vm317_vm2, %v1094_v14 }
 0x6dd   :  { %3919 = vmatpush3.msra.mxu0 %v1264_v11  ;;  %3920 = vmatprep.mubr.msk.f32.mxu0 %vm4566_vm0, %v4565_v0  ;;  %v4153_v17 = vpop.eup %4152 }
 0x6de   :  { %3928 = vmatprep.subr.mxu0 %v4565_v0  ;;  %v1434_v19 = vmul.f32 %v4153_v17, %v4139_v50  ;;  %v4155_v20 = vpop.eup %4154 }
 0x6df   :  { %v1606_v22 = vmul.f32 %v4155_v20, %v5027_v53 }
 0x6e0   :  { %3921 = vmatmul.mubr.msk.f32.vlgmr.msra.gmra.mrb[14].mxu0 %vm317_vm2, %v1262_v16 }
 0x6e1   :  { %3929 = vmatpush3.msra.mxu0 %v1436_v18  ;;  %3930 = vmatprep.mubr.msk.f32.mxu0 %vm4566_vm0, %v4565_v0 }
 0x6e2   :  { %3938 = vmatprep.subr.mxu0 %v4565_v0 }
 0x6e4   :  { %3931 = vmatmul.mubr.msk.f32.vlgmr.msra.gmra.mrb[16].mxu0 %vm317_vm2, %v1434_v19 }
 0x6e5   :  { %3939 = vmatpush3.msra.mxu0 %v1608_v21  ;;  %3940 = vmatprep.mubr.msk.f32.mxu0 %vm4566_vm0, %v4565_v0  ;;  %v3716_v21 = vld [vmem:[#allocation12] ss:$0 sm:$0xff] }
 0x6e6   :  { %3951 = vmatprep.subr.bf16.mxu0 %v4565_v0 }
 0x6e8   :  { %3941 = vmatmul.mubr.msk.f32.vlgmr.msra.gmra.mrb[18].mxu0 %vm317_vm2, %v1606_v22 }
 0x6e9   :  { %3955 = vmatprep.mubr.msk.bf16.mxu0 %vm4566_vm0, %v4565_v0  ;;  %3952 = vmatpush3.bf16.msra.mxu0 %v4114_v10 }
 0x6ea   :  { %3953 = vmatprep.subr.bf16.mxu0 %v4565_v0 }
 0x6ed   :  { %3954 = vmatpush3.bf16.msra.mxu0 %v4115_v12 }
 0x6ee   :  { %3967 = vmatprep.subr.mxu0 %v4565_v0 }
 0x776   :  { %v646_v23 = vpop.f32.mrb[6].mxu0 }
 0x777   :  { %651 = vrot.lane.b32.xlu0 %v646_v23, %s4558_s3  ;;  %v3882_v24 = vpop.f32.mrb[7].mxu0 }
 0x77a   :  { %v819_v25 = vpop.f32.mrb[8].mxu0 }
 0x77b   :  { %824 = vrot.lane.b32.xlu0 %v819_v25, %s4577_s28  ;;  %v3892_v26 = vpop.f32.mrb[9].mxu0  ;;  %v3717_v25 = vld [vmem:[#allocation14] ss:$0 sm:$0xff] }
 0x7ab   :  { %v992_v27 = vpop.f32.mrb[10].mxu0 }
 0x7ac   :  { %997 = vrot.lane.b32.xlu0 %v992_v27, %s4578_s8  ;;  %v3902_v28 = vpop.f32.mrb[11].mxu0 }
 0x7af   :  { %v1167_v29 = vpop.f32.mrb[12].mxu0 }
 0x7b0   :  { %1171 = vst.msk [vmem:[#allocation2 + $0x8] sm:$0xff] %vm317_vm2, %v1167_v29  ;;  %v3912_v31 = vpop.f32.mrb[13].mxu0 }
 0x7b3   :  { %v1335_v33 = vpop.f32.mrb[14].mxu0 }
 0x7b4   :  { %1340 = vrot.lane.b32.xlu1 %v1335_v33, %s4558_s3  ;;  %v3922_v8 = vpop.f32.mrb[15].mxu0 }
 0x7b7   :  { %v1507_v34 = vpop.f32.mrb[16].mxu0 }
 0x7b8   :  { %1512 = vrot.lane.b32.xlu1 %v1507_v34, %s4577_s28  ;;  %v3932_v35 = vpop.f32.mrb[17].mxu0 }
 0x7bb   :  { %v1679_v36 = vpop.f32.mrb[18].mxu0 }
 0x7bc   :  { %1684 = vrot.lane.b32.xlu1 %v1679_v36, %s4578_s8  ;;  %v3942_v37 = vpop.f32.mrb[19].mxu0 }
 0x7bd   :  { %v3718_v37 = vld [vmem:[#allocation15] ss:$0 sm:$0xff] }
 0x7e9   :  { %v652_v38 = vpop.permute.xlu0 %651 }
 0x7ea   :  { %655 = vst.msk [vmem:[#allocation2] sm:$0xff] %vm654_vm5, %v652_v38 }
 0x7ed   :  { %v825_v39 = vpop.permute.xlu0 %824 }
 0x7ee   :  { %828 = vst.msk [vmem:[#allocation2] sm:$0xff] %vm827_vm6, %v825_v39 }
 0x81e   :  { %v998_v40 = vpop.permute.xlu0 %997 }
 0x81f   :  { %1001 = vst.msk [vmem:[#allocation2] sm:$0xff] %vm1000_vm7, %v998_v40 }
 0x826   :  { %v1341_v41 = vpop.permute.xlu1 %1340  ;;  %v1688_v44 = vld [vmem:[#allocation2] sm:$0xff] }
 0x827   :  { %1343 = vst.msk [vmem:[#allocation2 + $0x8] sm:$0xff] %vm654_vm5, %v1341_v41 }
 0x82a   :  { %v1513_v42 = vpop.permute.xlu1 %1512 }
 0x82b   :  { %1515 = vst.msk [vmem:[#allocation2 + $0x8] sm:$0xff] %vm827_vm6, %v1513_v42 }
 0x82e   :  { %v1685_v43 = vpop.permute.xlu1 %1684 }
 0x82f   :  { %1687 = vst.msk [vmem:[#allocation2 + $0x8] sm:$0xff] %vm1000_vm7, %v1685_v43 }
 0x836   :  { %v1689_v45 = vld [vmem:[#allocation2 + $0x8] sm:$0xff] }
 0x837   :  { %v1690_v46 = vpack.c.bf16 %v1689_v45, %v1688_v44 }
 0x839   :  { %3948 = vmatmul.mubr.msk.bf16.vlgmr.msra.gmra.mrb[16].mxu1 %vm268_vm1, %v1690_v46 }
 0x83a   :  { %3963 = vmatprep.mubr.msk.bf16.mxu1 %vm4566_vm0, %v4565_v0  ;;  %3960 = vmatpush3.bf16.msra.mxu1 %v4112_v5 }
 0x83b   :  { %3961 = vmatprep.subr.bf16.mxu1 %v4565_v0 }
 0x90c   :  { %v1751_v48 = vpop.f32.mrb[16].mxu1 }
 0x90d   :  { %v1752_v49 = vadd.f32 %v3712_v47, %v1751_v48  ;;  %v3949_v50 = vpop.f32.mrb[17].mxu1 }
 0x90e   :  { %v1754_v51 = vpop.f32.mrb[18].mxu1 }
 0x90f   :  { %v1755_v52 = vadd.f32 %v3712_v47, %v1754_v51  ;;  %v3950_v53 = vpop.f32.mrb[19].mxu1  ;;  %v1758_v54 = vadd.f32 %v1752_v49, %v4888_v3 }
 0x911   :  { %v1762_v55 = vsel %vm268_vm1, %v1758_v54, 0.0  ;;  %v1759_v56 = vadd.f32 %v1755_v52, %v4893_v4  ;;  %v4113_v4 = vld [vmem:[#allocation17 + $0x8] sm:$0xff]  }
 0x912   :  { %1763 = vadd.xlane.f32.xlu0 %v1762_v55  ;;  %3962 = vmatpush3.bf16.msra.mxu1 %v4113_v4 }
 0x913   :  { %v1765_v57 = vsel %vm268_vm1, %v1759_v56, 0.0  ;;  %3977 = vmatprep.subr.mxu1 %v4565_v0 }
 0x914   :  { %1766 = vadd.xlane.f32.xlu1 %v1765_v57 }
 0x915   :  { %3964 = vmatmul.mubr.msk.bf16.vlgmr.msra.gmra.mrb[20].mxu1 %vm268_vm1, %v1873_v9 }
 0x916   :  { %3979 = vmatprep.mubr.msk.f32.mxu1 %vm4566_vm0, %v4565_v0 }
 0x99f   :  { %v1764_v58 = vpop.xlane.xlu0 %1763 }
 0x9a0   :  { %v1769_v59 = vmul.f32 0.03125, %v1764_v58 }
 0x9a1   :  { %v1767_v60 = vpop.xlane.xlu1 %1766 }
 0x9a2   :  { %v1771_v61 = vsub.f32 %v1758_v54, %v1769_v59  ;;  %v1770_v62 = vmul.f32 0.03125, %v1767_v60 }
 0x9a4   :  { %v1772_v63 = vsub.f32 %v1759_v56, %v1770_v62  ;;  %v1773_v11 = vmul.f32 %v1771_v61, %v1771_v61  ;;  %v1941_v56 = vld [vmem:[#allocation3] sm:$0xff] }
 0x9a5   :  { %vm2019_vm8 = vcmp.eq.f32.partialorder %v1941_v56, 0.0 }
 0x9a6   :  { %v1775_v1 = vsel %vm268_vm1, %v1773_v11, 0.0  ;;  %v1774_v2 = vmul.f32 %v1772_v63, %v1772_v63 }
 0x9a7   :  { %1776 = vadd.xlane.f32.xlu0 %v1775_v1 }
 0x9a8   :  { %v1778_v3 = vsel %vm268_vm1, %v1774_v2, 0.0 }
 0x9ab   :  { %1779 = vadd.xlane.f32.xlu0 %v1778_v3 }
 0x9e8   :  { %v1934_v31 = vpop.f32.mrb[20].mxu1 }
 0x9e9   :  { %v5116_v32 = vadd.f32 %v3722_v30, %v1934_v31  ;;  %v3965_v33 = vpop.f32.mrb[21].mxu1 }
 0x9ea   :  { %v1937_v8 = vpop.f32.mrb[22].mxu1 }
 0x9eb   :  { %2112 = vrot.lane.b32.xlu1 %v5116_v32, %s4569_s9  ;;  %v5120_v34 = vadd.f32 %v3722_v30, %v1937_v8  ;;  %v3966_v35 = vpop.f32.mrb[23].mxu1 }
 0x9ef   :  { %2286 = vrot.lane.b32.xlu1 %v5116_v32, %s4571_s1 }
 0xa34   :  { %v1777_v13 = vpop.xlane.xlu0 %1776 }
 0xa35   :  { %v1781_v14 = vmul.f32 0.03125, %v1777_v13  ;;  %v2633_v13 = vld [vmem:[#allocation3 + $0x8] sm:$0xff] }
 0xa36   :  { %vm2711_vm9 = vcmp.eq.f32.partialorder %v2633_v13, 0.0 }
 0xa37   :  { %v1783_v15 = vadd.f32 1e-05, %v1781_v14 }
 0xa38   :  { %v1780_v16 = vpop.xlane.xlu0 %1779 }
 0xa39   :  { %4156 = vrsqrt.f32 %v1783_v15  ;;  %v1782_v17 = vmul.f32 0.03125, %v1780_v16 }
 0xa3b   :  { %v1784_v18 = vadd.f32 1e-05, %v1782_v17 }
 0xa3d   :  { %4158 = vrsqrt.f32 %v1784_v18 }
 0xa43   :  { %v4157_v19 = vpop.eup %4156 }
 0xa44   :  { %v1787_v20 = vmul.f32 %v4157_v19, %v1771_v61 }
 0xa46   :  { %v1795_v23 = vmul.f32 %v3716_v21, %v1787_v20 }
 0xa47   :  { %v4159_v22 = vpop.eup %4158 }
 0xa48   :  { %v1788_v24 = vmul.f32 %v4159_v22, %v1772_v63  ;;  %v5107_v27 = vadd.f32 %v3717_v25, %v1795_v23 }
 0xa4a   :  { %v1796_v26 = vmul.f32 %v3716_v21, %v1788_v24 }
 0xa4c   :  { %v5109_v28 = vadd.f32 %v3717_v25, %v1796_v26 }
 0xa4e   :  { %v1805_v29 = vpack.c.bf16 %v5109_v28, %v5107_v27 }
 0xa50   :  { %3956 = vmatmul.mubr.msk.bf16.vlgmr.msra.gmra.mrb[20].mxu0 %vm268_vm1, %v1805_v29 }
 0xa51   :  { %3969 = vmatprep.mubr.msk.f32.mxu0 %vm4566_vm0, %v4565_v0  ;;  %3968 = vmatpush3.xpose.msk.msra.mxu0 %vm317_vm2, %v5116_v32 }
 0xa52   :  { %3972 = vmatprep.subr.mxu0 %v4565_v0 }
 0xa5d   :  { %v2113_v36 = vpop.permute.xlu1 %2112 }
 0xa5e   :  { %3978 = vmatpush3.xpose.msk.msra.mxu1 %vm317_vm2, %v2113_v36 }
 0xa5f   :  { %3987 = vmatprep.subr.mxu1 %v4565_v0 }
 0xa61   :  { %v2287_v44 = vpop.permute.xlu1 %2286 }
 0xb23   :  { %v1866_v38 = vpop.f32.mrb[20].mxu0 }
 0xb24   :  { %v1867_v39 = vadd.f32 %v3718_v37, %v1866_v38  ;;  %v3957_v40 = vpop.f32.mrb[21].mxu0 }
 0xb25   :  { %v1869_v41 = vpop.f32.mrb[22].mxu0 }
 0xb26   :  { %2284 = vrot.lane.b32.xlu1 %v1867_v39, %s4571_s1  ;;  %2110 = vrot.lane.b32.xlu0 %v1867_v39, %s4569_s9  ;;  %v3958_v42 = vpop.f32.mrb[23].mxu0  ;;  %v1870_v43 = vadd.f32 %v3718_v37, %v1869_v41 }
 0xb27   :  { %3970 = vmatmul.mubr.msk.f32.vlgmr.msra.gmra.mrb[24].mxu0 %vm317_vm2, %v1867_v39 }
 0xb28   :  { %3974 = vmatprep.mubr.msk.f32.mxu0 %vm4566_vm0, %v4565_v0 }
 0xb2a   :  { %2458 = vrot.lane.b32.xlu1 %v1867_v39, %s4572_s27  ;;  %2460 = vrot.lane.b32.xlu0 %v5116_v32, %s4572_s27 }
 0xb2e   :  { %2805 = vrot.lane.b32.xlu0 %v5120_v34, %s4569_s9  ;;  %2803 = vrot.lane.b32.xlu1 %v1870_v43, %s4569_s9 }
 0xb32   :  { %2979 = vrot.lane.b32.xlu0 %v5120_v34, %s4571_s1  ;;  %2977 = vrot.lane.b32.xlu1 %v1870_v43, %s4571_s1 }
 0xb36   :  { %3153 = vrot.lane.b32.xlu0 %v5120_v34, %s4572_s27  ;;  %3151 = vrot.lane.b32.xlu1 %v1870_v43, %s4572_s27 }
 0xb3a   :  { %2033 = vrot.lane.b32.xlu0 %v5116_v32, %s4567_s29  ;;  %2203 = vrot.lane.b32.xlu1 %v5116_v32, %s4568_s12 }
 0xb98   :  { %v2285_v45 = vpop.permute.xlu1 %2284  ;;  %v2111_v46 = vpop.permute.xlu0 %2110 }
 0xb99   :  { %3980 = vmatmul.mubr.msk.f32.vlgmr.msra.gmra.mrb[24].mxu1 %vm317_vm2, %v2111_v46 }
 0xb9a   :  { %3988 = vmatpush3.xpose.msk.msra.mxu1 %vm317_vm2, %v2287_v44  ;;  %3989 = vmatprep.mubr.msk.f32.mxu1 %vm4566_vm0, %v4565_v0 }
 0xb9b   :  { %3997 = vmatprep.subr.mxu1 %v4565_v0 }
 0xb9c   :  { %v2461_v47 = vpop.permute.xlu0 %2460  ;;  %v2459_v48 = vpop.permute.xlu1 %2458 }
 0xb9d   :  { %3990 = vmatmul.mubr.msk.f32.vlgmr.msra.gmra.mrb[26].mxu1 %vm317_vm2, %v2285_v45 }
 0xb9e   :  { %3998 = vmatpush3.xpose.msk.msra.mxu1 %vm317_vm2, %v2461_v47  ;;  %3999 = vmatprep.mubr.msk.f32.mxu1 %vm4566_vm0, %v4565_v0 }
 0xb9f   :  { %4007 = vmatprep.subr.mxu1 %v4565_v0 }
 0xba0   :  { %v2806_v49 = vpop.permute.xlu0 %2805  ;;  %v2804_v50 = vpop.permute.xlu1 %2803 }
 0xba1   :  { %4000 = vmatmul.mubr.msk.f32.vlgmr.msra.gmra.mrb[28].mxu1 %vm317_vm2, %v2459_v48 }
 0xba2   :  { %4008 = vmatpush3.xpose.msk.msra.mxu1 %vm317_vm2, %v5120_v34  ;;  %4009 = vmatprep.mubr.msk.f32.mxu1 %vm4566_vm0, %v4565_v0 }
 0xba3   :  { %4017 = vmatprep.subr.mxu1 %v4565_v0 }
 0xba4   :  { %v2980_v51 = vpop.permute.xlu0 %2979  ;;  %v2978_v53 = vpop.permute.xlu1 %2977 }
 0xba5   :  { %4010 = vmatmul.mubr.msk.f32.vlgmr.msra.gmra.mrb[30].mxu1 %vm317_vm2, %v1870_v43 }
 0xba6   :  { %4018 = vmatpush3.xpose.msk.msra.mxu1 %vm317_vm2, %v2806_v49  ;;  %4019 = vmatprep.mubr.msk.f32.mxu1 %vm4566_vm0, %v4565_v0 }
 0xba7   :  { %4027 = vmatprep.subr.mxu1 %v4565_v0 }
 0xba8   :  { %v3154_v52 = vpop.permute.xlu0 %3153  ;;  %v3152_v55 = vpop.permute.xlu1 %3151 }
 0xba9   :  { %4020 = vmatmul.mubr.msk.f32.vlgmr.msra.gmra.mrb[32].mxu1 %vm317_vm2, %v2804_v50 }
 0xbaa   :  { %4028 = vmatpush3.xpose.msk.msra.mxu1 %vm317_vm2, %v2980_v51  ;;  %4029 = vmatprep.mubr.msk.f32.mxu1 %vm4566_vm0, %v4565_v0 }
 0xbab   :  { %4037 = vmatprep.subr.mxu1 %v4565_v0 }
 0xbac   :  { %v2034_v54 = vpop.permute.xlu0 %2033  ;;  %v2204_v44 = vpop.permute.xlu1 %2203 }
 0xbad   :  { %3973 = vmatpush3.msra.mxu0 %v2034_v54  ;;  %4030 = vmatmul.mubr.msk.f32.vlgmr.msra.gmra.mrb[34].mxu1 %vm317_vm2, %v2978_v53 }
 0xbae   :  { %4038 = vmatpush3.xpose.msk.msra.mxu1 %vm317_vm2, %v3154_v52  ;;  %4039 = vmatprep.mubr.msk.f32.mxu1 %vm4566_vm0, %v4565_v0 }
 0xbaf   :  { %3982 = vmatprep.subr.mxu0 %v4565_v0  ;;  %4047 = vmatprep.subr.bf16.mxu1 %v4565_v0 }
 0xbb1   :  { %4040 = vmatmul.mubr.msk.f32.vlgmr.msra.gmra.mrb[36].mxu1 %vm317_vm2, %v3152_v55 }
 0xbb2   :  { %4051 = vmatprep.mubr.msk.bf16.mxu1 %vm4566_vm0, %v4565_v0 }
 0xbfa   :  { %v2014_v57 = vpop.f32.mrb[24].mxu0 }
 0xbfb   :  { %v2018_v58 = vmul.f32 0.35355338, %v2014_v57  ;;  %v3971_v59 = vpop.f32.mrb[25].mxu0 }
 0xbfd   :  { %v2020_v60 = vsel %vm2019_vm8, -1e+10, %v2018_v58 }
 0xbfe   :  { %v2021_v61 = vsel %vm317_vm2, %v2020_v60, -inf }
 0xbff   :  { %2022 = vmax.xlane.f32.xlu0 %v2021_v61 }
 0xc6c   :  { %v2184_v62 = vpop.f32.mrb[24].mxu1 }
 0xc6d   :  { %v2188_v63 = vmul.f32 0.35355338, %v2184_v62  ;;  %v3981_v11 = vpop.f32.mrb[25].mxu1 }
 0xc6f   :  { %v2189_v1 = vsel %vm2019_vm8, -1e+10, %v2188_v63 }
 0xc70   :  { %v2358_v2 = vpop.f32.mrb[26].mxu1  ;;  %v2190_v3 = vsel %vm317_vm2, %v2189_v1, -inf }
 0xc71   :  { %v2362_v5 = vmul.f32 0.35355338, %v2358_v2  ;;  %v3991_v4 = vpop.f32.mrb[27].mxu1  ;;  %2191 = vmax.xlane.f32.xlu1 %v2190_v3 }
 0xc73   :  { %v2363_v6 = vsel %vm2019_vm8, -1e+10, %v2362_v5 }
 0xc74   :  { %v2532_v7 = vpop.f32.mrb[28].mxu1  ;;  %v2364_v9 = vsel %vm317_vm2, %v2363_v6, -inf }
 0xc75   :  { %v2536_v10 = vmul.f32 0.35355338, %v2532_v7  ;;  %v4001_v12 = vpop.f32.mrb[29].mxu1  ;;  %2365 = vmax.xlane.f32.xlu0 %v2364_v9 }
 0xc77   :  { %v2537_v14 = vsel %vm2019_vm8, -1e+10, %v2536_v10 }
 0xc78   :  { %v2706_v15 = vpop.f32.mrb[30].mxu1  ;;  %v2538_v16 = vsel %vm317_vm2, %v2537_v14, -inf }
 0xc79   :  { %v2710_v17 = vmul.f32 0.35355338, %v2706_v15  ;;  %v4011_v18 = vpop.f32.mrb[31].mxu1  ;;  %2539 = vmax.xlane.f32.xlu0 %v2538_v16 }
 0xc7b   :  { %v2712_v19 = vsel %vm2711_vm9, -1e+10, %v2710_v17 }
 0xc7c   :  { %v2877_v20 = vpop.f32.mrb[32].mxu1  ;;  %v2713_v21 = vsel %vm317_vm2, %v2712_v19, -inf }
 0xc7d   :  { %v2881_v22 = vmul.f32 0.35355338, %v2877_v20  ;;  %2714 = vmax.xlane.f32.xlu1 %v2713_v21  ;;  %v4021_v23 = vpop.f32.mrb[33].mxu1 }
 0xc7f   :  { %v2882_v24 = vsel %vm2711_vm9, -1e+10, %v2881_v22 }
 0xc80   :  { %v3051_v25 = vpop.f32.mrb[34].mxu1  ;;  %v2883_v26 = vsel %vm317_vm2, %v2882_v24, -inf }
 0xc81   :  { %v3055_v29 = vmul.f32 0.35355338, %v3051_v25  ;;  %v4031_v30 = vpop.f32.mrb[35].mxu1  ;;  %2884 = vmax.xlane.f32.xlu0 %v2883_v26 }
 0xc83   :  { %v3056_v31 = vsel %vm2711_vm9, -1e+10, %v3055_v29 }
 0xc84   :  { %v3225_v33 = vpop.f32.mrb[36].mxu1  ;;  %v3057_v8 = vsel %vm317_vm2, %v3056_v31, -inf }
 0xc85   :  { %v3229_v35 = vmul.f32 0.35355338, %v3225_v33  ;;  %3058 = vmax.xlane.f32.xlu1 %v3057_v8  ;;  %v4041_v36 = vpop.f32.mrb[37].mxu1 }
 0xc87   :  { %v3230_v37 = vsel %vm2711_vm9, -1e+10, %v3229_v35 }
 0xc88   :  { %v3231_v38 = vsel %vm317_vm2, %v3230_v37, -inf }
 0xc89   :  { %3232 = vmax.xlane.f32.xlu0 %v3231_v38 }
 0xc8c   :  { %v2023_v39 = vpop.xlane.xlu0 %2022 }
 0xc8d   :  { %v2024_v40 = vsub.f32 %v2020_v60, %v2023_v39 }
 0xc8f   :  { %v2025_v41 = vmul.f32 1.442695, %v2024_v40 }
 0xc91   :  { %4160 = vpow2.f32 %v2025_v41 }
 0xc96   :  { %2551 = vrot.lane.b32.xlu1 %v5116_v32, %s4573_s6 }
 0xc9b   :  { %v4161_v42 = vpop.eup %4160 }
 0xc9c   :  { %v2027_v43 = vsel %vm317_vm2, %v4161_v42, 0.0 }
 0xc9f   :  { %2377 = vrot.lane.b32.xlu0 %v5116_v32, %s4570_s22 }
 0xcba   :  { %2028 = vadd.xlane.f32.xlu1 %v2027_v43 }
 0xcfe   :  { %v2192_v45 = vpop.xlane.xlu1 %2191 }
 0xcff   :  { %v2193_v46 = vsub.f32 %v2189_v1, %v2192_v45 }
 0xd01   :  { %v2194_v47 = vmul.f32 1.442695, %v2193_v46 }
 0xd02   :  { %v2366_v48 = vpop.xlane.xlu0 %2365 }
 0xd03   :  { %4162 = vpow2.f32 %v2194_v47  ;;  %v2367_v49 = vsub.f32 %v2363_v6, %v2366_v48 }
 0xd05   :  { %v2368_v50 = vmul.f32 1.442695, %v2367_v49 }
 0xd06   :  { %v2540_v51 = vpop.xlane.xlu0 %2539 }
 0xd07   :  { %4164 = vpow2.f32 %v2368_v50  ;;  %v2541_v52 = vsub.f32 %v2537_v14, %v2540_v51 }
 0xd09   :  { %v2542_v32 = vmul.f32 1.442695, %v2541_v52 }
 0xd0a   :  { %v2715_v59 = vpop.xlane.xlu1 %2714 }
 0xd0b   :  { %4166 = vpow2.f32 %v2542_v32  ;;  %v2716_v60 = vsub.f32 %v2712_v19, %v2715_v59  ;;  %v4117_v59 = vld [vmem:[%s5392_s14 + $0x8] sm:$0xff]  }
 0xd0d   :  { %v4163_v53 = vpop.eup %4162  ;;  %v2717_v11 = vmul.f32 1.442695, %v2716_v60 }
 0xd0e   :  { %v2196_v54 = vsel %vm317_vm2, %v4163_v53, 0.0  ;;  %v2885_v61 = vpop.xlane.xlu0 %2884 }
 0xd0f   :  { %2197 = vadd.xlane.f32.xlu0 %v2196_v54  ;;  %v2886_v63 = vsub.f32 %v2882_v24, %v2885_v61  ;;  %4168 = vpow2.f32 %v2717_v11 }
 0xd11   :  { %v4165_v55 = vpop.eup %4164  ;;  %v2887_v3 = vmul.f32 1.442695, %v2886_v63 }
 0xd12   :  { %v2370_v56 = vsel %vm317_vm2, %v4165_v55, 0.0  ;;  %v3059_v62 = vpop.xlane.xlu1 %3058 }
 0xd13   :  { %2371 = vadd.xlane.f32.xlu1 %v2370_v56  ;;  %v3060_v1 = vsub.f32 %v3056_v31, %v3059_v62  ;;  %4170 = vpow2.f32 %v2887_v3 }
 0xd15   :  { %v5208_v57 = vpop.eup %4166  ;;  %v3061_v5 = vmul.f32 1.442695, %v3060_v1 }
 0xd16   :  { %v2544_v58 = vsel %vm317_vm2, %v5208_v57, 0.0  ;;  %v3233_v2 = vpop.xlane.xlu0 %3232  ;;  %v2552_v7 = vpop.permute.xlu1 %2551 }
 0xd17   :  { %2545 = vadd.xlane.f32.xlu0 %v2544_v58  ;;  %v3234_v4 = vsub.f32 %v3230_v37, %v3233_v2  ;;  %4172 = vpow2.f32 %v3061_v5  ;;  %v4116_v58 = vld [vmem:[%s5392_s14] sm:$0xff]  }
 0xd18   :  { %4048 = vmatpush3.bf16.msra.mxu1 %v4116_v58 }
 0xd19   :  { %v3235_v6 = vmul.f32 1.442695, %v3234_v4  ;;  %v4169_v9 = vpop.eup %4168  ;;  %4049 = vmatprep.subr.bf16.mxu1 %v4565_v0 }
 0xd1a   :  { %v2719_v13 = vsel %vm317_vm2, %v4169_v9, 0.0  ;;  %v2378_v21 = vpop.permute.xlu0 %2377 }
 0xd1b   :  { %4174 = vpow2.f32 %v3235_v6 }
 0xd1c   :  { %4050 = vmatpush3.bf16.msra.mxu1 %v4117_v59 }
 0xd1d   :  { %v5216_v10 = vpop.eup %4170  ;;  %4063 = vmatprep.subr.bf16.mxu1 %v4565_v0 }
 0xd1e   :  { %v2889_v16 = vsel %vm317_vm2, %v5216_v10, 0.0 }
 0xd21   :  { %v5219_v14 = vpop.eup %4172 }
 0xd22   :  { %v3063_v15 = vsel %vm317_vm2, %v5219_v14, 0.0 }
 0xd24   :  { %2896 = vrot.lane.b32.xlu1 %v5120_v34, %s4568_s12 }
 0xd25   :  { %v5225_v17 = vpop.eup %4174 }
 0xd26   :  { %v3237_v18 = vsel %vm317_vm2, %v5225_v17, 0.0 }
 0xd2d   :  { %2726 = vrot.lane.b32.xlu0 %v5120_v34, %s4567_s29 }
 0xd47   :  { %v2029_v12 = vpop.xlane.xlu1 %2028 }
 0xd48   :  { %4176 = vrcp.f32 %v2029_v12  ;;  %2720 = vadd.xlane.f32.xlu1 %v2719_v13  ;;  %v3750_v13 = vld [vmem:[#allocation20] ss:$0 sm:$0xff] }
 0xd4c   :  { %3064 = vadd.xlane.f32.xlu1 %v3063_v15  ;;  %2890 = vadd.xlane.f32.xlu0 %v2889_v16 }
 0xd50   :  { %3238 = vadd.xlane.f32.xlu1 %v3237_v18 }
 0xd52   :  { %v4177_v19 = vpop.eup %4176 }
 0xd53   :  { %v2031_v20 = vmul.f32 %v4177_v19, %v4161_v42 }
 0xd55   :  { %2032 = vst.msk [vmem:[#allocation25] sm:$0xff] %vm317_vm2, %v2031_v20  ;;  %3975 = vmatmul.mubr.msk.f32.vlgmr.msra.gmra.mrb[26].mxu0 %vm317_vm2, %v2031_v20 }
 0xd56   :  { %3983 = vmatpush3.msra.mxu0 %v2204_v44  ;;  %3984 = vmatprep.mubr.msk.f32.mxu0 %vm4566_vm0, %v4565_v0 }
 0xd57   :  { %3992 = vmatprep.subr.mxu0 %v4565_v0 }
 0xd61   :  { %3244 = vrot.lane.b32.xlu1 %v5120_v34, %s4573_s6 }
 0xd62   :  { %3070 = vrot.lane.b32.xlu0 %v5120_v34, %s4570_s22 }
 0xd9c   :  { %v2198_v22 = vpop.xlane.xlu0 %2197 }
 0xd9d   :  { %4178 = vrcp.f32 %v2198_v22 }
 0xda0   :  { %v2372_v23 = vpop.xlane.xlu1 %2371 }
 0xda1   :  { %4180 = vrcp.f32 %v2372_v23 }
 0xda4   :  { %v2546_v24 = vpop.xlane.xlu0 %2545  ;;  %v2897_v8 = vpop.permute.xlu1 %2896 }
 0xda5   :  { %4182 = vrcp.f32 %v2546_v24 }
 0xda7   :  { %v4179_v25 = vpop.eup %4178 }
 0xda8   :  { %v2200_v26 = vmul.f32 %v4179_v25, %v4163_v53  ;;  %v2727_v33 = vpop.permute.xlu0 %2726 }
 0xdaa   :  { %2202 = vst.msk [vmem:[#allocation25 + $0x8] sm:$0xff] %vm317_vm2, %v2200_v26  ;;  %3985 = vmatmul.mubr.msk.f32.vlgmr.msra.gmra.mrb[28].mxu0 %vm317_vm2, %v2200_v26 }
 0xdab   :  { %v4181_v29 = vpop.eup %4180  ;;  %3993 = vmatpush3.msra.mxu0 %v2378_v21  ;;  %3994 = vmatprep.mubr.msk.f32.mxu0 %vm4566_vm0, %v4565_v0 }
 0xdac   :  { %v2374_v30 = vmul.f32 %v4181_v29, %v4165_v55  ;;  %4002 = vmatprep.subr.mxu0 %v4565_v0 }
 0xdae   :  { %2376 = vst.msk [vmem:[#allocation25 + $0x10] sm:$0xff] %vm317_vm2, %v2374_v30  ;;  %3995 = vmatmul.mubr.msk.f32.vlgmr.msra.gmra.mrb[30].mxu0 %vm317_vm2, %v2374_v30 }
 0xdaf   :  { %v4183_v34 = vpop.eup %4182  ;;  %4003 = vmatpush3.msra.mxu0 %v2552_v7  ;;  %4004 = vmatprep.mubr.msk.f32.mxu0 %vm4566_vm0, %v4565_v0 }
 0xdb0   :  { %v2548_v31 = vmul.f32 %v4183_v34, %v5208_v57  ;;  %4012 = vmatprep.subr.mxu0 %v4565_v0 }
 0xdb2   :  { %2550 = vst.msk [vmem:[#allocation25 + $0x18] sm:$0xff] %vm317_vm2, %v2548_v31  ;;  %4005 = vmatmul.mubr.msk.f32.vlgmr.msra.gmra.mrb[32].mxu0 %vm317_vm2, %v2548_v31 }
 0xdb3   :  { %4013 = vmatpush3.msra.mxu0 %v2727_v33  ;;  %4014 = vmatprep.mubr.msk.f32.mxu0 %vm4566_vm0, %v4565_v0 }
 0xdb4   :  { %4022 = vmatprep.subr.mxu0 %v4565_v0 }
 0xdd5   :  { %v2721_v35 = vpop.xlane.xlu1 %2720 }
 0xdd6   :  { %4184 = vrcp.f32 %v2721_v35  ;;  %v4119_v35 = vld [vmem:[%s5396_s18 + $0x8] sm:$0xff]  }
 0xdd9   :  { %v3065_v36 = vpop.xlane.xlu1 %3064  ;;  %v2891_v37 = vpop.xlane.xlu0 %2890 }
 0xdda   :  { %4186 = vrcp.f32 %v3065_v36  ;;  %v4120_v36 = vld [vmem:[%s5398_s20] sm:$0xff]  }
 0xddb   :  { %4188 = vrcp.f32 %v2891_v37  ;;  %v4121_v37 = vld [vmem:[%s5398_s20 + $0x8] sm:$0xff]  }
 0xddd   :  { %v3239_v38 = vpop.xlane.xlu1 %3238  ;;  %v3071_v46 = vpop.permute.xlu0 %3070 }
 0xdde   :  { %4190 = vrcp.f32 %v3239_v38 }
 0xde0   :  { %v4185_v39 = vpop.eup %4184 }
 0xde1   :  { %v2723_v40 = vmul.f32 %v4185_v39, %v4169_v9  ;;  %v3245_v48 = vpop.permute.xlu1 %3244 }
 0xde3   :  { %2725 = vst.msk [vmem:[#allocation25 + $0x20] sm:$0xff] %vm317_vm2, %v2723_v40  ;;  %4015 = vmatmul.mubr.msk.f32.vlgmr.msra.gmra.mrb[34].mxu0 %vm317_vm2, %v2723_v40 }
 0xde4   :  { %v4187_v41 = vpop.eup %4186  ;;  %4023 = vmatpush3.msra.mxu0 %v2897_v8  ;;  %4024 = vmatprep.mubr.msk.f32.mxu0 %vm4566_vm0, %v4565_v0 }
 0xde5   :  { %v4189_v42 = vpop.eup %4188  ;;  %v3067_v43 = vmul.f32 %v4187_v41, %v5219_v14  ;;  %4032 = vmatprep.subr.mxu0 %v4565_v0 }
 0xde6   :  { %v2893_v44 = vmul.f32 %v4189_v42, %v5216_v10 }
 0xde7   :  { %3069 = vst.msk [vmem:[#allocation25 + $0x30] sm:$0xff] %vm317_vm2, %v3067_v43 }
 0xde8   :  { %v4191_v45 = vpop.eup %4190  ;;  %2895 = vst.msk [vmem:[#allocation25 + $0x28] sm:$0xff] %vm317_vm2, %v2893_v44  ;;  %4025 = vmatmul.mubr.msk.f32.vlgmr.msra.gmra.mrb[36].mxu0 %vm317_vm2, %v2893_v44 }
 0xde9   :  { %v3241_v47 = vmul.f32 %v4191_v45, %v5225_v17  ;;  %4033 = vmatpush3.msra.mxu0 %v3071_v46  ;;  %4034 = vmatprep.mubr.msk.f32.mxu0 %vm4566_vm0, %v4565_v0  ;;  %v3754_v46 = vld [vmem:[#allocation21] ss:$0 sm:$0xff] }
 0xdea   :  { %4042 = vmatprep.subr.mxu0 %v4565_v0 }
 0xdeb   :  { %3243 = vst.msk [vmem:[#allocation25 + $0x38] sm:$0xff] %vm317_vm2, %v3241_v47 }
 0xdec   :  { %4035 = vmatmul.mubr.msk.f32.vlgmr.msra.gmra.mrb[38].mxu0 %vm317_vm2, %v3067_v43 }
 0xded   :  { %4043 = vmatpush3.msra.mxu0 %v3245_v48  ;;  %4044 = vmatprep.mubr.msk.f32.mxu0 %vm4566_vm0, %v4565_v0 }
 0xdee   :  { %4055 = vmatprep.subr.bf16.mxu0 %v4565_v0 }
 0xdf0   :  { %4045 = vmatmul.mubr.msk.f32.vlgmr.msra.gmra.mrb[40].mxu0 %vm317_vm2, %v3241_v47 }
 0xdf1   :  { %4059 = vmatprep.mubr.msk.bf16.mxu0 %vm4566_vm0, %v4565_v0 }
 0xe28   :  { %v2105_v49 = vpop.f32.mrb[26].mxu0 }
 0xe29   :  { %2109 = vst.msk [vmem:[#allocation2] sm:$0xff] %vm317_vm2, %v2105_v49  ;;  %v3976_v50 = vpop.f32.mrb[27].mxu0 }
 0xe2a   :  { %v3755_v50 = vld [vmem:[#allocation23] ss:$0 sm:$0xff] }
 0xe7d   :  { %v2275_v51 = vpop.f32.mrb[28].mxu0 }
 0xe7e   :  { %2280 = vrot.lane.b32.xlu0 %v2275_v51, %s4558_s3  ;;  %v3986_v52 = vpop.f32.mrb[29].mxu0 }
 0xe81   :  { %v2449_v32 = vpop.f32.mrb[30].mxu0 }
 0xe82   :  { %2454 = vrot.lane.b32.xlu0 %v2449_v32, %s4577_s28  ;;  %v3996_v53 = vpop.f32.mrb[31].mxu0 }
 0xe85   :  { %v2623_v54 = vpop.f32.mrb[32].mxu0 }
 0xe86   :  { %2628 = vrot.lane.b32.xlu0 %v2623_v54, %s4578_s8  ;;  %v4006_v55 = vpop.f32.mrb[33].mxu0  ;;  %v4122_v54 = vld [vmem:[%s5398_s20 + $0x10] sm:$0xff]  }
 0xe87   :  { %v4123_v55 = vld [vmem:[%s5398_s20 + $0x18] sm:$0xff]  }
 0xeb6   :  { %v2798_v56 = vpop.f32.mrb[34].mxu0 }
 0xeb7   :  { %2802 = vst.msk [vmem:[#allocation2 + $0x8] sm:$0xff] %vm317_vm2, %v2798_v56  ;;  %v4016_v57 = vpop.f32.mrb[35].mxu0  ;;  %v3756_v56 = vld [vmem:[%s5397_s19] ss:$0 sm:$0xff]  ;;  %s4579_s19 = smov [#allocation25]  }
 0xeb8   :  { %s3661_s20 = sshll.u32 %s4579_s19, 4  ;;  %s3662_s20 = int_to_ptr.vmem [resolvable:$true] %s3661_s20 }
 0xeb9   :  { %p4491_p7 = scmp.lt.s32.totalorder %s3662_s20, %s3662_s20 }
 0xebb   :  { %v2968_v60 = vpop.f32.mrb[36].mxu0 }
 0xebc   :  { %2973 = vrot.lane.b32.xlu1 %v2968_v60, %s4558_s3  ;;  %v4026_v61 = vpop.f32.mrb[37].mxu0 }
 0xebf   :  { %v3142_v62 = vpop.f32.mrb[38].mxu0 }
 0xec0   :  { %3147 = vrot.lane.b32.xlu1 %v3142_v62, %s4577_s28  ;;  %v4036_v63 = vpop.f32.mrb[39].mxu0 }
 0xec3   :  { %v3316_v11 = vpop.f32.mrb[40].mxu0 }
 0xec4   :  { %3321 = vrot.lane.b32.xlu1 %v3316_v11, %s4578_s8  ;;  %v4046_v1 = vpop.f32.mrb[41].mxu0 }
 0xef0   :  { %v2281_v2 = vpop.permute.xlu0 %2280 }
 0xef1   :  { %2283 = vst.msk [vmem:[#allocation2] sm:$0xff] %vm654_vm5, %v2281_v2 }
 0xef4   :  { %v2455_v3 = vpop.permute.xlu0 %2454 }
 0xef5   :  { %2457 = vst.msk [vmem:[#allocation2] sm:$0xff] %vm827_vm6, %v2455_v3 }
 0xef8   :  { %v2629_v5 = vpop.permute.xlu0 %2628 }
 0xef9   :  { %2631 = vst.msk [vmem:[#allocation2] sm:$0xff] %vm1000_vm7, %v2629_v5 }
 0xf00   :  { %v3325_v9 = vld [vmem:[#allocation2] sm:$0xff] }
 0xf2e   :  { %v2974_v4 = vpop.permute.xlu1 %2973 }
 0xf2f   :  { %2976 = vst.msk [vmem:[#allocation2 + $0x8] sm:$0xff] %vm654_vm5, %v2974_v4 }
 0xf32   :  { %v3148_v6 = vpop.permute.xlu1 %3147 }
 0xf33   :  { %3150 = vst.msk [vmem:[#allocation2 + $0x8] sm:$0xff] %vm827_vm6, %v3148_v6 }
 0xf36   :  { %v3322_v7 = vpop.permute.xlu1 %3321 }
 0xf37   :  { %3324 = vst.msk [vmem:[#allocation2 + $0x8] sm:$0xff] %vm1000_vm7, %v3322_v7 }
 0xf3e   :  { %v3326_v10 = vld [vmem:[#allocation2 + $0x8] sm:$0xff] }
 0xf3f   :  { %v3327_v12 = vpack.c.bf16 %v3326_v10, %v3325_v9 }
 0xf41   :  { %4052 = vmatmul.mubr.msk.bf16.vlgmr.msra.gmra.mrb[40].mxu1 %vm268_vm1, %v3327_v12 }
 0xf42   :  { %4071 = vmatprep.mubr.msk.bf16.mxu1 %vm4566_vm0, %v4565_v0  ;;  %4064 = vmatpush3.bf16.msra.mxu1 %v4120_v36 }
 0xf43   :  { %4065 = vmatprep.subr.bf16.mxu1 %v4565_v0 }
 0xf46   :  { %4066 = vmatpush3.bf16.msra.mxu1 %v4121_v37 }
 0xf47   :  { %4067 = vmatprep.subr.bf16.mxu1 %v4565_v0 }
 0xf4a   :  { %4068 = vmatpush3.bf16.msra.mxu1 %v4122_v54 }
 0xf4b   :  { %4069 = vmatprep.subr.bf16.mxu1 %v4565_v0 }
 0xf4e   :  { %4070 = vmatpush3.bf16.msra.mxu1 %v4123_v55 }
0x1014   :  { %v3388_v14 = vpop.f32.mrb[40].mxu1 }
0x1015   :  { %v3389_v15 = vadd.f32 %v3750_v13, %v3388_v14  ;;  %v4053_v16 = vpop.f32.mrb[41].mxu1 }
0x1016   :  { %v3391_v17 = vpop.f32.mrb[42].mxu1 }
0x1017   :  { %v3392_v18 = vadd.f32 %v3750_v13, %v3391_v17  ;;  %v4054_v19 = vpop.f32.mrb[43].mxu1  ;;  %v3395_v20 = vadd.f32 %v3389_v15, %v5107_v27 }
0x1019   :  { %v3396_v21 = vadd.f32 %v3392_v18, %v5109_v28  ;;  %v3399_v22 = vsel %vm268_vm1, %v3395_v20, 0.0  ;;  %v4118_v28 = vld [vmem:[%s5396_s18] sm:$0xff]  }
0x101a   :  { %3400 = vadd.xlane.f32.xlu0 %v3399_v22  ;;  %4056 = vmatpush3.bf16.msra.mxu0 %v4118_v28 }
0x101b   :  { %v3402_v23 = vsel %vm268_vm1, %v3396_v21, 0.0  ;;  %4057 = vmatprep.subr.bf16.mxu0 %v4565_v0  ;;  %v3760_v0 = vld [vmem:[%s5399_s21] ss:$0 sm:$0xff]  ;;  %s4486_s21 = scalar_lea.vmem %s3662_s20, 1024 }
0x101c   :  { %3403 = vadd.xlane.f32.xlu1 %v3402_v23  ;;  %p4487_p6 = scmp.ne.s32.totalorder %s3662_s20, %s4486_s21  ;;  %p4492_p8 = scmp.lt.s32.totalorder %s4486_s21, %s4486_s21 }
0x101e   :  { %4058 = vmatpush3.bf16.msra.mxu0 %v4119_v35  ;;  %p4493_p9 = por %p4492_p8, %p4491_p7 }
0x1020   :  { %p4494_p10 = pnand %p4493_p9, %p4487_p6 }
0x10a7   :  { %v3401_v24 = vpop.xlane.xlu0 %3400 }
0x10a8   :  { %v3405_v25 = vmul.f32 0.03125, %v3401_v24 }
0x10a9   :  { %v3404_v26 = vpop.xlane.xlu1 %3403 }
0x10aa   :  { %v3407_v29 = vsub.f32 %v3395_v20, %v3405_v25  ;;  %v3406_v30 = vmul.f32 0.03125, %v3404_v26 }
0x10ac   :  { %v3408_v34 = vsub.f32 %v3396_v21, %v3406_v30  ;;  %v3409_v31 = vmul.f32 %v3407_v29, %v3407_v29 }
0x10ae   :  { %v3411_v33 = vsel %vm268_vm1, %v3409_v31, 0.0  ;;  %v3410_v8 = vmul.f32 %v3408_v34, %v3408_v34 }
0x10af   :  { %3412 = vadd.xlane.f32.xlu0 %v3411_v33 }
0x10b0   :  { %v3414_v27 = vsel %vm268_vm1, %v3410_v8, 0.0 }
0x10b3   :  { %3415 = vadd.xlane.f32.xlu0 %v3414_v27 }
0x113c   :  { %v3413_v38 = vpop.xlane.xlu0 %3412 }
0x113d   :  { %v3417_v39 = vmul.f32 0.03125, %v3413_v38 }
0x113f   :  { %v3419_v40 = vadd.f32 1e-05, %v3417_v39 }
0x1140   :  { %v3416_v41 = vpop.xlane.xlu0 %3415 }
0x1141   :  { %4192 = vrsqrt.f32 %v3419_v40  ;;  %v3418_v42 = vmul.f32 0.03125, %v3416_v41 }
0x1143   :  { %v3420_v43 = vadd.f32 1e-05, %v3418_v42 }
0x1145   :  { %4194 = vrsqrt.f32 %v3420_v43 }
0x114b   :  { %v4193_v44 = vpop.eup %4192 }
0x114c   :  { %v3423_v45 = vmul.f32 %v4193_v44, %v3407_v29 }
0x114e   :  { %v3431_v48 = vmul.f32 %v3754_v46, %v3423_v45 }
0x114f   :  { %v4195_v47 = vpop.eup %4194 }
0x1150   :  { %v3424_v49 = vmul.f32 %v4195_v47, %v3408_v34  ;;  %v3439_v52 = vadd.f32 %v3755_v50, %v3431_v48 }
0x1152   :  { %v3432_v51 = vmul.f32 %v3754_v46, %v3424_v49 }
0x1154   :  { %v3440_v32 = vadd.f32 %v3755_v50, %v3432_v51 }
0x1156   :  { %v3441_v53 = vpack.c.bf16 %v3440_v32, %v3439_v52 }
0x1158   :  { %4060 = vmatmul.mubr.msk.bf16.vlgmr.msra.gmra.mrb[44].mxu0 %vm268_vm1, %v3441_v53 }
0x122b   :  { %v3502_v57 = vpop.f32.mrb[44].mxu0 }
0x122c   :  { %v3503_v58 = vadd.f32 %v3756_v56, %v3502_v57  ;;  %v4061_v59 = vpop.f32.mrb[45].mxu0 }
0x122d   :  { %v3505_v60 = vpop.f32.mrb[46].mxu0 }
0x122e   :  { %v3506_v61 = vadd.f32 %v3756_v56, %v3505_v60  ;;  %v4062_v62 = vpop.f32.mrb[47].mxu0  ;;  %v3509_v63 = vmax.f32 %v3503_v58, 0.0 }
0x1230   :  { %v3510_v11 = vmax.f32 %v3506_v61, 0.0 }
0x1232   :  { %v3511_v1 = vpack.c.bf16 %v3510_v11, %v3509_v63 }
0x1234   :  { %4072 = vmatmul.mubr.msk.bf16.vlgmr.msra.gmra.mrb[44].mxu1 %vm3551_vm10, %v3511_v1 }
0x1307   :  { %v3589_v2 = vpop.f32.mrb[44].mxu1 }
0x1308   :  { %v3590_v3 = vadd.f32 %v3760_v0, %v3589_v2  ;;  %v4073_v5 = vpop.f32.mrb[45].mxu1 }
0x1309   :  { %v3592_v4 = vpop.f32.mrb[46].mxu1 }
0x130a   :  { %v3596_v6 = vadd.f32 %v3590_v3, %v3439_v52  ;;  %v3593_v7 = vadd.f32 %v3760_v0, %v3592_v4  ;;  %v4074_v9 = vpop.f32.mrb[47].mxu1 }
0x130c   :  { %v3600_v10 = vsel %vm268_vm1, %v3596_v6, 0.0  ;;  %v3597_v12 = vadd.f32 %v3593_v7, %v3440_v32 }
0x130d   :  { %3601 = vadd.xlane.f32.xlu1 %v3600_v10 }
0x130e   :  { %v3603_v13 = vsel %vm268_vm1, %v3597_v12, 0.0 }
0x130f   :  { %3604 = vadd.xlane.f32.xlu0 %v3603_v13 }
0x139a   :  { %v3602_v14 = vpop.xlane.xlu1 %3601 }
0x139b   :  { %v3606_v15 = vmul.f32 0.03125, %v3602_v14 }
0x139c   :  { %v3605_v16 = vpop.xlane.xlu0 %3604 }
0x139d   :  { %v3608_v17 = vsub.f32 %v3596_v6, %v3606_v15  ;;  %v3607_v18 = vmul.f32 0.03125, %v3605_v16 }
0x139f   :  { %v3609_v19 = vsub.f32 %v3597_v12, %v3607_v18  ;;  %v3610_v20 = vmul.f32 %v3608_v17, %v3608_v17 }
0x13a1   :  { %v3612_v21 = vsel %vm268_vm1, %v3610_v20, 0.0  ;;  %v3611_v22 = vmul.f32 %v3609_v19, %v3609_v19 }
0x13a2   :  { %3613 = vadd.xlane.f32.xlu1 %v3612_v21 }
0x13a3   :  { %v3615_v23 = vsel %vm268_vm1, %v3611_v22, 0.0 }
0x13a4   :  { %3616 = vadd.xlane.f32.xlu0 %v3615_v23 }
0x13a5   :  { %4497 = shalt.err (!%p4494_p10)
}
0x13a6   :  { %s4498_s7 = scalar_lea.hbm %s5403_s25, 1024 }
0x13a7   :  { %p4499_p11 = scmp.ne.s32.totalorder %s5403_s25, %s4498_s7  ;;  %p4502_p12 = scmp.lt.u32.totalorder %s4498_s7, %s5403_s25 }
0x13a9   :  { %p4504_p13 = pnand %p4502_p12, %p4499_p11 }
0x13ab   :  { %4507 = shalt.err (!%p4504_p13)
}
0x13ac   :  { %3667 = dma.vmem_to_hbm [thread:$0]  %s3662_s20, 1024, %s5403_s25, [#allocation26], %s4557_s16, %s4557_s16, %s4558_s3  }
0x13ad   :  { %s5438_s1 = sld [smem:[#allocation46_spill]]  ;;  %s5439_s2 = sld [smem:[#allocation47_spill]] }
0x13ae   :  { %s4580_s25 = smov [#allocation24]  }
0x13af   :  { %s3649_s13 = sshll.u32 %s4580_s25, 4  ;;  %s3650_s13 = int_to_ptr.vmem [resolvable:$true] %s3649_s13 }
0x13b0   :  { %s4508_s11 = scalar_lea.vmem %s3650_s13, 256  ;;  %p4513_p1 = scmp.lt.s32.totalorder %s3650_s13, %s3650_s13 }
0x13b1   :  { %p4509_p0 = scmp.ne.s32.totalorder %s3650_s13, %s4508_s11  ;;  %p4514_p2 = scmp.lt.s32.totalorder %s4508_s11, %s4508_s11 }
0x13b3   :  { %v3766_v33 = vld [vmem:[%s5438_s1] ss:$0 sm:$0xff]  ;;  %p4515_p3 = por %p4514_p2, %p4513_p1 }
0x13b4   :  { %v3767_v28 = vld [vmem:[%s5439_s2] ss:$0 sm:$0xff] }
0x13b5   :  { %p4516_p4 = pnand %p4515_p3, %p4509_p0 }
0x142f   :  { %v3614_v24 = vpop.xlane.xlu1 %3613 }
0x1430   :  { %v3618_v25 = vmul.f32 0.03125, %v3614_v24 }
0x1431   :  { %v3617_v26 = vpop.xlane.xlu0 %3616 }
0x1432   :  { %v3620_v29 = vadd.f32 1e-05, %v3618_v25  ;;  %v3619_v30 = vmul.f32 0.03125, %v3617_v26 }
0x1434   :  { %4196 = vrsqrt.f32 %v3620_v29  ;;  %v3621_v34 = vadd.f32 1e-05, %v3619_v30 }
0x1436   :  { %4198 = vrsqrt.f32 %v3621_v34 }
0x143e   :  { %v4197_v31 = vpop.eup %4196 }
0x143f   :  { %v3624_v8 = vmul.f32 %v4197_v31, %v3608_v17 }
0x1440   :  { %v4199_v27 = vpop.eup %4198 }
0x1441   :  { %v3625_v35 = vmul.f32 %v4199_v27, %v3609_v19  ;;  %v3632_v36 = vmul.f32 %v3766_v33, %v3624_v8 }
0x1443   :  { %v3633_v37 = vmul.f32 %v3766_v33, %v3625_v35  ;;  %v3640_v38 = vadd.f32 %v3767_v28, %v3632_v36 }
0x1445   :  { %v3641_v39 = vadd.f32 %v3767_v28, %v3633_v37  ;;  %3642 = vst.msk [vmem:[#allocation24] sm:$0xff] %vm268_vm1, %v3640_v38 }
0x1447   :  { %3643 = vst.msk [vmem:[#allocation24 + $0x8] sm:$0xff] %vm268_vm1, %v3641_v39 }
0x1448   :  { %4519 = shalt.err (!%p4516_p4)
}
0x1449   :  { %s5440_s28 = sld [smem:[#allocation48_spill]] }
0x144f   :  { %s4520_s8 = scalar_lea.hbm %s5440_s28, 256 }
0x1450   :  { %p4521_p5 = scmp.ne.s32.totalorder %s5440_s28, %s4520_s8  ;;  %p4524_p6 = scmp.lt.u32.totalorder %s4520_s8, %s5440_s28 }
0x1452   :  { %p4526_p7 = pnand %p4524_p6, %p4521_p5 }
0x1454   :  { %4529 = shalt.err (!%p4526_p7)
}
0x1455   :  { %3655 = dma.vmem_to_hbm [thread:$0]  %s3650_s13, 256, %s5440_s28, [#allocation5], %s4557_s16, %s4557_s16, %s4558_s3  }
0x1456   :  { %4544 = dma.done.wait [#allocation5], 256  }
0x1457   :  { %4545 = vsyncadd [#allocation5], 4294967040 }
0x1458   :  { %4546 = dma.done.wait [#allocation26], 1024  }
0x1459   :  { %4547 = vsyncadd [#allocation26], 4294966272 }
0x145a   :  { %3674 = vsyncpa [#allocation4], 1 }
0x145b   :  { %3675 = vsyncpa [#allocation7], 1 }
0x145c   :  { %3676 = vsyncpa [#allocation10], 1 }
0x145d   :  { %3677 = vsyncpa [#allocation13], 1 }
0x145e   :  { %3678 = vsyncpa [#allocation16], 1 }
0x145f   :  { %3679 = vsyncpa [#allocation19], 1 }
0x1460   :  { %3680 = vsyncpa [#allocation22], 1 }
0x1461   :  { %3681 = vsyncpa [#allocation5], 1 }
0x1462   :  { %3682 = vsyncpa [#allocation26], 1 }

</bundles_post_ra>
